<compile_context>
chip_gen: v7x
topology: tpu7x:2x2x1
jax: 0.10.0
libtpu: 0.0.40
codegen_flags: <defaults>
</compile_context>

<pallas_src>
import numpy as np

import jax
import jax.numpy as jnp
from jax.experimental import pallas as pl
from jax.experimental.pallas import tpu as pltpu

EPS = 1e-5

# geometry implied by the module (EMNIST-style 28x28 input, 64*7*7 fc input)
H1 = W1 = 28            # conv1 output spatial
HP1 = WP1 = 14          # after pool1
HP2 = WP2 = 7           # after pool2
S1 = HP1 * WP1          # 196 pooled-1 positions (lane index = 14*hp + wp)
WIDE = 16 * 16          # 256 zero-padded "wide" positions (lane index = 16*h + w)
SQ = HP2 * WP2          # 49 pooled-2 positions
NTAP = 9                # 3x3 taps


# ----------------------------- Pallas kernels ------------------------------ #
def _conv_tower_kernel(x_ref, w1_ref, s1_ref, w2_ref, s2_ref, g1_ref, g2_ref, o_ref):
    """conv1+BN1+ReLU+pool1+conv2+BN2+ReLU+pool2 for one batch element."""
    # ---- conv1 (3x3, 1->32) + BN1 + ReLU + 2x2 maxpool (4 pooling phases) ----
    w1 = w1_ref[...]                                            # (32, 9)
    z = None
    for ph in range(4):                                         # phases (a, b) of the 2x2 pool
        zp = jnp.dot(w1, x_ref[0, ph], preferred_element_type=jnp.float32)   # (32, 196)
        z = zp if z is None else jnp.maximum(z, zp)
    p1 = jnp.maximum(z + s1_ref[...], 0.0)                      # (32, 196)  pooled conv1 act.

    # ---- conv2 (3x3, 32->64) + BN2 + ReLU in zero-padded stride-16 "wide" indexing ----
    acc = None
    for t in range(NTAP):
        # g1_ref[t] (196, 256): re-stride + zero-pad + shift pool1 output for tap t (MXU gather)
        slab = jnp.dot(p1, g1_ref[t], preferred_element_type=jnp.float32)     # (32, 256)
        part = jnp.dot(w2_ref[t], slab, preferred_element_type=jnp.float32)   # (64, 256)
        acc = part if acc is None else acc + part
    a2 = jnp.maximum(acc + s2_ref[...], 0.0)                    # (64, 256)

    # ---- 2x2 maxpool via 4 phase-gather matmuls + elementwise max ----
    p2 = None
    for ph in range(4):
        g = jnp.dot(a2, g2_ref[ph], preferred_element_type=jnp.float32)       # (64, 49)
        p2 = g if p2 is None else jnp.maximum(p2, g)

    o_ref[...] = p2[None].astype(o_ref.dtype)                   # (1, 64, 49)


def _fc_kernel(x_ref, wa_ref, ba_ref, wb_ref, bb_ref, o_ref):
    """FC1 + BN1d(eval) + ReLU + FC2 (weights BN/bias-folded, fc2 padded to 128)."""
    h = jnp.dot(x_ref[...], wa_ref[...], preferred_element_type=jnp.float32) + ba_ref[...]
    h = jnp.maximum(h, 0.0)
    y = jnp.dot(h, wb_ref[...], preferred_element_type=jnp.float32) + bb_ref[...]
    o_ref[...] = y.astype(o_ref.dtype)


# ------------------------------ pallas wrappers ----------------------------- #
def conv_tower(patches, pp):
    n = patches.shape[0]
    return pl.pallas_call(
        _conv_tower_kernel,
        out_shape=jax.ShapeDtypeStruct((n, 64, SQ), jnp.float32),
        grid=(n,),
        in_specs=[
            pl.BlockSpec((1, 4, NTAP, S1), lambda i: (i, 0, 0, 0)),   # phase-split conv1 patches
            pl.BlockSpec((32, NTAP), lambda i: (0, 0)),               # folded conv1 weights
            pl.BlockSpec((32, 1), lambda i: (0, 0)),                  # conv1 shift
            pl.BlockSpec((NTAP, 64, 32), lambda i: (0, 0, 0)),        # folded conv2 tap weights
            pl.BlockSpec((64, 1), lambda i: (0, 0)),                  # conv2 shift
            pl.BlockSpec((NTAP, S1, WIDE), lambda i: (0, 0, 0)),      # pad+shift gather (0/1)
            pl.BlockSpec((4, WIDE, SQ), lambda i: (0, 0, 0)),         # pool2 phase gather (0/1)
        ],
        out_specs=pl.BlockSpec((1, 64, SQ), lambda i: (i, 0, 0)),
        compiler_params=pltpu.CompilerParams(dimension_semantics=("parallel",)),
    )(patches, pp["w1m"], pp["s1"], pp["w2t"], pp["s2"], pp["gat1"], pp["gat2"])


def fc_head(xflat, pp):
    n = xflat.shape[0]
    return pl.pallas_call(
        _fc_kernel,
        out_shape=jax.ShapeDtypeStruct((n, 128), jnp.float32),
        grid=(1,),
        in_specs=[
            pl.BlockSpec((n, 64 * SQ), lambda i: (0, 0)),
            pl.BlockSpec((64 * SQ, 128), lambda i: (0, 0)),
            pl.BlockSpec((1, 128), lambda i: (0, 0)),
            pl.BlockSpec((128, 128), lambda i: (0, 0)),
            pl.BlockSpec((1, 128), lambda i: (0, 0)),
        ],
        out_specs=pl.BlockSpec((n, 128), lambda i: (0, 0)),
        compiler_params=pltpu.CompilerParams(dimension_semantics=("arbitrary",)),
    )(xflat, pp["wf1t"], pp["s3"], pp["wf2p"], pp["b4"])


# ------------------------------- glue / prep -------------------------------- #
def _extract_conv1_patches(x):
    """NCHW (N,1,28,28) -> (N, 4, NTAP, 196): pool-phase-split 3x3 patches (lane-dense)."""
    n = x.shape[0]
    img = x.reshape(n, H1, W1)
    xpad = jnp.pad(img, ((0, 0), (1, 1), (1, 1)))
    taps = jnp.stack([xpad[:, dh:dh + H1, dw:dw + W1]
                      for dh in range(3) for dw in range(3)], axis=1)     # (N, 9, 28, 28)
    taps = taps.reshape(n, NTAP, HP1, 2, WP1, 2)
    return taps.transpose(0, 3, 5, 1, 2, 4).reshape(n, 4, NTAP, S1)       # phase = 2a + b


def prepare_params(p):
    """One-time parameter prep: fold BN(eval)+bias into weights, build gather constants."""
    f32 = jnp.float32

    sc1 = p["g1"] / jnp.sqrt(p["v1"] + EPS)
    sh1 = p["be1"] + sc1 * (p["b1"] - p["m1"])
    w1m = (p["w1"].reshape(32, NTAP) * sc1[:, None]).astype(f32)

    sc2 = p["g2"] / jnp.sqrt(p["v2"] + EPS)
    sh2 = p["be2"] + sc2 * (p["b2"] - p["m2"])
    w2t = ((p["w2"] * sc2[:, None, None, None])
           .transpose(2, 3, 0, 1).reshape(NTAP, 64, 32)).astype(f32)      # tap-major (dh, dw)

    sc3 = p["g3"] / jnp.sqrt(p["v3"] + EPS)
    sh3 = p["be3"] + sc3 * (p["bf1"] - p["m3"])
    wf1t = ((p["wf1"] * sc3[:, None]).T).astype(f32)                      # (3136, 128) pre-transposed

    wf2p = jnp.zeros((128, 128), f32).at[:, :47].set(p["wf2"].T)          # pad fc2 out to 128 lanes
    b4 = jnp.zeros((1, 128), f32).at[0, :47].set(p["bf2"])

    # 0/1 gather constants (exact selections, applied on the MXU inside the kernel)
    gat1 = np.zeros((NTAP, S1, WIDE), np.float32)
    for dh in range(3):
        for dw in range(3):
            t = 3 * dh + dw
            for ho in range(16):
                for wo in range(16):
                    hs, ws = ho + dh - 1, wo + dw - 1
                    if 0 <= hs < HP1 and 0 <= ws < WP1:
                        gat1[t, HP1 * hs + ws, 16 * ho + wo] = 1.0
    gat2 = np.zeros((4, WIDE, SQ), np.float32)
    for i, off in enumerate((0, 1, 16, 17)):
        for hq in range(HP2):
            for wq in range(WP2):
                gat2[i, 32 * hq + 2 * wq + off, WP2 * hq + wq] = 1.0

    return dict(
        w1m=w1m, s1=sh1.reshape(32, 1).astype(f32),
        w2t=w2t, s2=sh2.reshape(64, 1).astype(f32),
        gat1=jnp.asarray(gat1), gat2=jnp.asarray(gat2),
        wf1t=wf1t, s3=sh3.reshape(1, 128).astype(f32),
        wf2p=wf2p, b4=b4,
    )


def forward(x, pp):
    n = x.shape[0]
    patches = _extract_conv1_patches(x)           # tiny (56 KB) glue producer for Cin=1 conv1
    # TODO(synk): Dropout(0.3) layers are identity in eval mode; training-mode RNG mask not implemented.
    pooled = conv_tower(patches, pp)              # (N, 64, 49)
    flat = pooled.reshape(n, 64 * SQ)             # free row-major reshape == PyTorch .view flatten
    logits = fc_head(flat, pp)                    # (N, 128) (fc2 lane-padded)
    return logits[:, :47]


# ------------------------ pure-JAX reference (check) ------------------------ #
def reference_forward(x, p):
    def bn_fold(g, be, m, v):
        sc = g / jnp.sqrt(v + EPS)
        return sc, be - m * sc

    def conv(x, w, b):
        y = jax.lax.conv_general_dilated(
            x, w, window_strides=(1, 1), padding="SAME",
            dimension_numbers=("NCHW", "OIHW", "NCHW"))
        return y + b[None, :, None, None]

    def bn(x, g, be, m, v):
        sc, sh = bn_fold(g, be, m, v)
        return x * sc[None, :, None, None] + sh[None, :, None, None]

    def pool(x):
        n, c, h, w = x.shape
        return x.reshape(n, c, h // 2, 2, w // 2, 2).max(axis=(3, 5))

    x = pool(jax.nn.relu(bn(conv(x, p["w1"], p["b1"]), p["g1"], p["be1"], p["m1"], p["v1"])))
    x = pool(jax.nn.relu(bn(conv(x, p["w2"], p["b2"]), p["g2"], p["be2"], p["m2"], p["v2"])))
    x = x.reshape(x.shape[0], -1)
    sc3, sh3 = bn_fold(p["g3"], p["be3"], p["m3"], p["v3"])
    x = jax.nn.relu((x @ p["wf1"].T + p["bf1"]) * sc3 + sh3)
    return x @ p["wf2"].T + p["bf2"]


# --------------------------------- params ----------------------------------- #
def init_params(key):
    ks = jax.random.split(key, 24)
    f32 = jnp.float32
    p = {}
    p["w1"] = 0.1 * jax.random.normal(ks[0], (32, 1, 3, 3), f32)
    p["b1"] = 0.05 * jax.random.normal(ks[1], (32,), f32)
    p["g1"] = 1.0 + 0.1 * jax.random.normal(ks[2], (32,), f32)
    p["be1"] = 0.05 * jax.random.normal(ks[3], (32,), f32)
    p["m1"] = 0.05 * jax.random.normal(ks[4], (32,), f32)
    p["v1"] = jax.random.uniform(ks[5], (32,), f32, 0.5, 1.5)

    p["w2"] = 0.1 * jax.random.normal(ks[6], (64, 32, 3, 3), f32)
    p["b2"] = 0.05 * jax.random.normal(ks[7], (64,), f32)
    p["g2"] = 1.0 + 0.1 * jax.random.normal(ks[8], (64,), f32)
    p["be2"] = 0.05 * jax.random.normal(ks[9], (64,), f32)
    p["m2"] = 0.05 * jax.random.normal(ks[10], (64,), f32)
    p["v2"] = jax.random.uniform(ks[11], (64,), f32, 0.5, 1.5)

    p["wf1"] = 0.02 * jax.random.normal(ks[12], (128, 64 * 7 * 7), f32)
    p["bf1"] = 0.05 * jax.random.normal(ks[13], (128,), f32)
    p["g3"] = 1.0 + 0.1 * jax.random.normal(ks[14], (128,), f32)
    p["be3"] = 0.05 * jax.random.normal(ks[15], (128,), f32)
    p["m3"] = 0.05 * jax.random.normal(ks[16], (128,), f32)
    p["v3"] = jax.random.uniform(ks[17], (128,), f32, 0.5, 1.5)

    p["wf2"] = 0.05 * jax.random.normal(ks[18], (47, 128), f32)
    p["bf2"] = 0.05 * jax.random.normal(ks[19], (47,), f32)
    return p


if __name__ == "__main__":
    key = jax.random.PRNGKey(0)
    kx, kp = jax.random.split(key)
    params = init_params(kp)
    pp = prepare_params(params)   # one-time prep: BN/bias folding, transposes, gather constants
    # EMNIST-style input: batch=2, 1 channel, 28x28 (required by the 64*7*7 fc input).
    x = jax.random.normal(kx, (2, 1, 28, 28), jnp.float32)

    out = jax.block_until_ready(jax.jit(forward)(x, pp))
    ref = jax.block_until_ready(reference_forward(x, params))

    assert out.shape == (2, 47), out.shape
    err = float(jnp.max(jnp.abs(out - ref)))
    assert jnp.allclose(out, ref, rtol=2e-4, atol=2e-4), err
    print("KERNEL_OK")
</pallas_src>

<mosaic_0001>
module attributes {stable_mosaic.version = 11 : i64} {
  func.func @_conv_tower_kernel(%arg0: i32, %arg1: memref<1x4x9x196xf32, #tpu.memory_space<vmem>>, %arg2: memref<32x9xf32, #tpu.memory_space<vmem>>, %arg3: memref<32x1xf32, #tpu.memory_space<vmem>>, %arg4: memref<9x64x32xf32, #tpu.memory_space<vmem>>, %arg5: memref<64x1xf32, #tpu.memory_space<vmem>>, %arg6: memref<9x196x256xf32, #tpu.memory_space<vmem>>, %arg7: memref<4x256x49xf32, #tpu.memory_space<vmem>>, %arg8: memref<1x64x49xf32, #tpu.memory_space<vmem>>) attributes {dimension_semantics = [#tpu.dimension_semantics<parallel>], iteration_bounds = array<i64: 2>, scalar_prefetch = 0 : i64, scratch_operands = 0 : i64, tpu.core_type = #tpu.core_type<tc>, window_params = [{transform_indices = @transform_0, window_bounds = array<i64: 1, 4, 9, 196>}, {pipeline_mode = #tpu.pipeline_mode<synchronous>, transform_indices = @transform_1, window_bounds = array<i64: 32, 9>}, {pipeline_mode = #tpu.pipeline_mode<synchronous>, transform_indices = @transform_2, window_bounds = array<i64: 32, 1>}, {pipeline_mode = #tpu.pipeline_mode<synchronous>, transform_indices = @transform_3, window_bounds = array<i64: 9, 64, 32>}, {pipeline_mode = #tpu.pipeline_mode<synchronous>, transform_indices = @transform_4, window_bounds = array<i64: 64, 1>}, {pipeline_mode = #tpu.pipeline_mode<synchronous>, transform_indices = @transform_5, window_bounds = array<i64: 9, 196, 256>}, {pipeline_mode = #tpu.pipeline_mode<synchronous>, transform_indices = @transform_6, window_bounds = array<i64: 4, 256, 49>}, {transform_indices = @transform_7, window_bounds = array<i64: 1, 64, 49>}]} {
    %c0 = arith.constant 0 : index
    %c0_0 = arith.constant 0 : index
    %0 = vector.load %arg2[%c0, %c0_0] : memref<32x9xf32, #tpu.memory_space<vmem>>, vector<32x9xf32>
    %c0_1 = arith.constant 0 : index
    %c0_2 = arith.constant 0 : index
    %c0_3 = arith.constant 0 : index
    %c0_4 = arith.constant 0 : index
    %1 = vector.load %arg1[%c0_1, %c0_2, %c0_3, %c0_4] : memref<1x4x9x196xf32, #tpu.memory_space<vmem>>, vector<1x1x9x196xf32>
    %2 = vector.shape_cast %1 : vector<1x1x9x196xf32> to vector<9x196xf32>
    %cst = arith.constant dense<0.000000e+00> : vector<32x196xf32>
    %3 = tpu.matmul %0, %2, %cst {dimension_numbers = #tpu.dot_dimension_numbers<[1], [0], [0], [1], [0, 0, 1, 1], [], []>} : vector<32x9xf32>, vector<9x196xf32>, vector<32x196xf32> -> vector<32x196xf32>
    %c0_5 = arith.constant 0 : index
    %c1 = arith.constant 1 : index
    %c0_6 = arith.constant 0 : index
    %c0_7 = arith.constant 0 : index
    %4 = vector.load %arg1[%c0_5, %c1, %c0_6, %c0_7] : memref<1x4x9x196xf32, #tpu.memory_space<vmem>>, vector<1x1x9x196xf32>
    %5 = vector.shape_cast %4 : vector<1x1x9x196xf32> to vector<9x196xf32>
    %cst_8 = arith.constant dense<0.000000e+00> : vector<32x196xf32>
    %6 = tpu.matmul %0, %5, %cst_8 {dimension_numbers = #tpu.dot_dimension_numbers<[1], [0], [0], [1], [0, 0, 1, 1], [], []>} : vector<32x9xf32>, vector<9x196xf32>, vector<32x196xf32> -> vector<32x196xf32>
    %7 = arith.maximumf %3, %6 : vector<32x196xf32>
    %c0_9 = arith.constant 0 : index
    %c2 = arith.constant 2 : index
    %c0_10 = arith.constant 0 : index
    %c0_11 = arith.constant 0 : index
    %8 = vector.load %arg1[%c0_9, %c2, %c0_10, %c0_11] : memref<1x4x9x196xf32, #tpu.memory_space<vmem>>, vector<1x1x9x196xf32>
    %9 = vector.shape_cast %8 : vector<1x1x9x196xf32> to vector<9x196xf32>
    %cst_12 = arith.constant dense<0.000000e+00> : vector<32x196xf32>
    %10 = tpu.matmul %0, %9, %cst_12 {dimension_numbers = #tpu.dot_dimension_numbers<[1], [0], [0], [1], [0, 0, 1, 1], [], []>} : vector<32x9xf32>, vector<9x196xf32>, vector<32x196xf32> -> vector<32x196xf32>
    %11 = arith.maximumf %7, %10 : vector<32x196xf32>
    %c0_13 = arith.constant 0 : index
    %c3 = arith.constant 3 : index
    %c0_14 = arith.constant 0 : index
    %c0_15 = arith.constant 0 : index
    %12 = vector.load %arg1[%c0_13, %c3, %c0_14, %c0_15] : memref<1x4x9x196xf32, #tpu.memory_space<vmem>>, vector<1x1x9x196xf32>
    %13 = vector.shape_cast %12 : vector<1x1x9x196xf32> to vector<9x196xf32>
    %cst_16 = arith.constant dense<0.000000e+00> : vector<32x196xf32>
    %14 = tpu.matmul %0, %13, %cst_16 {dimension_numbers = #tpu.dot_dimension_numbers<[1], [0], [0], [1], [0, 0, 1, 1], [], []>} : vector<32x9xf32>, vector<9x196xf32>, vector<32x196xf32> -> vector<32x196xf32>
    %15 = arith.maximumf %11, %14 : vector<32x196xf32>
    %c0_17 = arith.constant 0 : index
    %c0_18 = arith.constant 0 : index
    %16 = vector.load %arg3[%c0_17, %c0_18] : memref<32x1xf32, #tpu.memory_space<vmem>>, vector<32x1xf32>
    %17 = vector.broadcast %16 : vector<32x1xf32> to vector<32x196xf32>
    %18 = arith.addf %15, %17 : vector<32x196xf32>
    %cst_19 = arith.constant 0.000000e+00 : f32
    %19 = vector.broadcast %cst_19 : f32 to vector<32x196xf32>
    %20 = arith.maximumf %18, %19 : vector<32x196xf32>
    %c0_20 = arith.constant 0 : index
    %c0_21 = arith.constant 0 : index
    %c0_22 = arith.constant 0 : index
    %21 = vector.load %arg6[%c0_20, %c0_21, %c0_22] : memref<9x196x256xf32, #tpu.memory_space<vmem>>, vector<1x196x256xf32>
    %22 = vector.shape_cast %21 : vector<1x196x256xf32> to vector<196x256xf32>
    %cst_23 = arith.constant dense<0.000000e+00> : vector<32x256xf32>
    %23 = tpu.matmul %20, %22, %cst_23 {dimension_numbers = #tpu.dot_dimension_numbers<[1], [0], [0], [1], [0, 0, 1, 1], [], []>} : vector<32x196xf32>, vector<196x256xf32>, vector<32x256xf32> -> vector<32x256xf32>
    %c0_24 = arith.constant 0 : index
    %c0_25 = arith.constant 0 : index
    %c0_26 = arith.constant 0 : index
    %24 = vector.load %arg4[%c0_24, %c0_25, %c0_26] : memref<9x64x32xf32, #tpu.memory_space<vmem>>, vector<1x64x32xf32>
    %25 = vector.shape_cast %24 : vector<1x64x32xf32> to vector<64x32xf32>
    %cst_27 = arith.constant dense<0.000000e+00> : vector<64x256xf32>
    %26 = tpu.matmul %25, %23, %cst_27 {dimension_numbers = #tpu.dot_dimension_numbers<[1], [0], [0], [1], [0, 0, 1, 1], [], []>} : vector<64x32xf32>, vector<32x256xf32>, vector<64x256xf32> -> vector<64x256xf32>
    %c1_28 = arith.constant 1 : index
    %c0_29 = arith.constant 0 : index
    %c0_30 = arith.constant 0 : index
    %27 = vector.load %arg6[%c1_28, %c0_29, %c0_30] : memref<9x196x256xf32, #tpu.memory_space<vmem>>, vector<1x196x256xf32>
    %28 = vector.shape_cast %27 : vector<1x196x256xf32> to vector<196x256xf32>
    %cst_31 = arith.constant dense<0.000000e+00> : vector<32x256xf32>
    %29 = tpu.matmul %20, %28, %cst_31 {dimension_numbers = #tpu.dot_dimension_numbers<[1], [0], [0], [1], [0, 0, 1, 1], [], []>} : vector<32x196xf32>, vector<196x256xf32>, vector<32x256xf32> -> vector<32x256xf32>
    %c1_32 = arith.constant 1 : index
    %c0_33 = arith.constant 0 : index
    %c0_34 = arith.constant 0 : index
    %30 = vector.load %arg4[%c1_32, %c0_33, %c0_34] : memref<9x64x32xf32, #tpu.memory_space<vmem>>, vector<1x64x32xf32>
    %31 = vector.shape_cast %30 : vector<1x64x32xf32> to vector<64x32xf32>
    %cst_35 = arith.constant dense<0.000000e+00> : vector<64x256xf32>
    %32 = tpu.matmul %31, %29, %cst_35 {dimension_numbers = #tpu.dot_dimension_numbers<[1], [0], [0], [1], [0, 0, 1, 1], [], []>} : vector<64x32xf32>, vector<32x256xf32>, vector<64x256xf32> -> vector<64x256xf32>
    %33 = arith.addf %26, %32 : vector<64x256xf32>
    %c2_36 = arith.constant 2 : index
    %c0_37 = arith.constant 0 : index
    %c0_38 = arith.constant 0 : index
    %34 = vector.load %arg6[%c2_36, %c0_37, %c0_38] : memref<9x196x256xf32, #tpu.memory_space<vmem>>, vector<1x196x256xf32>
    %35 = vector.shape_cast %34 : vector<1x196x256xf32> to vector<196x256xf32>
    %cst_39 = arith.constant dense<0.000000e+00> : vector<32x256xf32>
    %36 = tpu.matmul %20, %35, %cst_39 {dimension_numbers = #tpu.dot_dimension_numbers<[1], [0], [0], [1], [0, 0, 1, 1], [], []>} : vector<32x196xf32>, vector<196x256xf32>, vector<32x256xf32> -> vector<32x256xf32>
    %c2_40 = arith.constant 2 : index
    %c0_41 = arith.constant 0 : index
    %c0_42 = arith.constant 0 : index
    %37 = vector.load %arg4[%c2_40, %c0_41, %c0_42] : memref<9x64x32xf32, #tpu.memory_space<vmem>>, vector<1x64x32xf32>
    %38 = vector.shape_cast %37 : vector<1x64x32xf32> to vector<64x32xf32>
    %cst_43 = arith.constant dense<0.000000e+00> : vector<64x256xf32>
    %39 = tpu.matmul %38, %36, %cst_43 {dimension_numbers = #tpu.dot_dimension_numbers<[1], [0], [0], [1], [0, 0, 1, 1], [], []>} : vector<64x32xf32>, vector<32x256xf32>, vector<64x256xf32> -> vector<64x256xf32>
    %40 = arith.addf %33, %39 : vector<64x256xf32>
    %c3_44 = arith.constant 3 : index
    %c0_45 = arith.constant 0 : index
    %c0_46 = arith.constant 0 : index
    %41 = vector.load %arg6[%c3_44, %c0_45, %c0_46] : memref<9x196x256xf32, #tpu.memory_space<vmem>>, vector<1x196x256xf32>
    %42 = vector.shape_cast %41 : vector<1x196x256xf32> to vector<196x256xf32>
    %cst_47 = arith.constant dense<0.000000e+00> : vector<32x256xf32>
    %43 = tpu.matmul %20, %42, %cst_47 {dimension_numbers = #tpu.dot_dimension_numbers<[1], [0], [0], [1], [0, 0, 1, 1], [], []>} : vector<32x196xf32>, vector<196x256xf32>, vector<32x256xf32> -> vector<32x256xf32>
    %c3_48 = arith.constant 3 : index
    %c0_49 = arith.constant 0 : index
    %c0_50 = arith.constant 0 : index
    %44 = vector.load %arg4[%c3_48, %c0_49, %c0_50] : memref<9x64x32xf32, #tpu.memory_space<vmem>>, vector<1x64x32xf32>
    %45 = vector.shape_cast %44 : vector<1x64x32xf32> to vector<64x32xf32>
    %cst_51 = arith.constant dense<0.000000e+00> : vector<64x256xf32>
    %46 = tpu.matmul %45, %43, %cst_51 {dimension_numbers = #tpu.dot_dimension_numbers<[1], [0], [0], [1], [0, 0, 1, 1], [], []>} : vector<64x32xf32>, vector<32x256xf32>, vector<64x256xf32> -> vector<64x256xf32>
    %47 = arith.addf %40, %46 : vector<64x256xf32>
    %c4 = arith.constant 4 : index
    %c0_52 = arith.constant 0 : index
    %c0_53 = arith.constant 0 : index
    %48 = vector.load %arg6[%c4, %c0_52, %c0_53] : memref<9x196x256xf32, #tpu.memory_space<vmem>>, vector<1x196x256xf32>
    %49 = vector.shape_cast %48 : vector<1x196x256xf32> to vector<196x256xf32>
    %cst_54 = arith.constant dense<0.000000e+00> : vector<32x256xf32>
    %50 = tpu.matmul %20, %49, %cst_54 {dimension_numbers = #tpu.dot_dimension_numbers<[1], [0], [0], [1], [0, 0, 1, 1], [], []>} : vector<32x196xf32>, vector<196x256xf32>, vector<32x256xf32> -> vector<32x256xf32>
    %c4_55 = arith.constant 4 : index
    %c0_56 = arith.constant 0 : index
    %c0_57 = arith.constant 0 : index
    %51 = vector.load %arg4[%c4_55, %c0_56, %c0_57] : memref<9x64x32xf32, #tpu.memory_space<vmem>>, vector<1x64x32xf32>
    %52 = vector.shape_cast %51 : vector<1x64x32xf32> to vector<64x32xf32>
    %cst_58 = arith.constant dense<0.000000e+00> : vector<64x256xf32>
    %53 = tpu.matmul %52, %50, %cst_58 {dimension_numbers = #tpu.dot_dimension_numbers<[1], [0], [0], [1], [0, 0, 1, 1], [], []>} : vector<64x32xf32>, vector<32x256xf32>, vector<64x256xf32> -> vector<64x256xf32>
    %54 = arith.addf %47, %53 : vector<64x256xf32>
    %c5 = arith.constant 5 : index
    %c0_59 = arith.constant 0 : index
    %c0_60 = arith.constant 0 : index
    %55 = vector.load %arg6[%c5, %c0_59, %c0_60] : memref<9x196x256xf32, #tpu.memory_space<vmem>>, vector<1x196x256xf32>
    %56 = vector.shape_cast %55 : vector<1x196x256xf32> to vector<196x256xf32>
    %cst_61 = arith.constant dense<0.000000e+00> : vector<32x256xf32>
    %57 = tpu.matmul %20, %56, %cst_61 {dimension_numbers = #tpu.dot_dimension_numbers<[1], [0], [0], [1], [0, 0, 1, 1], [], []>} : vector<32x196xf32>, vector<196x256xf32>, vector<32x256xf32> -> vector<32x256xf32>
    %c5_62 = arith.constant 5 : index
    %c0_63 = arith.constant 0 : index
    %c0_64 = arith.constant 0 : index
    %58 = vector.load %arg4[%c5_62, %c0_63, %c0_64] : memref<9x64x32xf32, #tpu.memory_space<vmem>>, vector<1x64x32xf32>
    %59 = vector.shape_cast %58 : vector<1x64x32xf32> to vector<64x32xf32>
    %cst_65 = arith.constant dense<0.000000e+00> : vector<64x256xf32>
    %60 = tpu.matmul %59, %57, %cst_65 {dimension_numbers = #tpu.dot_dimension_numbers<[1], [0], [0], [1], [0, 0, 1, 1], [], []>} : vector<64x32xf32>, vector<32x256xf32>, vector<64x256xf32> -> vector<64x256xf32>
    %61 = arith.addf %54, %60 : vector<64x256xf32>
    %c6 = arith.constant 6 : index
    %c0_66 = arith.constant 0 : index
    %c0_67 = arith.constant 0 : index
    %62 = vector.load %arg6[%c6, %c0_66, %c0_67] : memref<9x196x256xf32, #tpu.memory_space<vmem>>, vector<1x196x256xf32>
    %63 = vector.shape_cast %62 : vector<1x196x256xf32> to vector<196x256xf32>
    %cst_68 = arith.constant dense<0.000000e+00> : vector<32x256xf32>
    %64 = tpu.matmul %20, %63, %cst_68 {dimension_numbers = #tpu.dot_dimension_numbers<[1], [0], [0], [1], [0, 0, 1, 1], [], []>} : vector<32x196xf32>, vector<196x256xf32>, vector<32x256xf32> -> vector<32x256xf32>
    %c6_69 = arith.constant 6 : index
    %c0_70 = arith.constant 0 : index
    %c0_71 = arith.constant 0 : index
    %65 = vector.load %arg4[%c6_69, %c0_70, %c0_71] : memref<9x64x32xf32, #tpu.memory_space<vmem>>, vector<1x64x32xf32>
    %66 = vector.shape_cast %65 : vector<1x64x32xf32> to vector<64x32xf32>
    %cst_72 = arith.constant dense<0.000000e+00> : vector<64x256xf32>
    %67 = tpu.matmul %66, %64, %cst_72 {dimension_numbers = #tpu.dot_dimension_numbers<[1], [0], [0], [1], [0, 0, 1, 1], [], []>} : vector<64x32xf32>, vector<32x256xf32>, vector<64x256xf32> -> vector<64x256xf32>
    %68 = arith.addf %61, %67 : vector<64x256xf32>
    %c7 = arith.constant 7 : index
    %c0_73 = arith.constant 0 : index
    %c0_74 = arith.constant 0 : index
    %69 = vector.load %arg6[%c7, %c0_73, %c0_74] : memref<9x196x256xf32, #tpu.memory_space<vmem>>, vector<1x196x256xf32>
    %70 = vector.shape_cast %69 : vector<1x196x256xf32> to vector<196x256xf32>
    %cst_75 = arith.constant dense<0.000000e+00> : vector<32x256xf32>
    %71 = tpu.matmul %20, %70, %cst_75 {dimension_numbers = #tpu.dot_dimension_numbers<[1], [0], [0], [1], [0, 0, 1, 1], [], []>} : vector<32x196xf32>, vector<196x256xf32>, vector<32x256xf32> -> vector<32x256xf32>
    %c7_76 = arith.constant 7 : index
    %c0_77 = arith.constant 0 : index
    %c0_78 = arith.constant 0 : index
    %72 = vector.load %arg4[%c7_76, %c0_77, %c0_78] : memref<9x64x32xf32, #tpu.memory_space<vmem>>, vector<1x64x32xf32>
    %73 = vector.shape_cast %72 : vector<1x64x32xf32> to vector<64x32xf32>
    %cst_79 = arith.constant dense<0.000000e+00> : vector<64x256xf32>
    %74 = tpu.matmul %73, %71, %cst_79 {dimension_numbers = #tpu.dot_dimension_numbers<[1], [0], [0], [1], [0, 0, 1, 1], [], []>} : vector<64x32xf32>, vector<32x256xf32>, vector<64x256xf32> -> vector<64x256xf32>
    %75 = arith.addf %68, %74 : vector<64x256xf32>
    %c8 = arith.constant 8 : index
    %c0_80 = arith.constant 0 : index
    %c0_81 = arith.constant 0 : index
    %76 = vector.load %arg6[%c8, %c0_80, %c0_81] : memref<9x196x256xf32, #tpu.memory_space<vmem>>, vector<1x196x256xf32>
    %77 = vector.shape_cast %76 : vector<1x196x256xf32> to vector<196x256xf32>
    %cst_82 = arith.constant dense<0.000000e+00> : vector<32x256xf32>
    %78 = tpu.matmul %20, %77, %cst_82 {dimension_numbers = #tpu.dot_dimension_numbers<[1], [0], [0], [1], [0, 0, 1, 1], [], []>} : vector<32x196xf32>, vector<196x256xf32>, vector<32x256xf32> -> vector<32x256xf32>
    %c8_83 = arith.constant 8 : index
    %c0_84 = arith.constant 0 : index
    %c0_85 = arith.constant 0 : index
    %79 = vector.load %arg4[%c8_83, %c0_84, %c0_85] : memref<9x64x32xf32, #tpu.memory_space<vmem>>, vector<1x64x32xf32>
    %80 = vector.shape_cast %79 : vector<1x64x32xf32> to vector<64x32xf32>
    %cst_86 = arith.constant dense<0.000000e+00> : vector<64x256xf32>
    %81 = tpu.matmul %80, %78, %cst_86 {dimension_numbers = #tpu.dot_dimension_numbers<[1], [0], [0], [1], [0, 0, 1, 1], [], []>} : vector<64x32xf32>, vector<32x256xf32>, vector<64x256xf32> -> vector<64x256xf32>
    %82 = arith.addf %75, %81 : vector<64x256xf32>
    %c0_87 = arith.constant 0 : index
    %c0_88 = arith.constant 0 : index
    %83 = vector.load %arg5[%c0_87, %c0_88] : memref<64x1xf32, #tpu.memory_space<vmem>>, vector<64x1xf32>
    %84 = vector.broadcast %83 : vector<64x1xf32> to vector<64x256xf32>
    %85 = arith.addf %82, %84 : vector<64x256xf32>
    %cst_89 = arith.constant 0.000000e+00 : f32
    %86 = vector.broadcast %cst_89 : f32 to vector<64x256xf32>
    %87 = arith.maximumf %85, %86 : vector<64x256xf32>
    %c0_90 = arith.constant 0 : index
    %c0_91 = arith.constant 0 : index
    %c0_92 = arith.constant 0 : index
    %88 = vector.load %arg7[%c0_90, %c0_91, %c0_92] : memref<4x256x49xf32, #tpu.memory_space<vmem>>, vector<1x256x49xf32>
    %89 = vector.shape_cast %88 : vector<1x256x49xf32> to vector<256x49xf32>
    %cst_93 = arith.constant dense<0.000000e+00> : vector<64x49xf32>
    %90 = tpu.matmul %87, %89, %cst_93 {dimension_numbers = #tpu.dot_dimension_numbers<[1], [0], [0], [1], [0, 0, 1, 1], [], []>} : vector<64x256xf32>, vector<256x49xf32>, vector<64x49xf32> -> vector<64x49xf32>
    %c1_94 = arith.constant 1 : index
    %c0_95 = arith.constant 0 : index
    %c0_96 = arith.constant 0 : index
    %91 = vector.load %arg7[%c1_94, %c0_95, %c0_96] : memref<4x256x49xf32, #tpu.memory_space<vmem>>, vector<1x256x49xf32>
    %92 = vector.shape_cast %91 : vector<1x256x49xf32> to vector<256x49xf32>
    %cst_97 = arith.constant dense<0.000000e+00> : vector<64x49xf32>
    %93 = tpu.matmul %87, %92, %cst_97 {dimension_numbers = #tpu.dot_dimension_numbers<[1], [0], [0], [1], [0, 0, 1, 1], [], []>} : vector<64x256xf32>, vector<256x49xf32>, vector<64x49xf32> -> vector<64x49xf32>
    %94 = arith.maximumf %90, %93 : vector<64x49xf32>
    %c2_98 = arith.constant 2 : index
    %c0_99 = arith.constant 0 : index
    %c0_100 = arith.constant 0 : index
    %95 = vector.load %arg7[%c2_98, %c0_99, %c0_100] : memref<4x256x49xf32, #tpu.memory_space<vmem>>, vector<1x256x49xf32>
    %96 = vector.shape_cast %95 : vector<1x256x49xf32> to vector<256x49xf32>
    %cst_101 = arith.constant dense<0.000000e+00> : vector<64x49xf32>
    %97 = tpu.matmul %87, %96, %cst_101 {dimension_numbers = #tpu.dot_dimension_numbers<[1], [0], [0], [1], [0, 0, 1, 1], [], []>} : vector<64x256xf32>, vector<256x49xf32>, vector<64x49xf32> -> vector<64x49xf32>
    %98 = arith.maximumf %94, %97 : vector<64x49xf32>
    %c3_102 = arith.constant 3 : index
    %c0_103 = arith.constant 0 : index
    %c0_104 = arith.constant 0 : index
    %99 = vector.load %arg7[%c3_102, %c0_103, %c0_104] : memref<4x256x49xf32, #tpu.memory_space<vmem>>, vector<1x256x49xf32>
    %100 = vector.shape_cast %99 : vector<1x256x49xf32> to vector<256x49xf32>
    %cst_105 = arith.constant dense<0.000000e+00> : vector<64x49xf32>
    %101 = tpu.matmul %87, %100, %cst_105 {dimension_numbers = #tpu.dot_dimension_numbers<[1], [0], [0], [1], [0, 0, 1, 1], [], []>} : vector<64x256xf32>, vector<256x49xf32>, vector<64x49xf32> -> vector<64x49xf32>
    %102 = arith.maximumf %98, %101 : vector<64x49xf32>
    %103 = vector.shape_cast %102 : vector<64x49xf32> to vector<1x64x49xf32>
    %c0_106 = arith.constant 0 : index
    %c0_107 = arith.constant 0 : index
    %c0_108 = arith.constant 0 : index
    %104 = vector.load %arg8[%c0_106, %c0_107, %c0_108] : memref<1x64x49xf32, #tpu.memory_space<vmem>>, vector<1x64x49xf32>
    tpu.vector_store %arg8[%c0_106, %c0_107, %c0_108], %103 {strides = array<i32>} : memref<1x64x49xf32, #tpu.memory_space<vmem>>, vector<1x64x49xf32>,
    return
  }
  func.func @transform_0(%arg0: i32) -> (i32, i32, i32, i32) {
    %c0_i32 = arith.constant 0 : i32
    %c0_i32_0 = arith.constant 0 : i32
    %c0_i32_1 = arith.constant 0 : i32
    %c0_i32_2 = arith.constant 0 : i32
    return %arg0, %c0_i32, %c0_i32_0, %c0_i32_1 : i32, i32, i32, i32
  }
  func.func @transform_1(%arg0: i32) -> (i32, i32) {
    %c0_i32 = arith.constant 0 : i32
    %c0_i32_0 = arith.constant 0 : i32
    %c0_i32_1 = arith.constant 0 : i32
    return %c0_i32, %c0_i32_0 : i32, i32
  }
  func.func @transform_2(%arg0: i32) -> (i32, i32) {
    %c0_i32 = arith.constant 0 : i32
    %c0_i32_0 = arith.constant 0 : i32
    %c0_i32_1 = arith.constant 0 : i32
    return %c0_i32, %c0_i32_0 : i32, i32
  }
  func.func @transform_3(%arg0: i32) -> (i32, i32, i32) {
    %c0_i32 = arith.constant 0 : i32
    %c0_i32_0 = arith.constant 0 : i32
    %c0_i32_1 = arith.constant 0 : i32
    %c0_i32_2 = arith.constant 0 : i32
    return %c0_i32, %c0_i32_0, %c0_i32_1 : i32, i32, i32
  }
  func.func @transform_4(%arg0: i32) -> (i32, i32) {
    %c0_i32 = arith.constant 0 : i32
    %c0_i32_0 = arith.constant 0 : i32
    %c0_i32_1 = arith.constant 0 : i32
    return %c0_i32, %c0_i32_0 : i32, i32
  }
  func.func @transform_5(%arg0: i32) -> (i32, i32, i32) {
    %c0_i32 = arith.constant 0 : i32
    %c0_i32_0 = arith.constant 0 : i32
    %c0_i32_1 = arith.constant 0 : i32
    %c0_i32_2 = arith.constant 0 : i32
    return %c0_i32, %c0_i32_0, %c0_i32_1 : i32, i32, i32
  }
  func.func @transform_6(%arg0: i32) -> (i32, i32, i32) {
    %c0_i32 = arith.constant 0 : i32
    %c0_i32_0 = arith.constant 0 : i32
    %c0_i32_1 = arith.constant 0 : i32
    %c0_i32_2 = arith.constant 0 : i32
    return %c0_i32, %c0_i32_0, %c0_i32_1 : i32, i32, i32
  }
  func.func @transform_7(%arg0: i32) -> (i32, i32, i32) {
    %c0_i32 = arith.constant 0 : i32
    %c0_i32_0 = arith.constant 0 : i32
    %c0_i32_1 = arith.constant 0 : i32
    return %arg0, %c0_i32, %c0_i32_0 : i32, i32, i32
  }
}

module attributes {stable_mosaic.version = 11 : i64} {
  func.func @_fc_kernel(%arg0: i32, %arg1: memref<2x3136xf32, #tpu.memory_space<vmem>>, %arg2: memref<3136x128xf32, #tpu.memory_space<vmem>>, %arg3: memref<1x128xf32, #tpu.memory_space<vmem>>, %arg4: memref<128x128xf32, #tpu.memory_space<vmem>>, %arg5: memref<1x128xf32, #tpu.memory_space<vmem>>, %arg6: memref<2x128xf32, #tpu.memory_space<vmem>>) attributes {dimension_semantics = [#tpu.dimension_semantics<arbitrary>], iteration_bounds = array<i64: 1>, scalar_prefetch = 0 : i64, scratch_operands = 0 : i64, tpu.core_type = #tpu.core_type<tc>, window_params = [{pipeline_mode = #tpu.pipeline_mode<synchronous>, transform_indices = @transform_0, window_bounds = array<i64: 2, 3136>}, {pipeline_mode = #tpu.pipeline_mode<synchronous>, transform_indices = @transform_1, window_bounds = array<i64: 3136, 128>}, {pipeline_mode = #tpu.pipeline_mode<synchronous>, transform_indices = @transform_2, window_bounds = array<i64: 1, 128>}, {pipeline_mode = #tpu.pipeline_mode<synchronous>, transform_indices = @transform_3, window_bounds = array<i64: 128, 128>}, {pipeline_mode = #tpu.pipeline_mode<synchronous>, transform_indices = @transform_4, window_bounds = array<i64: 1, 128>}, {pipeline_mode = #tpu.pipeline_mode<synchronous>, transform_indices = @transform_5, window_bounds = array<i64: 2, 128>}]} {
    %c0 = arith.constant 0 : index
    %c0_0 = arith.constant 0 : index
    %0 = vector.load %arg1[%c0, %c0_0] : memref<2x3136xf32, #tpu.memory_space<vmem>>, vector<2x3136xf32>
    %c0_1 = arith.constant 0 : index
    %c0_2 = arith.constant 0 : index
    %1 = vector.load %arg2[%c0_1, %c0_2] : memref<3136x128xf32, #tpu.memory_space<vmem>>, vector<3136x128xf32>
    %cst = arith.constant dense<0.000000e+00> : vector<2x128xf32>
    %2 = tpu.matmul %0, %1, %cst {dimension_numbers = #tpu.dot_dimension_numbers<[1], [0], [0], [1], [0, 0, 1, 1], [], []>} : vector<2x3136xf32>, vector<3136x128xf32>, vector<2x128xf32> -> vector<2x128xf32>
    %c0_3 = arith.constant 0 : index
    %c0_4 = arith.constant 0 : index
    %3 = vector.load %arg3[%c0_3, %c0_4] : memref<1x128xf32, #tpu.memory_space<vmem>>, vector<1x128xf32>
    %4 = vector.broadcast %3 : vector<1x128xf32> to vector<2x128xf32>
    %5 = arith.addf %2, %4 : vector<2x128xf32>
    %cst_5 = arith.constant 0.000000e+00 : f32
    %6 = vector.broadcast %cst_5 : f32 to vector<2x128xf32>
    %7 = arith.maximumf %5, %6 : vector<2x128xf32>
    %c0_6 = arith.constant 0 : index
    %c0_7 = arith.constant 0 : index
    %8 = vector.load %arg4[%c0_6, %c0_7] : memref<128x128xf32, #tpu.memory_space<vmem>>, vector<128x128xf32>
    %cst_8 = arith.constant dense<0.000000e+00> : vector<2x128xf32>
    %9 = tpu.matmul %7, %8, %cst_8 {dimension_numbers = #tpu.dot_dimension_numbers<[1], [0], [0], [1], [0, 0, 1, 1], [], []>} : vector<2x128xf32>, vector<128x128xf32>, vector<2x128xf32> -> vector<2x128xf32>
    %c0_9 = arith.constant 0 : index
    %c0_10 = arith.constant 0 : index
    %10 = vector.load %arg5[%c0_9, %c0_10] : memref<1x128xf32, #tpu.memory_space<vmem>>, vector<1x128xf32>
    %11 = vector.broadcast %10 : vector<1x128xf32> to vector<2x128xf32>
    %12 = arith.addf %9, %11 : vector<2x128xf32>
    %c0_11 = arith.constant 0 : index
    %c0_12 = arith.constant 0 : index
    %13 = vector.load %arg6[%c0_11, %c0_12] : memref<2x128xf32, #tpu.memory_space<vmem>>, vector<2x128xf32>
    tpu.vector_store %arg6[%c0_11, %c0_12], %12 {strides = array<i32>} : memref<2x128xf32, #tpu.memory_space<vmem>>, vector<2x128xf32>,
    return
  }
  func.func @transform_0(%arg0: i32) -> (i32, i32) {
    %c0_i32 = arith.constant 0 : i32
    %c0_i32_0 = arith.constant 0 : i32
    %c0_i32_1 = arith.constant 0 : i32
    return %c0_i32, %c0_i32_0 : i32, i32
  }
  func.func @transform_1(%arg0: i32) -> (i32, i32) {
    %c0_i32 = arith.constant 0 : i32
    %c0_i32_0 = arith.constant 0 : i32
    %c0_i32_1 = arith.constant 0 : i32
    return %c0_i32, %c0_i32_0 : i32, i32
  }
  func.func @transform_2(%arg0: i32) -> (i32, i32) {
    %c0_i32 = arith.constant 0 : i32
    %c0_i32_0 = arith.constant 0 : i32
    %c0_i32_1 = arith.constant 0 : i32
    return %c0_i32, %c0_i32_0 : i32, i32
  }
  func.func @transform_3(%arg0: i32) -> (i32, i32) {
    %c0_i32 = arith.constant 0 : i32
    %c0_i32_0 = arith.constant 0 : i32
    %c0_i32_1 = arith.constant 0 : i32
    return %c0_i32, %c0_i32_0 : i32, i32
  }
  func.func @transform_4(%arg0: i32) -> (i32, i32) {
    %c0_i32 = arith.constant 0 : i32
    %c0_i32_0 = arith.constant 0 : i32
    %c0_i32_1 = arith.constant 0 : i32
    return %c0_i32, %c0_i32_0 : i32, i32
  }
  func.func @transform_5(%arg0: i32) -> (i32, i32) {
    %c0_i32 = arith.constant 0 : i32
    %c0_i32_0 = arith.constant 0 : i32
    %c0_i32_1 = arith.constant 0 : i32
    return %c0_i32, %c0_i32_0 : i32, i32
  }
}

</mosaic_0001>

<bundles_post_ra>
// kernel: forward.3
= control target key start
LH: loop header
LB: loop body
LE: loop exit
PB: predicated region body
PF: predicated region fallthrough
CT: control target
= control target key end

     0   :  { %v2548_v43 = vmov 1983009808   ;;  %v438_v45 = vlaneseq  ;;  %s3922_s0 = inlined_call_operand.vmem [shape: f32[2,3136], index: 0, kind: input, shape index: {}]   ;;  %s3923_s1 = inlined_call_operand.vmem [shape: f32[3136,128], index: 1, kind: input, shape index: {}]   ;;  %s3924_s2 = inlined_call_operand.vmem [shape: f32[1,128], index: 2, kind: input, shape index: {}]   ;;  %s3925_s3 = inlined_call_operand.vmem [shape: f32[128,128], index: 3, kind: input, shape index: {}]   ;;  %s3926_s4 = inlined_call_operand.vmem [shape: f32[1,128], index: 4, kind: input, shape index: {}]   ;;  %s3927_s5 = inlined_call_operand.hbm [shape: f32[2,128], index: 5, kind: output, shape index: {}]  }
   0x1   :  { %v44_v0 = vld [vmem:[%s3923_s1 + $0x80] sm:$0xff]  ;;  %v45_v1 = vld [vmem:[%s3923_s1 + $0x88] sm:$0xff]  ;;  %v46_v11 = vld [vmem:[%s3923_s1 + $0x90] sm:$0xff]  ;;  %v436_v44 = vunpack.c.l.s4 %v2548_v43 }
   0x2   :  { %v28_v2 = vld [vmem:[%s3923_s1] sm:$0xff]  ;;  %v2093_v3 = vpack.c.bf16 %v45_v1, %v44_v0  ;;  %v29_v4 = vld [vmem:[%s3923_s1 + $0x8] sm:$0xff]  ;;  %v47_v13 = vld [vmem:[%s3923_s1 + $0x98] sm:$0xff]  ;;  %v439_v60 = vshrl.u32 %v438_v45, 7 }
   0x3   :  { %v76_v5 = vld [vmem:[%s3923_s1 + $0x180] sm:$0xff]  ;;  %v77_v6 = vld [vmem:[%s3923_s1 + $0x188] sm:$0xff]  ;;  %v2095_v7 = vpack.c.bf16 %v29_v4, %v28_v2  ;;  %v30_v14 = vld [vmem:[%s3923_s1 + $0x10] sm:$0xff]  ;;  %v2097_v16 = vpack.c.bf16 %v47_v13, %v46_v11  ;;  %v437_v59 = vunpack.c.0.s8 %v436_v44 }
   0x4   :  { %v2125_v8 = vpack.c.bf16 %v77_v6, %v76_v5  ;;  %v60_v9 = vld [vmem:[%s3923_s1 + $0x100] sm:$0xff]  ;;  %v61_v10 = vld [vmem:[%s3923_s1 + $0x108] sm:$0xff]  ;;  %2094 = vmatprep.subr.bf16.mxu0 %v2093_v3  ;;  %v31_v15 = vld [vmem:[%s3923_s1 + $0x18] sm:$0xff] }
   0x5   :  { %v2127_v12 = vpack.c.bf16 %v61_v10, %v60_v9  ;;  %2096 = vmatpush3.bf16.msra.mxu0 %v2095_v7  ;;  %v2099_v17 = vpack.c.bf16 %v31_v15, %v30_v14  ;;  %v78_v18 = vld [vmem:[%s3923_s1 + $0x190] sm:$0xff]  ;;  %v79_v19 = vld [vmem:[%s3923_s1 + $0x198] sm:$0xff]  ;;  %v48_v23 = vld [vmem:[%s3923_s1 + $0xa0] sm:$0xff]  ;;  %v2727_v10 = vsub.s32 %v437_v59, %v439_v60 }
   0x6   :  { %2126 = vmatprep.subr.bf16.mxu1 %v2125_v8  ;;  %v62_v20 = vld [vmem:[%s3923_s1 + $0x110] sm:$0xff]  ;;  %v2129_v21 = vpack.c.bf16 %v79_v19, %v78_v18  ;;  %v63_v22 = vld [vmem:[%s3923_s1 + $0x118] sm:$0xff]  ;;  %v49_v24 = vld [vmem:[%s3923_s1 + $0xa8] sm:$0xff]  ;;  %2098 = vmatprep.subr.bf16.mxu0 %v2097_v16 }
   0x7   :  { %2128 = vmatpush3.bf16.msra.mxu1 %v2127_v12  ;;  %v2131_v25 = vpack.c.bf16 %v63_v22, %v62_v20  ;;  %v2101_v26 = vpack.c.bf16 %v49_v24, %v48_v23  ;;  %v32_v27 = vld [vmem:[%s3923_s1 + $0x20] sm:$0xff]  ;;  %v33_v28 = vld [vmem:[%s3923_s1 + $0x28] sm:$0xff]  ;;  %v50_v35 = vld [vmem:[%s3923_s1 + $0xb0] sm:$0xff] }
   0x8   :  { %v80_v29 = vld [vmem:[%s3923_s1 + $0x1a0] sm:$0xff]  ;;  %2130 = vmatprep.subr.bf16.mxu1 %v2129_v21  ;;  %v81_v30 = vld [vmem:[%s3923_s1 + $0x1a8] sm:$0xff]  ;;  %v2103_v33 = vpack.c.bf16 %v33_v28, %v32_v27  ;;  %v51_v36 = vld [vmem:[%s3923_s1 + $0xb8] sm:$0xff] }
   0x9   :  { %v64_v31 = vld [vmem:[%s3923_s1 + $0x120] sm:$0xff]  ;;  %v65_v32 = vld [vmem:[%s3923_s1 + $0x128] sm:$0xff]  ;;  %2100 = vmatpush3.bf16.msra.mxu0 %v2099_v17  ;;  %v2133_v34 = vpack.c.bf16 %v81_v30, %v80_v29  ;;  %v34_v37 = vld [vmem:[%s3923_s1 + $0x30] sm:$0xff]  ;;  %v2105_v39 = vpack.c.bf16 %v51_v36, %v50_v35 }
   0xa   :  { %2102 = vmatprep.subr.bf16.mxu0 %v2101_v26  ;;  %v2135_v38 = vpack.c.bf16 %v65_v32, %v64_v31  ;;  %v35_v40 = vld [vmem:[%s3923_s1 + $0x38] sm:$0xff]  ;;  %v82_v41 = vld [vmem:[%s3923_s1 + $0x1b0] sm:$0xff]  ;;  %v52_v49 = vld [vmem:[%s3923_s1 + $0xc0] sm:$0xff] }
   0xb   :  { %2132 = vmatpush3.bf16.msra.mxu1 %v2131_v25  ;;  %v83_v42 = vld [vmem:[%s3923_s1 + $0x1b8] sm:$0xff]  ;;  %v66_v47 = vld [vmem:[%s3923_s1 + $0x130] sm:$0xff]  ;;  %v53_v50 = vld [vmem:[%s3923_s1 + $0xc8] sm:$0xff]  ;;  %v2107_v51 = vpack.c.bf16 %v35_v40, %v34_v37 }
   0xc   :  { %2134 = vmatprep.subr.bf16.mxu1 %v2133_v34  ;;  %v2137_v46 = vpack.c.bf16 %v83_v42, %v82_v41  ;;  %v67_v48 = vld [vmem:[%s3923_s1 + $0x138] sm:$0xff]  ;;  %v84_v52 = vld [vmem:[%s3923_s1 + $0x1c0] sm:$0xff]  ;;  %v85_v53 = vld [vmem:[%s3923_s1 + $0x1c8] sm:$0xff]  ;;  %v2109_v55 = vpack.c.bf16 %v53_v50, %v52_v49 }
   0xd   :  { %2104 = vmatpush3.bf16.msra.mxu0 %v2103_v33  ;;  %v2139_v54 = vpack.c.bf16 %v67_v48, %v66_v47  ;;  %v36_v56 = vld [vmem:[%s3923_s1 + $0x40] sm:$0xff]  ;;  %v37_v57 = vld [vmem:[%s3923_s1 + $0x48] sm:$0xff]  ;;  %v2141_v61 = vpack.c.bf16 %v85_v53, %v84_v52  ;;  %v54_v63 = vld [vmem:[%s3923_s1 + $0xd0] sm:$0xff] }
   0xe   :  { %2106 = vmatprep.subr.bf16.mxu0 %v2105_v39  ;;  %v68_v58 = vld [vmem:[%s3923_s1 + $0x140] sm:$0xff]  ;;  %v69_v62 = vld [vmem:[%s3923_s1 + $0x148] sm:$0xff]  ;;  %v55_v0 = vld [vmem:[%s3923_s1 + $0xd8] sm:$0xff]  ;;  %v2111_v3 = vpack.c.bf16 %v37_v57, %v36_v56 }
   0xf   :  { %2136 = vmatpush3.bf16.msra.mxu1 %v2135_v38  ;;  %v86_v1 = vld [vmem:[%s3923_s1 + $0x1d0] sm:$0xff]  ;;  %v87_v2 = vld [vmem:[%s3923_s1 + $0x1d8] sm:$0xff]  ;;  %v2143_v5 = vpack.c.bf16 %v69_v62, %v68_v58  ;;  %v2113_v6 = vpack.c.bf16 %v55_v0, %v54_v63  ;;  %v56_v12 = vld [vmem:[%s3923_s1 + $0xe0] sm:$0xff] }
  0x10   :  { %2138 = vmatprep.subr.bf16.mxu1 %v2137_v46  ;;  %v38_v4 = vld [vmem:[%s3923_s1 + $0x50] sm:$0xff]  ;;  %v39_v7 = vld [vmem:[%s3923_s1 + $0x58] sm:$0xff]  ;;  %v2145_v11 = vpack.c.bf16 %v87_v2, %v86_v1  ;;  %v57_v13 = vld [vmem:[%s3923_s1 + $0xe8] sm:$0xff] }
  0x11   :  { %2108 = vmatpush3.bf16.msra.mxu0 %v2107_v51  ;;  %v70_v8 = vld [vmem:[%s3923_s1 + $0x150] sm:$0xff]  ;;  %v71_v9 = vld [vmem:[%s3923_s1 + $0x158] sm:$0xff]  ;;  %v88_v14 = vld [vmem:[%s3923_s1 + $0x1e0] sm:$0xff]  ;;  %v2115_v16 = vpack.c.bf16 %v39_v7, %v38_v4  ;;  %v2117_v19 = vpack.c.bf16 %v57_v13, %v56_v12 }
  0x12   :  { %2110 = vmatprep.subr.bf16.mxu0 %v2109_v55  ;;  %v89_v15 = vld [vmem:[%s3923_s1 + $0x1e8] sm:$0xff]  ;;  %v2147_v17 = vpack.c.bf16 %v71_v9, %v70_v8  ;;  %v21_v18 = vld [vmem:[%s3922_s0] sm:$0xff]  ;;  %v58_v27 = vld [vmem:[%s3923_s1 + $0xf0] sm:$0xff] }
  0x13   :  { %2140 = vmatpush3.bf16.msra.mxu1 %v2139_v54  ;;  %v40_v20 = vld [vmem:[%s3923_s1 + $0x60] sm:$0xff]  ;;  %v41_v21 = vld [vmem:[%s3923_s1 + $0x68] sm:$0xff]  ;;  %v441_v23 = vrot.slane %v21_v18, %v2727_v10  ;;  %v434_v24 = vcombine.high %v21_v18, %v21_v18  ;;  %v2149_v25 = vpack.c.bf16 %v89_v15, %v88_v14  ;;  %v59_v28 = vld [vmem:[%s3923_s1 + $0xf8] sm:$0xff] }
  0x14   :  { %2142 = vmatprep.subr.bf16.mxu1 %v2141_v61  ;;  %v72_v22 = vld [vmem:[%s3923_s1 + $0x160] sm:$0xff]  ;;  %v73_v26 = vld [vmem:[%s3923_s1 + $0x168] sm:$0xff]  ;;  %v90_v29 = vld [vmem:[%s3923_s1 + $0x1f0] sm:$0xff]  ;;  %v2119_v33 = vpack.c.bf16 %v41_v21, %v40_v20  ;;  %v2121_v35 = vpack.c.bf16 %v59_v28, %v58_v27 }
  0x15   :  { %2112 = vmatpush3.bf16.msra.mxu0 %v2111_v3  ;;  %v91_v30 = vld [vmem:[%s3923_s1 + $0x1f8] sm:$0xff]  ;;  %v449_v31 = vcombine.high %v441_v23, %v441_v23  ;;  %v448_v32 = vrot.slane %v434_v24, %v2727_v10  ;;  %v2151_v34 = vpack.c.bf16 %v73_v26, %v72_v22  ;;  %v42_v36 = vld [vmem:[%s3923_s1 + $0x70] sm:$0xff]  ;;  %v108_v42 = vld [vmem:[%s3923_s1 + $0x280] sm:$0xff] }
  0x16   :  { %2114 = vmatprep.subr.bf16.mxu0 %v2113_v6  ;;  %v43_v37 = vld [vmem:[%s3923_s1 + $0x78] sm:$0xff]  ;;  %v74_v38 = vld [vmem:[%s3923_s1 + $0x170] sm:$0xff]  ;;  %v2153_v40 = vpack.c.bf16 %v91_v30, %v90_v29  ;;  %v109_v43 = vld [vmem:[%s3923_s1 + $0x288] sm:$0xff] }
  0x17   :  { %2144 = vmatpush3.bf16.msra.mxu1 %v2143_v5  ;;  %v450_v39 = vcombine.high %v448_v32, %v448_v32  ;;  %634 = vmatprep.mubr.f32.mxu0 %v449_v31  ;;  %v75_v41 = vld [vmem:[%s3923_s1 + $0x178] sm:$0xff]  ;;  %v140_v44 = vld [vmem:[%s3923_s1 + $0x380] sm:$0xff]  ;;  %v141_v45 = vld [vmem:[%s3923_s1 + $0x388] sm:$0xff]  ;;  %v2123_v46 = vpack.c.bf16 %v43_v37, %v42_v36  ;;  %v2157_v48 = vpack.c.bf16 %v109_v43, %v108_v42 }
  0x18   :  { %2146 = vmatprep.subr.bf16.mxu1 %v2145_v11  ;;  %v2155_v47 = vpack.c.bf16 %v75_v41, %v74_v38  ;;  %v92_v49 = vld [vmem:[%s3923_s1 + $0x200] sm:$0xff]  ;;  %v93_v50 = vld [vmem:[%s3923_s1 + $0x208] sm:$0xff]  ;;  %v2189_v52 = vpack.c.bf16 %v141_v45, %v140_v44  ;;  %v110_v54 = vld [vmem:[%s3923_s1 + $0x290] sm:$0xff] }
  0x19   :  { %2116 = vmatpush3.bf16.msra.mxu0 %v2115_v16  ;;  %704 = vmatprep.mubr.f32.mxu1 %v450_v39  ;;  %v124_v51 = vld [vmem:[%s3923_s1 + $0x300] sm:$0xff]  ;;  %v125_v53 = vld [vmem:[%s3923_s1 + $0x308] sm:$0xff]  ;;  %v111_v55 = vld [vmem:[%s3923_s1 + $0x298] sm:$0xff]  ;;  %v2159_v58 = vpack.c.bf16 %v93_v50, %v92_v49 }
  0x1a   :  { %2118 = vmatprep.subr.bf16.mxu0 %v2117_v19  ;;  %v142_v56 = vld [vmem:[%s3923_s1 + $0x390] sm:$0xff]  ;;  %v143_v57 = vld [vmem:[%s3923_s1 + $0x398] sm:$0xff]  ;;  %v2191_v59 = vpack.c.bf16 %v125_v53, %v124_v51  ;;  %v2161_v60 = vpack.c.bf16 %v111_v55, %v110_v54  ;;  %v112_v2 = vld [vmem:[%s3923_s1 + $0x2a0] sm:$0xff] }
  0x1b   :  { %2148 = vmatpush3.bf16.msra.mxu1 %v2147_v17  ;;  %v94_v61 = vld [vmem:[%s3923_s1 + $0x210] sm:$0xff]  ;;  %v95_v62 = vld [vmem:[%s3923_s1 + $0x218] sm:$0xff]  ;;  %v2193_v0 = vpack.c.bf16 %v143_v57, %v142_v56  ;;  %v113_v3 = vld [vmem:[%s3923_s1 + $0x2a8] sm:$0xff] }
  0x1c   :  { %2150 = vmatprep.subr.bf16.mxu1 %v2149_v25  ;;  %v126_v63 = vld [vmem:[%s3923_s1 + $0x310] sm:$0xff]  ;;  %v127_v1 = vld [vmem:[%s3923_s1 + $0x318] sm:$0xff]  ;;  %v144_v4 = vld [vmem:[%s3923_s1 + $0x3a0] sm:$0xff]  ;;  %v2163_v6 = vpack.c.bf16 %v95_v62, %v94_v61  ;;  %v2165_v8 = vpack.c.bf16 %v113_v3, %v112_v2 }
  0x1d   :  { %2120 = vmatpush3.bf16.msra.mxu0 %v2119_v33  ;;  %v145_v5 = vld [vmem:[%s3923_s1 + $0x3a8] sm:$0xff]  ;;  %v2195_v7 = vpack.c.bf16 %v127_v1, %v126_v63  ;;  %v96_v9 = vld [vmem:[%s3923_s1 + $0x220] sm:$0xff]  ;;  %v114_v15 = vld [vmem:[%s3923_s1 + $0x2b0] sm:$0xff] }
  0x1e   :  { %2122 = vmatprep.subr.bf16.mxu0 %v2121_v35  ;;  %v97_v11 = vld [vmem:[%s3923_s1 + $0x228] sm:$0xff]  ;;  %v128_v12 = vld [vmem:[%s3923_s1 + $0x320] sm:$0xff]  ;;  %v2197_v13 = vpack.c.bf16 %v145_v5, %v144_v4  ;;  %v115_v16 = vld [vmem:[%s3923_s1 + $0x2b8] sm:$0xff] }
  0x1f   :  { %2152 = vmatpush3.bf16.msra.mxu1 %v2151_v34  ;;  %v129_v14 = vld [vmem:[%s3923_s1 + $0x328] sm:$0xff]  ;;  %v146_v17 = vld [vmem:[%s3923_s1 + $0x3b0] sm:$0xff]  ;;  %v147_v18 = vld [vmem:[%s3923_s1 + $0x3b8] sm:$0xff]  ;;  %v2167_v19 = vpack.c.bf16 %v97_v11, %v96_v9  ;;  %v2169_v22 = vpack.c.bf16 %v115_v16, %v114_v15 }
  0x20   :  { %2154 = vmatprep.subr.bf16.mxu1 %v2153_v40  ;;  %v98_v20 = vld [vmem:[%s3923_s1 + $0x230] sm:$0xff]  ;;  %v2199_v21 = vpack.c.bf16 %v129_v14, %v128_v12  ;;  %v131_v25 = vld [vmem:[%s3923_s1 + $0x338] sm:$0xff]  ;;  %v2201_v26 = vpack.c.bf16 %v147_v18, %v146_v17  ;;  %v116_v27 = vld [vmem:[%s3923_s1 + $0x2c0] sm:$0xff] }
  0x21   :  { %2124 = vmatpush3.bf16.msra.mxu0 %v2123_v46  ;;  %v130_v24 = vld [vmem:[%s3923_s1 + $0x330] sm:$0xff]  ;;  %v117_v28 = vld [vmem:[%s3923_s1 + $0x2c8] sm:$0xff]  ;;  %v148_v30 = vld [vmem:[%s3923_s1 + $0x3c0] sm:$0xff] }
  0x22   :  { %2158 = vmatprep.subr.bf16.mxu0 %v2157_v48  ;;  %v22_v29 = vld [vmem:[%s3922_s0 + $0x8] sm:$0xff]  ;;  %v2203_v35 = vpack.c.bf16 %v131_v25, %v130_v24  ;;  %v2173_v36 = vpack.c.bf16 %v117_v28, %v116_v27  ;;  %v100_v37 = vld [vmem:[%s3923_s1 + $0x240] sm:$0xff]  ;;  %v118_v44 = vld [vmem:[%s3923_s1 + $0x2d0] sm:$0xff] }
  0x23   :  { %2156 = vmatpush3.bf16.msra.mxu1 %v2155_v47  ;;  %v149_v31 = vld [vmem:[%s3923_s1 + $0x3c8] sm:$0xff]  ;;  %v451_v33 = vcombine.high %v22_v29, %v22_v29  ;;  %v132_v39 = vld [vmem:[%s3923_s1 + $0x340] sm:$0xff]  ;;  %v119_v45 = vld [vmem:[%s3923_s1 + $0x2d8] sm:$0xff] }
  0x24   :  { %2190 = vmatprep.subr.bf16.mxu1 %v2189_v52  ;;  %635 = vmatmul.mubr.f32.vlgmr.msra.gmra.mrb[0].mxu0 %v441_v23  ;;  %v99_v23 = vld [vmem:[%s3923_s1 + $0x238] sm:$0xff]  ;;  %v101_v38 = vld [vmem:[%s3923_s1 + $0x248] sm:$0xff]  ;;  %v2205_v42 = vpack.c.bf16 %v149_v31, %v148_v30  ;;  %v150_v46 = vld [vmem:[%s3923_s1 + $0x3d0] sm:$0xff]  ;;  %v2177_v51 = vpack.c.bf16 %v119_v45, %v118_v44 }
  0x25   :  { %2160 = vmatpush3.bf16.msra.mxu0 %v2159_v58  ;;  %v2171_v34 = vpack.c.bf16 %v99_v23, %v98_v20  ;;  %v2908_v41 = vrot.slane %v451_v33, %v2727_v10  ;;  %v133_v43 = vld [vmem:[%s3923_s1 + $0x348] sm:$0xff]  ;;  %v151_v47 = vld [vmem:[%s3923_s1 + $0x3d8] sm:$0xff]  ;;  %v2175_v49 = vpack.c.bf16 %v101_v38, %v100_v37  ;;  %v102_v52 = vld [vmem:[%s3923_s1 + $0x250] sm:$0xff] }
  0x26   :  { %705 = vmatmul.mubr.f32.vlgmr.msra.gmra.mrb[0].mxu1 %v448_v32  ;;  %2162 = vmatprep.subr.bf16.mxu0 %v2161_v60  ;;  %v2894_v32 = vrot.slane %v22_v29, %v2727_v10  ;;  %v2207_v50 = vpack.c.bf16 %v133_v43, %v132_v39  ;;  %v103_v53 = vld [vmem:[%s3923_s1 + $0x258] sm:$0xff]  ;;  %v134_v54 = vld [vmem:[%s3923_s1 + $0x350] sm:$0xff]  ;;  %v2209_v55 = vpack.c.bf16 %v151_v47, %v150_v46  ;;  %v120_v57 = vld [vmem:[%s3923_s1 + $0x2e0] sm:$0xff] }
  0x27   :  { %2192 = vmatpush3.bf16.msra.mxu1 %v2191_v59  ;;  %v467_v48 = vcombine.high %v2908_v41, %v2908_v41  ;;  %v135_v56 = vld [vmem:[%s3923_s1 + $0x358] sm:$0xff]  ;;  %v121_v58 = vld [vmem:[%s3923_s1 + $0x2e8] sm:$0xff]  ;;  %v152_v59 = vld [vmem:[%s3923_s1 + $0x3e0] sm:$0xff]  ;;  %v2179_v61 = vpack.c.bf16 %v103_v53, %v102_v52 }
  0x28   :  { %2194 = vmatprep.subr.bf16.mxu1 %v2193_v0  ;;  %v466_v40 = vcombine.high %v2894_v32, %v2894_v32  ;;  %v153_v60 = vld [vmem:[%s3923_s1 + $0x3e8] sm:$0xff]  ;;  %v2211_v62 = vpack.c.bf16 %v135_v56, %v134_v54  ;;  %v2181_v63 = vpack.c.bf16 %v121_v58, %v120_v57  ;;  %v104_v0 = vld [vmem:[%s3923_s1 + $0x260] sm:$0xff]  ;;  %v122_v5 = vld [vmem:[%s3923_s1 + $0x2f0] sm:$0xff] }
  0x29   :  { %2164 = vmatpush3.bf16.msra.mxu0 %v2163_v6  ;;  %844 = vmatprep.mubr.f32.mxu1 %v467_v48  ;;  %v105_v1 = vld [vmem:[%s3923_s1 + $0x268] sm:$0xff]  ;;  %v136_v2 = vld [vmem:[%s3923_s1 + $0x360] sm:$0xff]  ;;  %v2213_v3 = vpack.c.bf16 %v153_v60, %v152_v59  ;;  %v123_v6 = vld [vmem:[%s3923_s1 + $0x2f8] sm:$0xff] }
  0x2a   :  { %2166 = vmatprep.subr.bf16.mxu0 %v2165_v8  ;;  %774 = vmatprep.mubr.f32.mxu0 %v466_v40  ;;  %v137_v4 = vld [vmem:[%s3923_s1 + $0x368] sm:$0xff]  ;;  %v155_v8 = vld [vmem:[%s3923_s1 + $0x3f8] sm:$0xff]  ;;  %v2183_v9 = vpack.c.bf16 %v105_v1, %v104_v0  ;;  %v2185_v12 = vpack.c.bf16 %v123_v6, %v122_v5  ;;  %v138_v15 = vld [vmem:[%s3923_s1 + $0x370] sm:$0xff] }
  0x2b   :  { %2196 = vmatpush3.bf16.msra.mxu1 %v2195_v7  ;;  %v154_v7 = vld [vmem:[%s3923_s1 + $0x3f0] sm:$0xff]  ;;  %v2215_v11 = vpack.c.bf16 %v137_v4, %v136_v2  ;;  %v107_v14 = vld [vmem:[%s3923_s1 + $0x278] sm:$0xff]  ;;  %v172_v18 = vld [vmem:[%s3923_s1 + $0x480] sm:$0xff] }
  0x2c   :  { %2198 = vmatprep.subr.bf16.mxu1 %v2197_v13  ;;  %v106_v13 = vld [vmem:[%s3923_s1 + $0x270] sm:$0xff]  ;;  %v2217_v16 = vpack.c.bf16 %v155_v8, %v154_v7  ;;  %v139_v17 = vld [vmem:[%s3923_s1 + $0x378] sm:$0xff]  ;;  %v204_v20 = vld [vmem:[%s3923_s1 + $0x580] sm:$0xff] }
  0x2d   :  { %2168 = vmatpush3.bf16.msra.mxu0 %v2167_v19  ;;  %v173_v19 = vld [vmem:[%s3923_s1 + $0x488] sm:$0xff]  ;;  %v156_v23 = vld [vmem:[%s3923_s1 + $0x400] sm:$0xff]  ;;  %v2219_v24 = vpack.c.bf16 %v139_v17, %v138_v15  ;;  %v174_v30 = vld [vmem:[%s3923_s1 + $0x490] sm:$0xff] }
  0x2e   :  { %2170 = vmatprep.subr.bf16.mxu0 %v2169_v22  ;;  %v2187_v22 = vpack.c.bf16 %v107_v14, %v106_v13  ;;  %v2221_v25 = vpack.c.bf16 %v173_v19, %v172_v18  ;;  %v188_v27 = vld [vmem:[%s3923_s1 + $0x500] sm:$0xff]  ;;  %v189_v28 = vld [vmem:[%s3923_s1 + $0x508] sm:$0xff]  ;;  %v175_v31 = vld [vmem:[%s3923_s1 + $0x498] sm:$0xff] }
  0x2f   :  { %2200 = vmatpush3.bf16.msra.mxu1 %v2199_v21  ;;  %v205_v21 = vld [vmem:[%s3923_s1 + $0x588] sm:$0xff]  ;;  %v206_v33 = vld [vmem:[%s3923_s1 + $0x590] sm:$0xff]  ;;  %v2225_v38 = vpack.c.bf16 %v175_v31, %v174_v30  ;;  %v159_v40 = vld [vmem:[%s3923_s1 + $0x418] sm:$0xff] }
  0x30   :  { %2202 = vmatprep.subr.bf16.mxu1 %v2201_v26  ;;  %v157_v26 = vld [vmem:[%s3923_s1 + $0x408] sm:$0xff]  ;;  %v2253_v29 = vpack.c.bf16 %v205_v21, %v204_v20  ;;  %v23_v37 = vld [vmem:[%s3922_s0 + $0x10] sm:$0xff]  ;;  %v191_v46 = vld [vmem:[%s3923_s1 + $0x518] sm:$0xff] }
  0x31   :  { %2172 = vmatpush3.bf16.msra.mxu0 %v2171_v34  ;;  %v207_v34 = vld [vmem:[%s3923_s1 + $0x598] sm:$0xff]  ;;  %v158_v39 = vld [vmem:[%s3923_s1 + $0x410] sm:$0xff]  ;;  %v3036_v43 = vrot.slane %v23_v37, %v2727_v10  ;;  %v468_v44 = vcombine.high %v23_v37, %v23_v37  ;;  %v176_v47 = vld [vmem:[%s3923_s1 + $0x4a0] sm:$0xff] }
  0x32   :  { %2174 = vmatprep.subr.bf16.mxu0 %v2173_v36  ;;  %v2255_v36 = vpack.c.bf16 %v189_v28, %v188_v27  ;;  %v2257_v45 = vpack.c.bf16 %v207_v34, %v206_v33  ;;  %v177_v48 = vld [vmem:[%s3923_s1 + $0x4a8] sm:$0xff]  ;;  %v2227_v53 = vpack.c.bf16 %v159_v40, %v158_v39  ;;  %v192_v57 = vld [vmem:[%s3923_s1 + $0x520] sm:$0xff]  ;;  %v178_v60 = vld [vmem:[%s3923_s1 + $0x4b0] sm:$0xff] }
  0x33   :  { %2204 = vmatpush3.bf16.msra.mxu1 %v2203_v35  ;;  %v2223_v35 = vpack.c.bf16 %v157_v26, %v156_v23  ;;  %v3057_v52 = vrot.slane %v468_v44, %v2727_v10  ;;  %v2229_v54 = vpack.c.bf16 %v177_v48, %v176_v47  ;;  %v161_v56 = vld [vmem:[%s3923_s1 + $0x428] sm:$0xff]  ;;  %v163_v4 = vld [vmem:[%s3923_s1 + $0x438] sm:$0xff]  ;;  %v194_v5 = vld [vmem:[%s3923_s1 + $0x530] sm:$0xff] }
  0x34   :  { %2206 = vmatprep.subr.bf16.mxu1 %v2205_v42  ;;  %v190_v42 = vld [vmem:[%s3923_s1 + $0x510] sm:$0xff]  ;;  %v193_v59 = vld [vmem:[%s3923_s1 + $0x528] sm:$0xff]  ;;  %v195_v7 = vld [vmem:[%s3923_s1 + $0x538] sm:$0xff] }
  0x35   :  { %2176 = vmatpush3.bf16.msra.mxu0 %v2175_v49  ;;  %v208_v49 = vld [vmem:[%s3923_s1 + $0x5a0] sm:$0xff]  ;;  %v2263_v1 = vpack.c.bf16 %v193_v59, %v192_v57  ;;  %v2267_v14 = vpack.c.bf16 %v195_v7, %v194_v5  ;;  %v165_v17 = vld [vmem:[%s3923_s1 + $0x448] sm:$0xff]  ;;  %v182_v21 = vld [vmem:[%s3923_s1 + $0x4d0] sm:$0xff] }
  0x36   :  { %2178 = vmatprep.subr.bf16.mxu0 %v2177_v51  ;;  %v483_v51 = vcombine.high %v3036_v43, %v3036_v43  ;;  %v180_v8 = vld [vmem:[%s3923_s1 + $0x4c0] sm:$0xff]  ;;  %v197_v20 = vld [vmem:[%s3923_s1 + $0x548] sm:$0xff]  ;;  %v214_v23 = vld [vmem:[%s3923_s1 + $0x5d0] sm:$0xff] }
  0x37   :  { %2208 = vmatpush3.bf16.msra.mxu1 %v2207_v50  ;;  %v209_v50 = vld [vmem:[%s3923_s1 + $0x5a8] sm:$0xff]  ;;  %v196_v18 = vld [vmem:[%s3923_s1 + $0x540] sm:$0xff]  ;;  %v166_v28 = vld [vmem:[%s3923_s1 + $0x450] sm:$0xff] }
  0x38   :  { %2210 = vmatprep.subr.bf16.mxu1 %v2209_v55  ;;  %v160_v55 = vld [vmem:[%s3923_s1 + $0x420] sm:$0xff]  ;;  %v2261_v58 = vpack.c.bf16 %v209_v50, %v208_v49  ;;  %v2271_v26 = vpack.c.bf16 %v197_v20, %v196_v18  ;;  %v198_v30 = vld [vmem:[%s3923_s1 + $0x550] sm:$0xff]  ;;  %v199_v33 = vld [vmem:[%s3923_s1 + $0x558] sm:$0xff] }
  0x39   :  { %2180 = vmatpush3.bf16.msra.mxu0 %v2179_v61  ;;  %v179_v61 = vld [vmem:[%s3923_s1 + $0x4b8] sm:$0xff]  ;;  %v2231_v0 = vpack.c.bf16 %v161_v56, %v160_v55  ;;  %v184_v34 = vld [vmem:[%s3923_s1 + $0x4e0] sm:$0xff]  ;;  %v217_v37 = vld [vmem:[%s3923_s1 + $0x5e8] sm:$0xff]  ;;  %v2275_v39 = vpack.c.bf16 %v199_v33, %v198_v30 }
  0x3a   :  { %2182 = vmatprep.subr.bf16.mxu0 %v2181_v63  ;;  %v211_v63 = vld [vmem:[%s3923_s1 + $0x5b8] sm:$0xff]  ;;  %v2233_v2 = vpack.c.bf16 %v179_v61, %v178_v60  ;;  %v169_v44 = vld [vmem:[%s3923_s1 + $0x468] sm:$0xff]  ;;  %v186_v48 = vld [vmem:[%s3923_s1 + $0x4f0] sm:$0xff] }
  0x3b   :  { %2212 = vmatpush3.bf16.msra.mxu1 %v2211_v62  ;;  %v210_v62 = vld [vmem:[%s3923_s1 + $0x5b0] sm:$0xff]  ;;  %v201_v47 = vld [vmem:[%s3923_s1 + $0x568] sm:$0xff]  ;;  %v187_v49 = vld [vmem:[%s3923_s1 + $0x4f8] sm:$0xff] }
  0x3c   :  { %2214 = vmatprep.subr.bf16.mxu1 %v2213_v3  ;;  %v162_v3 = vld [vmem:[%s3923_s1 + $0x430] sm:$0xff]  ;;  %v2265_v6 = vpack.c.bf16 %v211_v63, %v210_v62  ;;  %v2249_v55 = vpack.c.bf16 %v187_v49, %v186_v48  ;;  %v171_v57 = vld [vmem:[%s3923_s1 + $0x478] sm:$0xff]  ;;  %v236_v60 = vld [vmem:[%s3923_s1 + $0x680] sm:$0xff] }
  0x3d   :  { %2184 = vmatpush3.bf16.msra.mxu0 %v2183_v9  ;;  %v181_v9 = vld [vmem:[%s3923_s1 + $0x4c8] sm:$0xff]  ;;  %v2235_v13 = vpack.c.bf16 %v163_v4, %v162_v3  ;;  %v218_v50 = vld [vmem:[%s3923_s1 + $0x5f0] sm:$0xff]  ;;  %v203_v59 = vld [vmem:[%s3923_s1 + $0x578] sm:$0xff] }
  0x3e   :  { %2186 = vmatprep.subr.bf16.mxu0 %v2185_v12  ;;  %v213_v12 = vld [vmem:[%s3923_s1 + $0x5c8] sm:$0xff]  ;;  %v2237_v15 = vpack.c.bf16 %v181_v9, %v180_v8  ;;  %v170_v56 = vld [vmem:[%s3923_s1 + $0x470] sm:$0xff]  ;;  %v268_v62 = vld [vmem:[%s3923_s1 + $0x780] sm:$0xff] }
  0x3f   :  { %2216 = vmatpush3.bf16.msra.mxu1 %v2215_v11  ;;  %v212_v11 = vld [vmem:[%s3923_s1 + $0x5c0] sm:$0xff]  ;;  %v237_v61 = vld [vmem:[%s3923_s1 + $0x688] sm:$0xff]  ;;  %v238_v9 = vld [vmem:[%s3923_s1 + $0x690] sm:$0xff] }
  0x40   :  { %2218 = vmatprep.subr.bf16.mxu1 %v2217_v16  ;;  %v164_v16 = vld [vmem:[%s3923_s1 + $0x440] sm:$0xff]  ;;  %v2269_v19 = vpack.c.bf16 %v213_v12, %v212_v11  ;;  %v269_v63 = vld [vmem:[%s3923_s1 + $0x788] sm:$0xff]  ;;  %v2285_v3 = vpack.c.bf16 %v237_v61, %v236_v60  ;;  %v239_v11 = vld [vmem:[%s3923_s1 + $0x698] sm:$0xff] }
  0x41   :  { %2188 = vmatpush3.bf16.msra.mxu0 %v2187_v22  ;;  %v183_v22 = vld [vmem:[%s3923_s1 + $0x4d8] sm:$0xff]  ;;  %v220_v4 = vld [vmem:[%s3923_s1 + $0x600] sm:$0xff]  ;;  %v221_v5 = vld [vmem:[%s3923_s1 + $0x608] sm:$0xff]  ;;  %v2317_v7 = vpack.c.bf16 %v269_v63, %v268_v62  ;;  %v2289_v18 = vpack.c.bf16 %v239_v11, %v238_v9 }
  0x42   :  { %2222 = vmatprep.subr.bf16.mxu0 %v2221_v25  ;;  %v2239_v25 = vpack.c.bf16 %v165_v17, %v164_v16  ;;  %v2241_v27 = vpack.c.bf16 %v183_v22, %v182_v21  ;;  %v253_v8 = vld [vmem:[%s3923_s1 + $0x708] sm:$0xff]  ;;  %v2287_v16 = vpack.c.bf16 %v221_v5, %v220_v4  ;;  %v223_v20 = vld [vmem:[%s3923_s1 + $0x618] sm:$0xff]  ;;  %v254_v21 = vld [vmem:[%s3923_s1 + $0x710] sm:$0xff] }
  0x43   :  { %2220 = vmatpush3.bf16.msra.mxu1 %v2219_v24  ;;  %v215_v24 = vld [vmem:[%s3923_s1 + $0x5d8] sm:$0xff]  ;;  %v258_v48 = vld [vmem:[%s3923_s1 + $0x730] sm:$0xff]  ;;  %v261_v61 = vld [vmem:[%s3923_s1 + $0x748] sm:$0xff] }
  0x44   :  { %2254 = vmatprep.subr.bf16.mxu1 %v2253_v29  ;;  %775 = vmatmul.mubr.f32.vlgmr.msra.gmra.mrb[2].mxu0 %v2894_v32  ;;  %v2259_v32 = vpack.c.bf16 %v191_v46, %v190_v42  ;;  %v167_v29 = vld [vmem:[%s3923_s1 + $0x458] sm:$0xff]  ;;  %v2273_v31 = vpack.c.bf16 %v215_v24, %v214_v23  ;;  %v168_v42 = vld [vmem:[%s3923_s1 + $0x460] sm:$0xff]  ;;  %v246_v62 = vld [vmem:[%s3923_s1 + $0x6d0] sm:$0xff] }
  0x45   :  { %2224 = vmatpush3.bf16.msra.mxu0 %v2223_v35  ;;  %914 = vmatprep.mubr.f32.mxu0 %v483_v51  ;;  %v185_v35 = vld [vmem:[%s3923_s1 + $0x4e8] sm:$0xff]  ;;  %v219_v51 = vld [vmem:[%s3923_s1 + $0x5f8] sm:$0xff]  ;;  %v240_v24 = vld [vmem:[%s3923_s1 + $0x6a0] sm:$0xff] }
  0x46   :  { %845 = vmatmul.mubr.f32.vlgmr.msra.gmra.mrb[2].mxu1 %v2908_v41  ;;  %2226 = vmatprep.subr.bf16.mxu0 %v2225_v38  ;;  %v484_v41 = vcombine.high %v3057_v52, %v3057_v52  ;;  %v2243_v38 = vpack.c.bf16 %v167_v29, %v166_v28  ;;  %v2245_v40 = vpack.c.bf16 %v185_v35, %v184_v34  ;;  %v255_v23 = vld [vmem:[%s3923_s1 + $0x718] sm:$0xff]  ;;  %v273_v28 = vld [vmem:[%s3923_s1 + $0x7a8] sm:$0xff]  ;;  %v256_v35 = vld [vmem:[%s3923_s1 + $0x720] sm:$0xff] }
  0x47   :  { %2256 = vmatpush3.bf16.msra.mxu1 %v2255_v36  ;;  %v216_v36 = vld [vmem:[%s3923_s1 + $0x5e0] sm:$0xff]  ;;  %v225_v34 = vld [vmem:[%s3923_s1 + $0x628] sm:$0xff]  ;;  %v247_v63 = vld [vmem:[%s3923_s1 + $0x6d8] sm:$0xff] }
  0x48   :  { %2258 = vmatprep.subr.bf16.mxu1 %v2257_v45  ;;  %984 = vmatprep.mubr.f32.mxu1 %v484_v41  ;;  %v200_v45 = vld [vmem:[%s3923_s1 + $0x560] sm:$0xff]  ;;  %v2277_v46 = vpack.c.bf16 %v217_v37, %v216_v36  ;;  %v202_v41 = vld [vmem:[%s3923_s1 + $0x570] sm:$0xff]  ;;  %v2305_v4 = vpack.c.bf16 %v247_v63, %v246_v62  ;;  %v263_v9 = vld [vmem:[%s3923_s1 + $0x758] sm:$0xff] }
  0x49   :  { %2228 = vmatpush3.bf16.msra.mxu0 %v2227_v53  ;;  %v2247_v53 = vpack.c.bf16 %v169_v44, %v168_v42  ;;  %v242_v37 = vld [vmem:[%s3923_s1 + $0x6b0] sm:$0xff]  ;;  %v248_v11 = vld [vmem:[%s3923_s1 + $0x6e0] sm:$0xff] }
  0x4a   :  { %2230 = vmatprep.subr.bf16.mxu0 %v2229_v54  ;;  %v2279_v54 = vpack.c.bf16 %v201_v47, %v200_v45  ;;  %v227_v47 = vld [vmem:[%s3923_s1 + $0x638] sm:$0xff]  ;;  %v230_v5 = vld [vmem:[%s3923_s1 + $0x650] sm:$0xff] }
  0x4b   :  { %2260 = vmatpush3.bf16.msra.mxu1 %v2259_v32  ;;  %v24_v32 = vld [vmem:[%s3922_s0 + $0x18] sm:$0xff]  ;;  %v318_v62 = vld [vmem:[%s3923_s1 + $0x910] sm:$0xff] }
  0x4c   :  { %2262 = vmatprep.subr.bf16.mxu1 %v2261_v58  ;;  %v2281_v58 = vpack.c.bf16 %v219_v51, %v218_v50  ;;  %v3228_v12 = vrot.slane %v24_v32, %v2727_v10  ;;  %v259_v50 = vld [vmem:[%s3923_s1 + $0x738] sm:$0xff]  ;;  %v244_v51 = vld [vmem:[%s3923_s1 + $0x6c0] sm:$0xff] }
  0x4d   :  { %2232 = vmatpush3.bf16.msra.mxu0 %v2231_v0  ;;  %v485_v0 = vcombine.high %v24_v32, %v24_v32  ;;  %v276_v32 = vld [vmem:[%s3923_s1 + $0x7c0] sm:$0xff] }
  0x4e   :  { %2234 = vmatprep.subr.bf16.mxu0 %v2233_v2  ;;  %v2283_v2 = vpack.c.bf16 %v203_v59, %v202_v41  ;;  %v228_v41 = vld [vmem:[%s3923_s1 + $0x640] sm:$0xff] }
  0x4f   :  { %2264 = vmatpush3.bf16.msra.mxu1 %v2263_v1  ;;  %v2251_v1 = vpack.c.bf16 %v171_v57, %v170_v56  ;;  %v2331_v56 = vpack.c.bf16 %v259_v50, %v258_v48  ;;  %v260_v59 = vld [vmem:[%s3923_s1 + $0x740] sm:$0xff]  ;;  %v285_v48 = vld [vmem:[%s3923_s1 + $0x808] sm:$0xff] }
  0x50   :  { %2266 = vmatprep.subr.bf16.mxu1 %v2265_v6  ;;  %v252_v6 = vld [vmem:[%s3923_s1 + $0x700] sm:$0xff] }
  0x51   :  { %2236 = vmatpush3.bf16.msra.mxu0 %v2235_v13  ;;  %v270_v13 = vld [vmem:[%s3923_s1 + $0x790] sm:$0xff]  ;;  %v2319_v17 = vpack.c.bf16 %v253_v8, %v252_v6  ;;  %v231_v6 = vld [vmem:[%s3923_s1 + $0x658] sm:$0xff] }
  0x52   :  { %2238 = vmatprep.subr.bf16.mxu0 %v2237_v15  ;;  %v3237_v15 = vrot.slane %v485_v0, %v2727_v10  ;;  %v278_v0 = vld [vmem:[%s3923_s1 + $0x7d0] sm:$0xff] }
  0x53   :  { %2268 = vmatpush3.bf16.msra.mxu1 %v2267_v14  ;;  %v271_v14 = vld [vmem:[%s3923_s1 + $0x798] sm:$0xff] }
  0x54   :  { %2270 = vmatprep.subr.bf16.mxu1 %v2269_v19  ;;  %v222_v19 = vld [vmem:[%s3923_s1 + $0x610] sm:$0xff]  ;;  %v2321_v22 = vpack.c.bf16 %v271_v14, %v270_v13  ;;  %v501_v29 = vcombine.high %v3237_v15, %v3237_v15  ;;  %v249_v13 = vld [vmem:[%s3923_s1 + $0x6e8] sm:$0xff]  ;;  %v280_v14 = vld [vmem:[%s3923_s1 + $0x7e0] sm:$0xff] }
  0x55   :  { %2240 = vmatpush3.bf16.msra.mxu0 %v2239_v25  ;;  %v241_v25 = vld [vmem:[%s3923_s1 + $0x6a8] sm:$0xff]  ;;  %v2291_v30 = vpack.c.bf16 %v223_v20, %v222_v19  ;;  %v2309_v19 = vpack.c.bf16 %v249_v13, %v248_v11  ;;  %v232_v20 = vld [vmem:[%s3923_s1 + $0x660] sm:$0xff] }
  0x56   :  { %2242 = vmatprep.subr.bf16.mxu0 %v2241_v27  ;;  %v272_v27 = vld [vmem:[%s3923_s1 + $0x7a0] sm:$0xff]  ;;  %v2293_v33 = vpack.c.bf16 %v241_v25, %v240_v24  ;;  %v265_v24 = vld [vmem:[%s3923_s1 + $0x768] sm:$0xff]  ;;  %v250_v25 = vld [vmem:[%s3923_s1 + $0x6f0] sm:$0xff] }
  0x57   :  { %2272 = vmatpush3.bf16.msra.mxu1 %v2271_v26  ;;  %v500_v26 = vcombine.high %v3228_v12, %v3228_v12  ;;  %v2325_v36 = vpack.c.bf16 %v273_v28, %v272_v27  ;;  %v282_v27 = vld [vmem:[%s3923_s1 + $0x7f0] sm:$0xff]  ;;  %v283_v28 = vld [vmem:[%s3923_s1 + $0x7f8] sm:$0xff]  ;;  %v289_v11 = vld [vmem:[%s3923_s1 + $0x828] sm:$0xff] }
  0x58   :  { %2274 = vmatprep.subr.bf16.mxu1 %v2273_v31  ;;  %v2323_v31 = vpack.c.bf16 %v255_v23, %v254_v21  ;;  %v233_v21 = vld [vmem:[%s3923_s1 + $0x668] sm:$0xff]  ;;  %v320_v13 = vld [vmem:[%s3923_s1 + $0x920] sm:$0xff] }
  0x59   :  { %2244 = vmatpush3.bf16.msra.mxu0 %v2243_v38  ;;  %v243_v38 = vld [vmem:[%s3923_s1 + $0x6b8] sm:$0xff] }
  0x5a   :  { %2246 = vmatprep.subr.bf16.mxu0 %v2245_v40  ;;  %v275_v40 = vld [vmem:[%s3923_s1 + $0x7b8] sm:$0xff]  ;;  %v2297_v45 = vpack.c.bf16 %v243_v38, %v242_v37  ;;  %v300_v37 = vld [vmem:[%s3923_s1 + $0x880] sm:$0xff]  ;;  %v301_v38 = vld [vmem:[%s3923_s1 + $0x888] sm:$0xff] }
  0x5b   :  { %2276 = vmatpush3.bf16.msra.mxu1 %v2275_v39  ;;  %v274_v39 = vld [vmem:[%s3923_s1 + $0x7b0] sm:$0xff] }
  0x5c   :  { %2278 = vmatprep.subr.bf16.mxu1 %v2277_v46  ;;  %v226_v46 = vld [vmem:[%s3923_s1 + $0x630] sm:$0xff]  ;;  %v2329_v49 = vpack.c.bf16 %v275_v40, %v274_v39  ;;  %v332_v39 = vld [vmem:[%s3923_s1 + $0x980] sm:$0xff]  ;;  %v333_v40 = vld [vmem:[%s3923_s1 + $0x988] sm:$0xff] }
  0x5d   :  { %2248 = vmatpush3.bf16.msra.mxu0 %v2247_v53  ;;  %v245_v53 = vld [vmem:[%s3923_s1 + $0x6c8] sm:$0xff]  ;;  %v2381_v50 = vpack.c.bf16 %v333_v40, %v332_v39 }
  0x5e   :  { %2250 = vmatprep.subr.bf16.mxu0 %v2249_v55  ;;  %v2299_v55 = vpack.c.bf16 %v227_v47, %v226_v46  ;;  %v2301_v57 = vpack.c.bf16 %v245_v53, %v244_v51  ;;  %v2349_v46 = vpack.c.bf16 %v301_v38, %v300_v37  ;;  %v284_v47 = vld [vmem:[%s3923_s1 + $0x800] sm:$0xff]  ;;  %v317_v51 = vld [vmem:[%s3923_s1 + $0x908] sm:$0xff]  ;;  %v302_v53 = vld [vmem:[%s3923_s1 + $0x890] sm:$0xff] }
  0x5f   :  { %2280 = vmatpush3.bf16.msra.mxu1 %v2279_v54  ;;  %v277_v54 = vld [vmem:[%s3923_s1 + $0x7c8] sm:$0xff] }
  0x60   :  { %2282 = vmatprep.subr.bf16.mxu1 %v2281_v58  ;;  %v229_v58 = vld [vmem:[%s3923_s1 + $0x648] sm:$0xff]  ;;  %v2333_v60 = vpack.c.bf16 %v277_v54, %v276_v32  ;;  %v303_v32 = vld [vmem:[%s3923_s1 + $0x898] sm:$0xff] }
  0x61   :  { %2252 = vmatpush3.bf16.msra.mxu0 %v2251_v1  ;;  %v279_v1 = vld [vmem:[%s3923_s1 + $0x7d8] sm:$0xff] }
  0x62   :  { %2286 = vmatprep.subr.bf16.mxu0 %v2285_v3  ;;  %v2335_v3 = vpack.c.bf16 %v261_v61, %v260_v59  ;;  %v2337_v8 = vpack.c.bf16 %v279_v1, %v278_v0  ;;  %v2353_v59 = vpack.c.bf16 %v303_v32, %v302_v53  ;;  %v287_v61 = vld [vmem:[%s3923_s1 + $0x818] sm:$0xff]  ;;  %v304_v1 = vld [vmem:[%s3923_s1 + $0x8a0] sm:$0xff] }
  0x63   :  { %2284 = vmatpush3.bf16.msra.mxu1 %v2283_v2  ;;  %v2303_v2 = vpack.c.bf16 %v229_v58, %v228_v41  ;;  %v2351_v41 = vpack.c.bf16 %v285_v48, %v284_v47  ;;  %v319_v0 = vld [vmem:[%s3923_s1 + $0x918] sm:$0xff] }
  0x64   :  { %2318 = vmatprep.subr.bf16.mxu1 %v2317_v7  ;;  %915 = vmatmul.mubr.f32.vlgmr.msra.gmra.mrb[4].mxu0 %v3036_v43  ;;  %v224_v43 = vld [vmem:[%s3923_s1 + $0x620] sm:$0xff]  ;;  %v262_v7 = vld [vmem:[%s3923_s1 + $0x750] sm:$0xff] }
  0x65   :  { %2288 = vmatpush3.bf16.msra.mxu0 %v2287_v16  ;;  %1054 = vmatprep.mubr.f32.mxu0 %v500_v26  ;;  %v2295_v42 = vpack.c.bf16 %v225_v34, %v224_v43  ;;  %v281_v16 = vld [vmem:[%s3923_s1 + $0x7e8] sm:$0xff]  ;;  %v251_v26 = vld [vmem:[%s3923_s1 + $0x6f8] sm:$0xff]  ;;  %v234_v43 = vld [vmem:[%s3923_s1 + $0x670] sm:$0xff] }
  0x66   :  { %985 = vmatmul.mubr.f32.vlgmr.msra.gmra.mrb[4].mxu1 %v3057_v52  ;;  %2290 = vmatprep.subr.bf16.mxu0 %v2289_v18  ;;  %v257_v52 = vld [vmem:[%s3923_s1 + $0x728] sm:$0xff]  ;;  %v2339_v18 = vpack.c.bf16 %v263_v9, %v262_v7  ;;  %v2341_v23 = vpack.c.bf16 %v281_v16, %v280_v14  ;;  %v235_v34 = vld [vmem:[%s3923_s1 + $0x678] sm:$0xff] }
  0x67   :  { %2320 = vmatpush3.bf16.msra.mxu1 %v2319_v17  ;;  %1124 = vmatprep.mubr.f32.mxu1 %v501_v29  ;;  %v2327_v44 = vpack.c.bf16 %v257_v52, %v256_v35  ;;  %v2307_v17 = vpack.c.bf16 %v231_v6, %v230_v5  ;;  %v2311_v29 = vpack.c.bf16 %v233_v21, %v232_v20  ;;  %v266_v35 = vld [vmem:[%s3923_s1 + $0x770] sm:$0xff]  ;;  %v267_v52 = vld [vmem:[%s3923_s1 + $0x778] sm:$0xff]  ;;  %v337_v5 = vld [vmem:[%s3923_s1 + $0x9a8] sm:$0xff] }
  0x68   :  { %2322 = vmatprep.subr.bf16.mxu1 %v2321_v22  ;;  %v264_v22 = vld [vmem:[%s3923_s1 + $0x760] sm:$0xff] }
  0x69   :  { %2292 = vmatpush3.bf16.msra.mxu0 %v2291_v30  ;;  %v25_v30 = vld [vmem:[%s3922_s0 + $0x20] sm:$0xff] }
  0x6a   :  { %2294 = vmatprep.subr.bf16.mxu0 %v2293_v33  ;;  %v2313_v33 = vpack.c.bf16 %v251_v26, %v250_v25  ;;  %v3435_v54 = vrot.slane %v25_v30, %v2727_v10 }
  0x6b   :  { %2324 = vmatpush3.bf16.msra.mxu1 %v2323_v31  ;;  %v2343_v31 = vpack.c.bf16 %v265_v24, %v264_v22 }
  0x6c   :  { %2326 = vmatprep.subr.bf16.mxu1 %v2325_v36  ;;  %v2345_v36 = vpack.c.bf16 %v283_v28, %v282_v27 }
  0x6d   :  { %2296 = vmatpush3.bf16.msra.mxu0 %v2295_v42  ;;  %v502_v42 = vcombine.high %v25_v30, %v25_v30 }
  0x6e   :  { %2298 = vmatprep.subr.bf16.mxu0 %v2297_v45  ;;  %v2347_v45 = vpack.c.bf16 %v267_v52, %v266_v35 }
  0x6f   :  { %2328 = vmatpush3.bf16.msra.mxu1 %v2327_v44  ;;  %v2315_v44 = vpack.c.bf16 %v235_v34, %v234_v43 }
  0x70   :  { %2330 = vmatprep.subr.bf16.mxu1 %v2329_v49  ;;  %v316_v49 = vld [vmem:[%s3923_s1 + $0x900] sm:$0xff] }
  0x71   :  { %2300 = vmatpush3.bf16.msra.mxu0 %v2299_v55  ;;  %v334_v55 = vld [vmem:[%s3923_s1 + $0x990] sm:$0xff]  ;;  %v2383_v58 = vpack.c.bf16 %v317_v51, %v316_v49 }
  0x72   :  { %2302 = vmatprep.subr.bf16.mxu0 %v2301_v57  ;;  %v3444_v57 = vrot.slane %v502_v42, %v2727_v10 }
  0x73   :  { %2332 = vmatpush3.bf16.msra.mxu1 %v2331_v56  ;;  %v335_v56 = vld [vmem:[%s3923_s1 + $0x998] sm:$0xff] }
  0x74   :  { %2334 = vmatprep.subr.bf16.mxu1 %v2333_v60  ;;  %v286_v60 = vld [vmem:[%s3923_s1 + $0x810] sm:$0xff]  ;;  %v2385_v63 = vpack.c.bf16 %v335_v56, %v334_v55  ;;  %v518_v6 = vcombine.high %v3444_v57, %v3444_v57 }
  0x75   :  { %2304 = vmatpush3.bf16.msra.mxu0 %v2303_v2  ;;  %v305_v2 = vld [vmem:[%s3923_s1 + $0x8a8] sm:$0xff]  ;;  %v2355_v7 = vpack.c.bf16 %v287_v61, %v286_v60 }
  0x76   :  { %2306 = vmatprep.subr.bf16.mxu0 %v2305_v4  ;;  %v336_v4 = vld [vmem:[%s3923_s1 + $0x9a0] sm:$0xff]  ;;  %v2357_v9 = vpack.c.bf16 %v305_v2, %v304_v1 }
  0x77   :  { %2336 = vmatpush3.bf16.msra.mxu1 %v2335_v3  ;;  %v517_v3 = vcombine.high %v3435_v54, %v3435_v54 }
  0x78   :  { %2338 = vmatprep.subr.bf16.mxu1 %v2337_v8  ;;  %v288_v8 = vld [vmem:[%s3923_s1 + $0x820] sm:$0xff] }
  0x79   :  { %2308 = vmatpush3.bf16.msra.mxu0 %v2307_v17 }
  0x7a   :  { %2310 = vmatprep.subr.bf16.mxu0 %v2309_v19 }
  0x7b   :  { %2340 = vmatpush3.bf16.msra.mxu1 %v2339_v18 }
  0x7c   :  { %2342 = vmatprep.subr.bf16.mxu1 %v2341_v23 }
  0x7d   :  { %2312 = vmatpush3.bf16.msra.mxu0 %v2311_v29 }
  0x7e   :  { %2314 = vmatprep.subr.bf16.mxu0 %v2313_v33 }
  0x7f   :  { %2344 = vmatpush3.bf16.msra.mxu1 %v2343_v31 }
  0x80   :  { %2346 = vmatprep.subr.bf16.mxu1 %v2345_v36 }
  0x81   :  { %2316 = vmatpush3.bf16.msra.mxu0 %v2315_v44 }
  0x82   :  { %2350 = vmatprep.subr.bf16.mxu0 %v2349_v46 }
  0x83   :  { %2348 = vmatpush3.bf16.msra.mxu1 %v2347_v45 }
  0x84   :  { %2382 = vmatprep.subr.bf16.mxu1 %v2381_v50  ;;  %1055 = vmatmul.mubr.f32.vlgmr.msra.gmra.mrb[6].mxu0 %v3228_v12  ;;  %v2387_v12 = vpack.c.bf16 %v319_v0, %v318_v62 }
  0x85   :  { %2352 = vmatpush3.bf16.msra.mxu0 %v2351_v41 }
  0x86   :  { %1125 = vmatmul.mubr.f32.vlgmr.msra.gmra.mrb[6].mxu1 %v3237_v15  ;;  %2354 = vmatprep.subr.bf16.mxu0 %v2353_v59 }
  0x87   :  { %2384 = vmatpush3.bf16.msra.mxu1 %v2383_v58 }
  0x88   :  { %10 = vsyncpa [#allocation3], 0  ;;  %2386 = vmatprep.subr.bf16.mxu1 %v2385_v63  ;;  %v2389_v15 = vpack.c.bf16 %v337_v5, %v336_v4  ;;  %v321_v14 = vld [vmem:[%s3923_s1 + $0x928] sm:$0xff]  ;;  %v306_v16 = vld [vmem:[%s3923_s1 + $0x8b0] sm:$0xff]  ;;  %1194 = vmatprep.mubr.f32.mxu0 %v517_v3  ;;  %v2359_v20 = vpack.c.bf16 %v289_v11, %v288_v8  ;;  %vm2550_vm0 = vmmov 0   ;;  %vm567_vm1 = vcmask 523264  }
  0x89   :  { %v307_v17 = vld [vmem:[%s3923_s1 + $0x8b8] sm:$0xff]  ;;  %v338_v18 = vld [vmem:[%s3923_s1 + $0x9b0] sm:$0xff]  ;;  %1264 = vmatprep.mubr.f32.mxu1 %v518_v6  ;;  %2356 = vmatpush3.bf16.msra.mxu0 %v2355_v7  ;;  %v2391_v21 = vpack.c.bf16 %v321_v14, %v320_v13  ;;  %v308_v28 = vld [vmem:[%s3923_s1 + $0x8c0] sm:$0xff]  ;;  %s2552_s21 = smov [#allocation2]  }
  0x8a   :  { %v339_v19 = vld [vmem:[%s3923_s1 + $0x9b8] sm:$0xff]  ;;  %2358 = vmatprep.subr.bf16.mxu0 %v2357_v9  ;;  %v2361_v22 = vpack.c.bf16 %v307_v17, %v306_v16  ;;  %v290_v23 = vld [vmem:[%s3923_s1 + $0x830] sm:$0xff]  ;;  %v309_v29 = vld [vmem:[%s3923_s1 + $0x8c8] sm:$0xff] }
  0x8b   :  { %2388 = vmatpush3.bf16.msra.mxu1 %v2387_v12  ;;  %v291_v24 = vld [vmem:[%s3923_s1 + $0x838] sm:$0xff]  ;;  %v322_v25 = vld [vmem:[%s3923_s1 + $0x930] sm:$0xff]  ;;  %v2393_v26 = vpack.c.bf16 %v339_v19, %v338_v18  ;;  %v340_v30 = vld [vmem:[%s3923_s1 + $0x9c0] sm:$0xff]  ;;  %v2365_v34 = vpack.c.bf16 %v309_v29, %v308_v28 }
  0x8c   :  { %2390 = vmatprep.subr.bf16.mxu1 %v2389_v15  ;;  %v323_v27 = vld [vmem:[%s3923_s1 + $0x938] sm:$0xff]  ;;  %v341_v31 = vld [vmem:[%s3923_s1 + $0x9c8] sm:$0xff]  ;;  %v2363_v33 = vpack.c.bf16 %v291_v24, %v290_v23  ;;  %v292_v35 = vld [vmem:[%s3923_s1 + $0x840] sm:$0xff] }
  0x8d   :  { %2360 = vmatpush3.bf16.msra.mxu0 %v2359_v20  ;;  %v2395_v43 = vpack.c.bf16 %v323_v27, %v322_v25  ;;  %v293_v36 = vld [vmem:[%s3923_s1 + $0x848] sm:$0xff]  ;;  %v324_v52 = vld [vmem:[%s3923_s1 + $0x940] sm:$0xff]  ;;  %v2397_v37 = vpack.c.bf16 %v341_v31, %v340_v30  ;;  %v310_v39 = vld [vmem:[%s3923_s1 + $0x8d0] sm:$0xff] }
  0x8e   :  { %2362 = vmatprep.subr.bf16.mxu0 %v2361_v22  ;;  %v325_v38 = vld [vmem:[%s3923_s1 + $0x948] sm:$0xff]  ;;  %v311_v40 = vld [vmem:[%s3923_s1 + $0x8d8] sm:$0xff]  ;;  %v342_v42 = vld [vmem:[%s3923_s1 + $0x9d0] sm:$0xff]  ;;  %v2367_v45 = vpack.c.bf16 %v293_v36, %v292_v35 }
  0x8f   :  { %2392 = vmatpush3.bf16.msra.mxu1 %v2391_v21  ;;  %v343_v44 = vld [vmem:[%s3923_s1 + $0x9d8] sm:$0xff]  ;;  %v2399_v46 = vpack.c.bf16 %v325_v38, %v324_v52  ;;  %v2369_v47 = vpack.c.bf16 %v311_v40, %v310_v39  ;;  %v294_v48 = vld [vmem:[%s3923_s1 + $0x850] sm:$0xff]  ;;  %v312_v32 = vld [vmem:[%s3923_s1 + $0x8e0] sm:$0xff] }
  0x90   :  { %2394 = vmatprep.subr.bf16.mxu1 %v2393_v26  ;;  %v295_v49 = vld [vmem:[%s3923_s1 + $0x858] sm:$0xff]  ;;  %v326_v50 = vld [vmem:[%s3923_s1 + $0x950] sm:$0xff]  ;;  %v2401_v51 = vpack.c.bf16 %v343_v44, %v342_v42  ;;  %v313_v55 = vld [vmem:[%s3923_s1 + $0x8e8] sm:$0xff] }
  0x91   :  { %2364 = vmatpush3.bf16.msra.mxu0 %v2363_v33  ;;  %v327_v53 = vld [vmem:[%s3923_s1 + $0x958] sm:$0xff]  ;;  %v344_v56 = vld [vmem:[%s3923_s1 + $0x9e0] sm:$0xff]  ;;  %v345_v41 = vld [vmem:[%s3923_s1 + $0x9e8] sm:$0xff]  ;;  %v2371_v58 = vpack.c.bf16 %v295_v49, %v294_v48  ;;  %v2373_v60 = vpack.c.bf16 %v313_v55, %v312_v32 }
  0x92   :  { %2366 = vmatprep.subr.bf16.mxu0 %v2365_v34  ;;  %v2403_v59 = vpack.c.bf16 %v327_v53, %v326_v50  ;;  %v296_v61 = vld [vmem:[%s3923_s1 + $0x860] sm:$0xff]  ;;  %v297_v62 = vld [vmem:[%s3923_s1 + $0x868] sm:$0xff]  ;;  %v2405_v0 = vpack.c.bf16 %v345_v41, %v344_v56  ;;  %v314_v2 = vld [vmem:[%s3923_s1 + $0x8f0] sm:$0xff] }
  0x93   :  { %2396 = vmatpush3.bf16.msra.mxu1 %v2395_v43  ;;  %v328_v63 = vld [vmem:[%s3923_s1 + $0x960] sm:$0xff]  ;;  %v329_v1 = vld [vmem:[%s3923_s1 + $0x968] sm:$0xff]  ;;  %v315_v3 = vld [vmem:[%s3923_s1 + $0x8f8] sm:$0xff]  ;;  %v2375_v6 = vpack.c.bf16 %v297_v62, %v296_v61 }
  0x94   :  { %2398 = vmatprep.subr.bf16.mxu1 %v2397_v37  ;;  %v346_v4 = vld [vmem:[%s3923_s1 + $0x9f0] sm:$0xff]  ;;  %v347_v5 = vld [vmem:[%s3923_s1 + $0x9f8] sm:$0xff]  ;;  %v26_v7 = vld [vmem:[%s3922_s0 + $0x28] sm:$0xff]  ;;  %v2407_v8 = vpack.c.bf16 %v329_v1, %v328_v63  ;;  %v2377_v12 = vpack.c.bf16 %v315_v3, %v314_v2 }
  0x95   :  { %2368 = vmatpush3.bf16.msra.mxu0 %v2367_v45  ;;  %v298_v9 = vld [vmem:[%s3923_s1 + $0x870] sm:$0xff]  ;;  %v299_v11 = vld [vmem:[%s3923_s1 + $0x878] sm:$0xff]  ;;  %v2409_v15 = vpack.c.bf16 %v347_v5, %v346_v4  ;;  %v364_v16 = vld [vmem:[%s3923_s1 + $0xa80] sm:$0xff]  ;;  %v519_v20 = vcombine.high %v26_v7, %v26_v7  ;;  %v3642_v31 = vrot.slane %v26_v7, %v2727_v10 }
  0x96   :  { %2370 = vmatprep.subr.bf16.mxu0 %v2369_v47  ;;  %v330_v13 = vld [vmem:[%s3923_s1 + $0x970] sm:$0xff]  ;;  %v331_v14 = vld [vmem:[%s3923_s1 + $0x978] sm:$0xff]  ;;  %v365_v17 = vld [vmem:[%s3923_s1 + $0xa88] sm:$0xff]  ;;  %v2379_v21 = vpack.c.bf16 %v299_v11, %v298_v9 }
  0x97   :  { %2400 = vmatpush3.bf16.msra.mxu1 %v2399_v46  ;;  %v396_v18 = vld [vmem:[%s3923_s1 + $0xb80] sm:$0xff]  ;;  %v397_v19 = vld [vmem:[%s3923_s1 + $0xb88] sm:$0xff]  ;;  %v2411_v22 = vpack.c.bf16 %v331_v14, %v330_v13  ;;  %v2413_v23 = vpack.c.bf16 %v365_v17, %v364_v16  ;;  %v366_v29 = vld [vmem:[%s3923_s1 + $0xa90] sm:$0xff]  ;;  %v3651_v34 = vrot.slane %v519_v20, %v2727_v10  ;;  %v534_v45 = vcombine.high %v3642_v31, %v3642_v31 }
  0x98   :  { %2402 = vmatprep.subr.bf16.mxu1 %v2401_v51  ;;  %v348_v24 = vld [vmem:[%s3923_s1 + $0xa00] sm:$0xff]  ;;  %v349_v25 = vld [vmem:[%s3923_s1 + $0xa08] sm:$0xff]  ;;  %v2445_v27 = vpack.c.bf16 %v397_v19, %v396_v18  ;;  %v367_v30 = vld [vmem:[%s3923_s1 + $0xa98] sm:$0xff] }
  0x99   :  { %2372 = vmatpush3.bf16.msra.mxu0 %v2371_v58  ;;  %v380_v26 = vld [vmem:[%s3923_s1 + $0xb00] sm:$0xff]  ;;  %v381_v28 = vld [vmem:[%s3923_s1 + $0xb08] sm:$0xff]  ;;  %v398_v33 = vld [vmem:[%s3923_s1 + $0xb90] sm:$0xff]  ;;  %v2415_v35 = vpack.c.bf16 %v349_v25, %v348_v24  ;;  %v2417_v52 = vpack.c.bf16 %v367_v30, %v366_v29  ;;  %v535_v48 = vcombine.high %v3651_v34, %v3651_v34 }
  0x9a   :  { %2374 = vmatprep.subr.bf16.mxu0 %v2373_v60  ;;  %v399_v43 = vld [vmem:[%s3923_s1 + $0xb98] sm:$0xff]  ;;  %v2447_v36 = vpack.c.bf16 %v381_v28, %v380_v26  ;;  %v350_v37 = vld [vmem:[%s3923_s1 + $0xa10] sm:$0xff]  ;;  %v368_v42 = vld [vmem:[%s3923_s1 + $0xaa0] sm:$0xff] }
  0x9b   :  { %2404 = vmatpush3.bf16.msra.mxu1 %v2403_v59  ;;  %v351_v38 = vld [vmem:[%s3923_s1 + $0xa18] sm:$0xff]  ;;  %v382_v39 = vld [vmem:[%s3923_s1 + $0xb10] sm:$0xff]  ;;  %v2449_v10 = vpack.c.bf16 %v399_v43, %v398_v33  ;;  %v369_v44 = vld [vmem:[%s3923_s1 + $0xaa8] sm:$0xff] }
  0x9c   :  { %2406 = vmatprep.subr.bf16.mxu1 %v2405_v0  ;;  %v383_v40 = vld [vmem:[%s3923_s1 + $0xb18] sm:$0xff]  ;;  %v400_v46 = vld [vmem:[%s3923_s1 + $0xba0] sm:$0xff]  ;;  %v401_v47 = vld [vmem:[%s3923_s1 + $0xba8] sm:$0xff]  ;;  %v2419_v49 = vpack.c.bf16 %v351_v38, %v350_v37  ;;  %v2421_v51 = vpack.c.bf16 %v369_v44, %v368_v42 }
  0x9d   :  { %2376 = vmatpush3.bf16.msra.mxu0 %v2375_v6  ;;  %v2451_v50 = vpack.c.bf16 %v383_v40, %v382_v39  ;;  %v353_v53 = vld [vmem:[%s3923_s1 + $0xa28] sm:$0xff]  ;;  %v384_v32 = vld [vmem:[%s3923_s1 + $0xb20] sm:$0xff]  ;;  %v2453_v55 = vpack.c.bf16 %v401_v47, %v400_v46  ;;  %v370_v56 = vld [vmem:[%s3923_s1 + $0xab0] sm:$0xff] }
  0x9e   :  { %2378 = vmatprep.subr.bf16.mxu0 %v2377_v12  ;;  %v371_v41 = vld [vmem:[%s3923_s1 + $0xab8] sm:$0xff]  ;;  %v402_v58 = vld [vmem:[%s3923_s1 + $0xbb0] sm:$0xff]  ;;  %v372_v4 = vld [vmem:[%s3923_s1 + $0xac0] sm:$0xff] }
  0x9f   :  { %2408 = vmatpush3.bf16.msra.mxu1 %v2407_v8  ;;  %v403_v59 = vld [vmem:[%s3923_s1 + $0xbb8] sm:$0xff]  ;;  %v2425_v62 = vpack.c.bf16 %v371_v41, %v370_v56  ;;  %v354_v63 = vld [vmem:[%s3923_s1 + $0xa30] sm:$0xff]  ;;  %v373_v5 = vld [vmem:[%s3923_s1 + $0xac8] sm:$0xff] }
  0xa0   :  { %2410 = vmatprep.subr.bf16.mxu1 %v2409_v15  ;;  %v355_v0 = vld [vmem:[%s3923_s1 + $0xa38] sm:$0xff]  ;;  %v386_v1 = vld [vmem:[%s3923_s1 + $0xb30] sm:$0xff]  ;;  %v2457_v2 = vpack.c.bf16 %v403_v59, %v402_v58  ;;  %v404_v6 = vld [vmem:[%s3923_s1 + $0xbc0] sm:$0xff]  ;;  %v2429_v9 = vpack.c.bf16 %v373_v5, %v372_v4  ;;  %v2549_v59 = vmov 0.0|0.0  }
  0xa1   :  { %2380 = vmatpush3.bf16.msra.mxu0 %v2379_v21  ;;  %v387_v3 = vld [vmem:[%s3923_s1 + $0xb38] sm:$0xff]  ;;  %v405_v7 = vld [vmem:[%s3923_s1 + $0xbc8] sm:$0xff]  ;;  %v2427_v8 = vpack.c.bf16 %v355_v0, %v354_v63  ;;  %v356_v11 = vld [vmem:[%s3923_s1 + $0xa40] sm:$0xff] }
  0xa2   :  { %2414 = vmatprep.subr.bf16.mxu0 %v2413_v23  ;;  %v2459_v12 = vpack.c.bf16 %v387_v3, %v386_v1  ;;  %v357_v13 = vld [vmem:[%s3923_s1 + $0xa48] sm:$0xff]  ;;  %v388_v15 = vld [vmem:[%s3923_s1 + $0xb40] sm:$0xff]  ;;  %v2461_v14 = vpack.c.bf16 %v405_v7, %v404_v6  ;;  %v374_v17 = vld [vmem:[%s3923_s1 + $0xad0] sm:$0xff]  ;;  %v2551_v1 = vmov 0.0  }
  0xa3   :  { %2412 = vmatpush3.bf16.msra.mxu1 %v2411_v22  ;;  %v389_v16 = vld [vmem:[%s3923_s1 + $0xb48] sm:$0xff]  ;;  %v375_v18 = vld [vmem:[%s3923_s1 + $0xad8] sm:$0xff]  ;;  %v406_v19 = vld [vmem:[%s3923_s1 + $0xbd0] sm:$0xff]  ;;  %v2431_v21 = vpack.c.bf16 %v357_v13, %v356_v11 }
  0xa4   :  { %2446 = vmatprep.subr.bf16.mxu1 %v2445_v27  ;;  %1195 = vmatmul.mubr.f32.vlgmr.msra.gmra.mrb[8].mxu0 %v3435_v54  ;;  %v352_v54 = vld [vmem:[%s3923_s1 + $0xa20] sm:$0xff]  ;;  %v407_v20 = vld [vmem:[%s3923_s1 + $0xbd8] sm:$0xff]  ;;  %v2463_v22 = vpack.c.bf16 %v389_v16, %v388_v15  ;;  %v2433_v23 = vpack.c.bf16 %v375_v18, %v374_v17  ;;  %v358_v24 = vld [vmem:[%s3923_s1 + $0xa50] sm:$0xff] }
  0xa5   :  { %2416 = vmatpush3.bf16.msra.mxu0 %v2415_v35  ;;  %1334 = vmatprep.mubr.f32.mxu0 %v534_v45  ;;  %v2423_v60 = vpack.c.bf16 %v353_v53, %v352_v54  ;;  %v359_v25 = vld [vmem:[%s3923_s1 + $0xa58] sm:$0xff]  ;;  %v390_v26 = vld [vmem:[%s3923_s1 + $0xb50] sm:$0xff]  ;;  %v2465_v27 = vpack.c.bf16 %v407_v20, %v406_v19  ;;  %v376_v29 = vld [vmem:[%s3923_s1 + $0xae0] sm:$0xff] }
  0xa6   :  { %1265 = vmatmul.mubr.f32.vlgmr.msra.gmra.mrb[8].mxu1 %v3444_v57  ;;  %2418 = vmatprep.subr.bf16.mxu0 %v2417_v52  ;;  %v385_v57 = vld [vmem:[%s3923_s1 + $0xb28] sm:$0xff]  ;;  %v391_v28 = vld [vmem:[%s3923_s1 + $0xb58] sm:$0xff]  ;;  %v408_v33 = vld [vmem:[%s3923_s1 + $0xbe0] sm:$0xff]  ;;  %v2435_v35 = vpack.c.bf16 %v359_v25, %v358_v24 }
  0xa7   :  { %2448 = vmatpush3.bf16.msra.mxu1 %v2447_v36  ;;  %1404 = vmatprep.mubr.f32.mxu1 %v535_v48  ;;  %v2455_v61 = vpack.c.bf16 %v385_v57, %v384_v32  ;;  %v377_v30 = vld [vmem:[%s3923_s1 + $0xae8] sm:$0xff]  ;;  %v2467_v36 = vpack.c.bf16 %v391_v28, %v390_v26  ;;  %v360_v37 = vld [vmem:[%s3923_s1 + $0xa60] sm:$0xff]  ;;  %v378_v42 = vld [vmem:[%s3923_s1 + $0xaf0] sm:$0xff] }
  0xa8   :  { %2450 = vmatprep.subr.bf16.mxu1 %v2449_v10  ;;  %v409_v43 = vld [vmem:[%s3923_s1 + $0xbe8] sm:$0xff]  ;;  %v2437_v52 = vpack.c.bf16 %v377_v30, %v376_v29  ;;  %v392_v39 = vld [vmem:[%s3923_s1 + $0xb60] sm:$0xff]  ;;  %v379_v44 = vld [vmem:[%s3923_s1 + $0xaf8] sm:$0xff] }
  0xa9   :  { %2420 = vmatpush3.bf16.msra.mxu0 %v2419_v49  ;;  %v361_v38 = vld [vmem:[%s3923_s1 + $0xa68] sm:$0xff]  ;;  %v2469_v10 = vpack.c.bf16 %v409_v43, %v408_v33  ;;  %v410_v45 = vld [vmem:[%s3923_s1 + $0xbf0] sm:$0xff]  ;;  %v411_v46 = vld [vmem:[%s3923_s1 + $0xbf8] sm:$0xff]  ;;  %v2441_v49 = vpack.c.bf16 %v379_v44, %v378_v42 }
  0xaa   :  { %2422 = vmatprep.subr.bf16.mxu0 %v2421_v51  ;;  %v393_v40 = vld [vmem:[%s3923_s1 + $0xb68] sm:$0xff]  ;;  %v2439_v47 = vpack.c.bf16 %v361_v38, %v360_v37  ;;  %v363_v51 = vld [vmem:[%s3923_s1 + $0xa78] sm:$0xff]  ;;  %v2473_v54 = vpack.c.bf16 %v411_v46, %v410_v45  ;;  %v394_v53 = vld [vmem:[%s3923_s1 + $0xb70] sm:$0xff] }
  0xab   :  { %2452 = vmatpush3.bf16.msra.mxu1 %v2451_v50  ;;  %v2471_v48 = vpack.c.bf16 %v393_v40, %v392_v39  ;;  %v362_v50 = vld [vmem:[%s3923_s1 + $0xa70] sm:$0xff]  ;;  %v395_v32 = vld [vmem:[%s3923_s1 + $0xb78] sm:$0xff]  ;;  %v412_v56 = vld [vmem:[%s3923_s1 + $0xc00] sm:$0xff] }
  0xac   :  { %2454 = vmatprep.subr.bf16.mxu1 %v2453_v55  ;;  %v2443_v55 = vpack.c.bf16 %v363_v51, %v362_v50  ;;  %v2475_v57 = vpack.c.bf16 %v395_v32, %v394_v53  ;;  %v413_v41 = vld [vmem:[%s3923_s1 + $0xc08] sm:$0xff]  ;;  %v416_v63 = vld [vmem:[%s3923_s1 + $0xc20] sm:$0xff]  ;;  %v1590_v4 = vld.sshfl [vmem:[%s3922_s0 + $0x30] sm:$0x3 pattern:$0x76325410] }
  0xad   :  { %2424 = vmatpush3.bf16.msra.mxu0 %v2423_v60  ;;  %v2478_v58 = vpack.c.bf16 %v413_v41, %v412_v56  ;;  %v414_v60 = vld [vmem:[%s3923_s1 + $0xc10] sm:$0xff]  ;;  %v417_v0 = vld [vmem:[%s3923_s1 + $0xc28] sm:$0xff]  ;;  %v1589_v6 = vld [vmem:[%s3924_s2] ss:$0 sm:$0xff]  ;;  %s1581_s2 = sshll.u32 %s2552_s21, 4  ;;  %s1582_s2 = int_to_ptr.vmem [resolvable:$true] %s1581_s2 }
  0xae   :  { %2426 = vmatprep.subr.bf16.mxu0 %v2425_v62  ;;  %v1482_v16 = vld [vmem:[%s3925_s3 + $0x8] sm:$0xff]  ;;  %v1483_v17 = vld [vmem:[%s3925_s3 + $0x10] sm:$0xff]  ;;  %v1484_v19 = vld [vmem:[%s3925_s3 + $0x18] sm:$0xff]  ;;  %s2524_s22 = scalar_lea.vmem %s1582_s2, 32  ;;  %p2529_p1 = scmp.lt.s32.totalorder %s1582_s2, %s1582_s2 }
  0xaf   :  { %2456 = vmatpush3.bf16.msra.mxu1 %v2455_v61  ;;  %v415_v61 = vld [vmem:[%s3923_s1 + $0xc18] sm:$0xff]  ;;  %v2493_v20 = vpack.c.bf16 %v1484_v19, %v1483_v17  ;;  %v1487_v24 = vld [vmem:[%s3925_s3 + $0x30] sm:$0xff]  ;;  %v1493_v42 = vld [vmem:[%s3925_s3 + $0x60] sm:$0xff]  ;;  %p2525_p0 = scmp.ne.s32.totalorder %s1582_s2, %s2524_s22  ;;  %p2530_p2 = scmp.lt.s32.totalorder %s2524_s22, %s2524_s22 }
  0xb0   :  { %2458 = vmatprep.subr.bf16.mxu1 %v2457_v2  ;;  %v2481_v62 = vpack.c.bf16 %v415_v61, %v414_v60  ;;  %v419_v2 = vld [vmem:[%s3923_s1 + $0xc38] sm:$0xff]  ;;  %v1491_v38 = vld [vmem:[%s3925_s3 + $0x50] sm:$0xff]  ;;  %v1494_v44 = vld [vmem:[%s3925_s3 + $0x68] sm:$0xff] }
  0xb1   :  { %2428 = vmatpush3.bf16.msra.mxu0 %v2427_v8  ;;  %v1488_v25 = vld [vmem:[%s3925_s3 + $0x38] sm:$0xff]  ;;  %v2508_v45 = vpack.c.bf16 %v1494_v44, %v1493_v42  ;;  %v1495_v46 = vld [vmem:[%s3925_s3 + $0x70] sm:$0xff]  ;;  %v1592_v19 = vld [vmem:[%s3926_s4] ss:$0 sm:$0xff]  ;;  %p2531_p3 = por %p2530_p2, %p2529_p1 }
  0xb2   :  { %2430 = vmatprep.subr.bf16.mxu0 %v2429_v9  ;;  %v1492_v39 = vld [vmem:[%s3925_s3 + $0x58] sm:$0xff] }
  0xb3   :  { %2460 = vmatpush3.bf16.msra.mxu1 %v2459_v12  ;;  %v2505_v40 = vpack.c.bf16 %v1492_v39, %v1491_v38  ;;  %p2532_p4 = pnand %p2531_p3, %p2525_p0 }
  0xb4   :  { %2462 = vmatprep.subr.bf16.mxu1 %v2461_v14  ;;  %v1481_v14 = vld [vmem:[%s3925_s3] sm:$0xff] }
  0xb5   :  { %2432 = vmatpush3.bf16.msra.mxu0 %v2431_v21  ;;  %v2490_v18 = vpack.c.bf16 %v1482_v16, %v1481_v14  ;;  %v1485_v21 = vld [vmem:[%s3925_s3 + $0x20] sm:$0xff] }
  0xb6   :  { %2434 = vmatprep.subr.bf16.mxu0 %v2433_v23 }
  0xb7   :  { %2464 = vmatpush3.bf16.msra.mxu1 %v2463_v22  ;;  %v1486_v22 = vld [vmem:[%s3925_s3 + $0x28] sm:$0xff] }
  0xb8   :  { %2466 = vmatprep.subr.bf16.mxu1 %v2465_v27  ;;  %v2496_v23 = vpack.c.bf16 %v1486_v22, %v1485_v21  ;;  %v2499_v27 = vpack.c.bf16 %v1488_v25, %v1487_v24 }
  0xb9   :  { %2436 = vmatpush3.bf16.msra.mxu0 %v2435_v35  ;;  %v1489_v35 = vld [vmem:[%s3925_s3 + $0x40] sm:$0xff] }
  0xba   :  { %2438 = vmatprep.subr.bf16.mxu0 %v2437_v52 }
  0xbb   :  { %2468 = vmatpush3.bf16.msra.mxu1 %v2467_v36  ;;  %v1490_v36 = vld [vmem:[%s3925_s3 + $0x48] sm:$0xff] }
  0xbc   :  { %2470 = vmatprep.subr.bf16.mxu1 %v2469_v10  ;;  %v2502_v37 = vpack.c.bf16 %v1490_v36, %v1489_v35 }
  0xbd   :  { %2440 = vmatpush3.bf16.msra.mxu0 %v2439_v47  ;;  %v1496_v47 = vld [vmem:[%s3925_s3 + $0x78] sm:$0xff] }
  0xbe   :  { %2442 = vmatprep.subr.bf16.mxu0 %v2441_v49 }
  0xbf   :  { %2472 = vmatpush3.bf16.msra.mxu1 %v2471_v48  ;;  %v2511_v48 = vpack.c.bf16 %v1496_v47, %v1495_v46 }
  0xc0   :  { %2474 = vmatprep.subr.bf16.mxu1 %v2473_v54 }
  0xc1   :  { %2444 = vmatpush3.bf16.msra.mxu0 %v2443_v55 }
  0xc2   :  { %2477 = vmatprep.subr.bf16.mxu0 %v2549_v59 }
  0xc3   :  { %2476 = vmatpush3.bf16.msra.mxu1 %v2475_v57 }
  0xc4   :  { %2489 = vmatprep.subr.bf16.mxu1 %v2549_v59  ;;  %1335 = vmatmul.mubr.f32.vlgmr.msra.gmra.mrb[10].mxu0 %v3642_v31  ;;  %v2484_v31 = vpack.c.bf16 %v417_v0, %v416_v63 }
  0xc5   :  { %2479 = vmatpush3.bf16.msra.mxu0 %v2478_v58  ;;  %2055 = vmatprep.mubr.msk.f32.mxu0 %vm2550_vm0, %v2551_v1 }
  0xc6   :  { %1405 = vmatmul.mubr.f32.vlgmr.msra.gmra.mrb[10].mxu1 %v3651_v34  ;;  %2480 = vmatprep.subr.bf16.mxu0 %v2549_v59  ;;  %v418_v34 = vld [vmem:[%s3923_s1 + $0xc30] sm:$0xff] }
  0xc7   :  { %2090 = vmatprep.mubr.msk.f32.mxu1 %vm2550_vm0, %v2551_v1  ;;  %v2487_v3 = vpack.c.bf16 %v419_v2, %v418_v34  ;;  %2491 = vmatpush3.bf16.msra.mxu1 %v2490_v18 }
  0xc8   :  { %2492 = vmatprep.subr.bf16.mxu1 %v2549_v59 }
  0xc9   :  { %2482 = vmatpush3.bf16.msra.mxu0 %v2481_v62 }
  0xca   :  { %2483 = vmatprep.subr.bf16.mxu0 %v2549_v59 }
  0xcb   :  { %2494 = vmatpush3.bf16.msra.mxu1 %v2493_v20 }
  0xcc   :  { %2495 = vmatprep.subr.bf16.mxu1 %v2549_v59 }
  0xcd   :  { %2485 = vmatpush3.bf16.msra.mxu0 %v2484_v31 }
  0xce   :  { %2486 = vmatprep.subr.bf16.mxu0 %v2549_v59 }
  0xcf   :  { %2497 = vmatpush3.bf16.msra.mxu1 %v2496_v23 }
  0xd0   :  { %2498 = vmatprep.subr.bf16.mxu1 %v2549_v59 }
  0xd1   :  { %2488 = vmatpush3.bf16.msra.mxu0 %v2487_v3 }
  0xd3   :  { %2500 = vmatpush3.bf16.msra.mxu1 %v2499_v27 }
  0xd4   :  { %2056 = vmatmul.mubr.msk.f32.vlgmr.msra.gmra.mrb[12].mxu0 %vm567_vm1, %v1590_v4  ;;  %2501 = vmatprep.subr.bf16.mxu1 %v2549_v59 }
  0xd7   :  { %2503 = vmatpush3.bf16.msra.mxu1 %v2502_v37 }
  0xd8   :  { %2504 = vmatprep.subr.bf16.mxu1 %v2549_v59 }
  0xdb   :  { %2506 = vmatpush3.bf16.msra.mxu1 %v2505_v40 }
  0xdc   :  { %2507 = vmatprep.subr.bf16.mxu1 %v2549_v59 }
  0xdf   :  { %2509 = vmatpush3.bf16.msra.mxu1 %v2508_v45 }
  0xe0   :  { %2510 = vmatprep.subr.bf16.mxu1 %v2549_v59 }
  0xe3   :  { %2512 = vmatpush3.bf16.msra.mxu1 %v2511_v48 }
  0xf7   :  { %v1625_v5 = vpop.f32.mrb[0].mxu0 }
  0xf8   :  { %v1626_v7 = vpop.f32.mrb[1].mxu0 }
  0xf9   :  { %v1660_v8 = vpop.f32.mrb[0].mxu1  ;;  %v1627_v12 = vadd.f32 %v1626_v7, %v1625_v5 }
  0xfa   :  { %v1661_v9 = vpop.f32.mrb[1].mxu1 }
  0xfb   :  { %v1662_v11 = vadd.f32 %v1661_v9, %v1660_v8  ;;  %v637_v13 = vadd.f32 %v1627_v12, %v1589_v6 }
  0xfd   :  { %v707_v15 = vadd.f32 %v1662_v11, %v637_v13 }
 0x117   :  { %v1695_v26 = vpop.f32.mrb[2].mxu0 }
 0x118   :  { %v1696_v28 = vpop.f32.mrb[3].mxu0 }
 0x119   :  { %v1730_v29 = vpop.f32.mrb[2].mxu1  ;;  %v1697_v30 = vadd.f32 %v1696_v28, %v1695_v26 }
 0x11a   :  { %v1731_v33 = vpop.f32.mrb[3].mxu1 }
 0x11b   :  { %v1732_v43 = vadd.f32 %v1731_v33, %v1730_v29  ;;  %v777_v52 = vadd.f32 %v1697_v30, %v707_v15 }
 0x11d   :  { %v847_v10 = vadd.f32 %v1732_v43, %v777_v52 }
 0x137   :  { %v1765_v49 = vpop.f32.mrb[4].mxu0 }
 0x138   :  { %v1766_v50 = vpop.f32.mrb[5].mxu0 }
 0x139   :  { %v1800_v51 = vpop.f32.mrb[4].mxu1  ;;  %v1767_v54 = vadd.f32 %v1766_v50, %v1765_v49 }
 0x13a   :  { %v1801_v53 = vpop.f32.mrb[5].mxu1 }
 0x13b   :  { %v1802_v32 = vadd.f32 %v1801_v53, %v1800_v51  ;;  %v917_v55 = vadd.f32 %v1767_v54, %v847_v10 }
 0x13d   :  { %v987_v57 = vadd.f32 %v1802_v32, %v917_v55 }
 0x157   :  { %v1835_v56 = vpop.f32.mrb[6].mxu0 }
 0x158   :  { %v1836_v41 = vpop.f32.mrb[7].mxu0 }
 0x159   :  { %v1870_v58 = vpop.f32.mrb[6].mxu1  ;;  %v1837_v59 = vadd.f32 %v1836_v41, %v1835_v56 }
 0x15a   :  { %v1871_v60 = vpop.f32.mrb[7].mxu1 }
 0x15b   :  { %v1872_v61 = vadd.f32 %v1871_v60, %v1870_v58  ;;  %v1057_v62 = vadd.f32 %v1837_v59, %v987_v57 }
 0x15d   :  { %v1127_v63 = vadd.f32 %v1872_v61, %v1057_v62 }
 0x177   :  { %v1905_v0 = vpop.f32.mrb[8].mxu0 }
 0x178   :  { %v1906_v1 = vpop.f32.mrb[9].mxu0 }
 0x179   :  { %v1940_v31 = vpop.f32.mrb[8].mxu1  ;;  %v1907_v34 = vadd.f32 %v1906_v1, %v1905_v0 }
 0x17a   :  { %v1941_v2 = vpop.f32.mrb[9].mxu1 }
 0x17b   :  { %v1942_v3 = vadd.f32 %v1941_v2, %v1940_v31  ;;  %v1197_v4 = vadd.f32 %v1907_v34, %v1127_v63 }
 0x17d   :  { %v1267_v5 = vadd.f32 %v1942_v3, %v1197_v4 }
 0x197   :  { %v1975_v6 = vpop.f32.mrb[10].mxu0 }
 0x198   :  { %v1976_v7 = vpop.f32.mrb[11].mxu0 }
 0x199   :  { %v2010_v8 = vpop.f32.mrb[10].mxu1  ;;  %v1977_v12 = vadd.f32 %v1976_v7, %v1975_v6 }
 0x19a   :  { %v2011_v9 = vpop.f32.mrb[11].mxu1 }
 0x19b   :  { %v2012_v11 = vadd.f32 %v2011_v9, %v2010_v8  ;;  %v1337_v13 = vadd.f32 %v1977_v12, %v1267_v5 }
 0x19d   :  { %v1407_v15 = vadd.f32 %v2012_v11, %v1337_v13 }
 0x1a7   :  { %v1476_v14 = vpop.f32.mrb[12].mxu0 }
 0x1a8   :  { %v1477_v16 = vadd.f32 %v1476_v14, %v1407_v15  ;;  %v2057_v17 = vpop.f32.mrb[13].mxu0 }
 0x1aa   :  { %v1480_v18 = vmax.f32 %v1477_v16, 0.0 }
 0x1ac   :  { %2091 = vmatmul.mubr.f32.vlgmr.msra.gmra.mrb[12].mxu1 %v1480_v18 }
 0x27f   :  { %v1570_v20 = vpop.f32.mrb[12].mxu1 }
 0x280   :  { %v1571_v21 = vadd.f32 %v1592_v19, %v1570_v20  ;;  %v2092_v22 = vpop.f32.mrb[13].mxu1 }
 0x282   :  { %1574 = vst [vmem:[#allocation2] sm:$0x3] %v1571_v21 }
 0x283   :  { %2535 = shalt.err (!%p2532_p4)
}
 0x284   :  { %s2536_s25 = scalar_lea.hbm %s3927_s5, 32 }
 0x285   :  { %p2537_p5 = scmp.ne.s32.totalorder %s3927_s5, %s2536_s25  ;;  %p2540_p6 = scmp.lt.u32.totalorder %s2536_s25, %s3927_s5 }
 0x287   :  { %p2542_p7 = pnand %p2540_p6, %p2537_p5 }
 0x289   :  { %2545 = shalt.err (!%p2542_p7)
}
 0x28a   :  { %1584 = dma.vmem_to_hbm [thread:$0]  %s1582_s2, 32, %s3927_s5, [#allocation3]  }
 0x28b   :  { %2546 = dma.done.wait [#allocation3], 32  }
 0x28c   :  { %2547 = vsyncadd [#allocation3], 4294967264 }
 0x28d   :  { %1588 = vsyncpa [#allocation3], 1 }

// kernel: forward.2
= control target key start
LH: loop header
LB: loop body
LE: loop exit
PB: predicated region body
PF: predicated region fallthrough
CT: control target
= control target key end

     0   :  { %s6039_s24 = smov 0   ;;  %s8708_s0 = inlined_call_operand.vmem [shape: f32[2,4,9,196], index: 0, kind: input, shape index: {}]   ;;  %s8709_s1 = inlined_call_operand.vmem [shape: f32[32,9], index: 1, kind: input, shape index: {}]   ;;  %s8710_s2 = inlined_call_operand.vmem [shape: f32[32,1], index: 2, kind: input, shape index: {}]   ;;  %s8711_s3 = inlined_call_operand.vmem [shape: f32[9,64,32], index: 3, kind: input, shape index: {}]   ;;  %s8712_s4 = inlined_call_operand.vmem [shape: f32[64,1], index: 4, kind: input, shape index: {}]   ;;  %s8713_s5 = inlined_call_operand.vmem [shape: f32[9,196,256], index: 5, kind: input, shape index: {}]   ;;  %s8714_s6 = inlined_call_operand.vmem [shape: f32[4,256,49], index: 6, kind: input, shape index: {}]   ;;  %s8715_s7 = inlined_call_operand.vmem [shape: f32[2,64,49], index: 7, kind: output, shape index: {}]  }
   0x1 LB: > { %s4232_s25 = sadd.s32 4294967295, %s5994_s24   ;;  %p4236_p0 = scmp.ge.s32.totalorder %s5994_s24, 1  ;;  %s5994_s24 = sphi %s6039_s24, %s17_s24  }
   0x2   : > { %p237_p1 = scmp.lt.s32.totalorder %s5994_s24, 3 }
   0x4   : > { %p238_p2 = pnand %p4236_p0, %p237_p1 }
   0x5   : > { %p269_p3 = scmp.lt.s32.totalorder (!%p238_p2), %s4232_s25, 1  ;;  %v5996_v0 = vmov (!%p238_p2), 0.0   ;;  %vm300_vm0 = vcmask (!%p238_p2), 1040384   ;;  %v5997_v1 = vmov (!%p238_p2), 0   ;;  %v720_v2 = vld [vmem:[%s8710_s2] sm:$0xff] (!%p238_p2)  ;;  %v721_v3 = vld [vmem:[%s8710_s2 + $0x8] sm:$0xff] (!%p238_p2) }
   0x6   : > { %241 = sbr.rel (%p238_p2) target bundleno = 1517 (0x5ed), region = 48  ;;  %371 = vmatprep.mubr.f32.mxu0 (!%p238_p2), %v5996_v0  ;;  %471 = vmatprep.mubr.f32.mxu1 (!%p238_p2), %v5996_v0  ;;  %v722_v4 = vld [vmem:[%s8710_s2 + $0x10] sm:$0xff] (!%p238_p2)  ;;  %vm5998_vm1 = vmmov (!%p238_p2), 1   ;;  %v723_v6 = vld [vmem:[%s8710_s2 + $0x18] sm:$0xff] (!%p238_p2)  ;;  %v3513_v10 = vld [vmem:[%s8712_s4] sm:$0xff] (!%p238_p2)  ;;  %vm287_vm3 = vcmask (!%p238_p2), 72704  }
   0x7   : > { %5986 = vset.pattern.permute.xlu0 (!%p238_p2), %v5997_v1  ;;  %5987 = vset.pattern.permute.xlu1 (!%p238_p2), %v5997_v1  ;;  %vm6066_vm2 = vmpackc.low (!%p238_p2), %vm300_vm0, %vm5998_vm1  ;;  %v6087_v19 = vld [vmem:[%s8709_s1] sm:$0xff] (!%p238_p2)  ;;  %v4284_v33 = vld [vmem:[%s8713_s5 + $0x198] sm:$0xff] (!%p238_p2)  ;;  %vm823_vm4 = vcmask (!%p238_p2), 1043456   ;;  %vm810_vm5 = vcmask (!%p238_p2), 556032   ;;  %vm1082_vm6 = vcmask (!%p238_p2), 261120   ;;  %vm4168_vm7 = vcmask (!%p238_p2), 400384  }
   0x8   : > { %726 = vperm.xlu0 (!%p238_p2), %5986, %v720_v2   ;;  %736 = vperm.xlu1 (!%p238_p2), %5987, %v722_v4   ;;  %v4286_v34 = vld [vmem:[%s8713_s5 + $0x1a8] sm:$0xff] (!%p238_p2)  ;;  %v3515_v35 = vld [vmem:[%s8712_s4 + $0x10] sm:$0xff] (!%p238_p2)  ;;  %v763_v37 = vld [vmem:[%s8713_s5 + $0x18] sm:$0xff] (!%p238_p2) }
   0x9   : > { %v761_v36 = vld [vmem:[%s8713_s5 + $0x8] sm:$0xff] (!%p238_p2)  ;;  %v5263_v40 = vpack.c.bf16 (!%p238_p2), %v4286_v34, %v4284_v33  ;;  %v3517_v42 = vld [vmem:[%s8712_s4 + $0x20] sm:$0xff] (!%p238_p2)  ;;  %v6153_v43 = vld [vmem:[%s8709_s1 + $0x10] sm:$0xff] (!%p238_p2) }
   0xa   : > { %v6132_v38 = vld [vmem:[%s8709_s1 + $0x8] sm:$0xff] (!%p238_p2)  ;;  %v5215_v41 = vpack.c.bf16 (!%p238_p2), %v763_v37, %v761_v36  ;;  %v3516_v44 = vld [vmem:[%s8712_s4 + $0x18] sm:$0xff] (!%p238_p2)  ;;  %v3519_v45 = vld [vmem:[%s8712_s4 + $0x30] sm:$0xff] (!%p238_p2) }
   0xb   : > { %v3514_v39 = vld [vmem:[%s8712_s4 + $0x8] sm:$0xff] (!%p238_p2)  ;;  %v6170_v46 = vld [vmem:[%s8709_s1 + $0x18] sm:$0xff] (!%p238_p2)  ;;  %v4283_v48 = vld [vmem:[%s8713_s5 + $0x190] sm:$0xff] (!%p238_p2) }
   0xc   : > { %731 = vperm.xlu0 (!%p238_p2), %5986, %v721_v3   ;;  %741 = vperm.xlu1 (!%p238_p2), %5987, %v723_v6   ;;  %v3518_v47 = vld [vmem:[%s8712_s4 + $0x28] sm:$0xff] (!%p238_p2)  ;;  %v4285_v49 = vld [vmem:[%s8713_s5 + $0x1a0] sm:$0xff] (!%p238_p2)  ;;  %v762_v51 = vld [vmem:[%s8713_s5 + $0x10] sm:$0xff] (!%p238_p2) }
   0xd   : > { %s8719_s25 = smov (!%p269_p3, %s4232_s25), 1  ;;  %v760_v50 = vld [vmem:[%s8713_s5] sm:$0xff]  ;;  %v4288_v52 = vld [vmem:[%s8713_s5 + $0x1b8] sm:$0xff]  ;;  %v4290_v53 = vld [vmem:[%s8713_s5 + $0x1c8] sm:$0xff]  ;;  %v5265_v57 = vpack.c.bf16 %v4285_v49, %v4283_v48 }
   0xe   : > { %s4965_s28 = sshll.u32 %s8719_s25, 7  ;;  %v3520_v54 = vld [vmem:[%s8712_s4 + $0x38] sm:$0xff]  ;;  %v765_v55 = vld [vmem:[%s8713_s5 + $0x28] sm:$0xff]  ;;  %v5217_v58 = vpack.c.bf16 %v762_v51, %v760_v50  ;;  %v5267_v59 = vpack.c.bf16 %v4290_v53, %v4288_v52  ;;  %v4287_v60 = vld [vmem:[%s8713_s5 + $0x1b0] sm:$0xff]  ;;  %s4966_s16 = sshll.u32 %s8719_s25, 6 }
   0xf   : > { %s6064_s12 = scalar_lea.vmem %s8708_s0, %s4965_s28  ;;  %v767_v56 = vld [vmem:[%s8713_s5 + $0x38] sm:$0xff]  ;;  %v4289_v61 = vld [vmem:[%s8713_s5 + $0x1c0] sm:$0xff]  ;;  %v766_v1 = vld [vmem:[%s8713_s5 + $0x30] sm:$0xff]  ;;  %s8669_s19 = scalar_lea.vmem %s8715_s7, %s4966_s16 }
  0x10   : > { %v284_v7 = vld [vmem:[%s6064_s12 + $0x8] sm:$0xff]  ;;  %v286_v8 = vld [vmem:[%s6064_s12 + $0x18] sm:$0x1]  ;;  %v283_v13 = vld [vmem:[%s6064_s12] sm:$0xff]  ;;  %3523 = vperm.xlu0 %5986, %v3513_v10   ;;  %3528 = vperm.xlu1 %5987, %v3514_v39   ;;  %v5219_v63 = vpack.c.bf16 %v767_v56, %v765_v55  ;;  %v5269_v6 = vpack.c.bf16 %v4289_v61, %v4287_v60 }
  0x11   : > { %v4248_v9 = vld [vmem:[%s6064_s12 + $0x28] sm:$0xff]  ;;  %v5191_v11 = vpack.c.bf16 %v286_v8, %v284_v7  ;;  %v4250_v12 = vld [vmem:[%s6064_s12 + $0x38] sm:$0x1]  ;;  %v285_v14 = vld [vmem:[%s6064_s12 + $0x10] sm:$0x1] }
  0x12   : > { %v5197_v15 = vpack.c.bf16 %v4250_v12, %v4248_v9  ;;  %v5194_v16 = vpack.c.bf16 %v285_v14, %v283_v13  ;;  %v4247_v17 = vld [vmem:[%s6064_s12 + $0x20] sm:$0xff]  ;;  %v4249_v18 = vld [vmem:[%s6064_s12 + $0x30] sm:$0x1]  ;;  %v4258_v20 = vld [vmem:[%s6064_s12 + $0x48] sm:$0xff] }
  0x13   : > { %5193 = vmatprep.subr.msk.bf16.mxu0 %vm6066_vm2, %v5191_v11  ;;  %v5200_v21 = vpack.c.bf16 %v4249_v18, %v4247_v17  ;;  %v4260_v22 = vld [vmem:[%s6064_s12 + $0x58] sm:$0x1]  ;;  %v4257_v23 = vld [vmem:[%s6064_s12 + $0x40] sm:$0xff]  ;;  %v4259_v24 = vld [vmem:[%s6064_s12 + $0x50] sm:$0x1] }
  0x14   : > { %5199 = vmatprep.subr.msk.bf16.mxu1 %vm6066_vm2, %v5197_v15  ;;  %5196 = vmatpush1.bf16.msk.msra.mxu0 %vm6066_vm2, %v5194_v16  ;;  %v5203_v25 = vpack.c.bf16 %v4260_v22, %v4258_v20  ;;  %v4268_v26 = vld [vmem:[%s6064_s12 + $0x68] sm:$0xff]  ;;  %v4270_v27 = vld [vmem:[%s6064_s12 + $0x78] sm:$0x1]  ;;  %v4267_v28 = vld [vmem:[%s6064_s12 + $0x60] sm:$0xff]  ;;  %v5206_v29 = vpack.c.bf16 %v4259_v24, %v4257_v23 }
  0x15   : > { %5202 = vmatpush1.bf16.msk.msra.mxu1 %vm6066_vm2, %v5200_v21  ;;  %v5209_v30 = vpack.c.bf16 %v4270_v27, %v4268_v26  ;;  %v4269_v31 = vld [vmem:[%s6064_s12 + $0x70] sm:$0x1]  ;;  %3533 = vperm.xlu0 %5986, %v3515_v35   ;;  %v764_v62 = vld [vmem:[%s8713_s5 + $0x20] sm:$0xff]  ;;  %v4292_v2 = vld [vmem:[%s8713_s5 + $0x1d8] sm:$0xff] }
  0x16   : > { %5205 = vmatprep.subr.msk.bf16.mxu0 %vm6066_vm2, %v5203_v25  ;;  %v5212_v32 = vpack.c.bf16 %v4269_v31, %v4267_v28  ;;  %3538 = vperm.xlu1 %5987, %v3516_v44   ;;  %v4294_v3 = vld [vmem:[%s8713_s5 + $0x1e8] sm:$0xff]  ;;  %v771_v5 = vld [vmem:[%s8713_s5 + $0x58] sm:$0xff]  ;;  %v5221_v7 = vpack.c.bf16 %v766_v1, %v764_v62  ;;  %v4291_v9 = vld [vmem:[%s8713_s5 + $0x1d0] sm:$0xff] }
  0x17   : > { %4243 = vmatmul.mubr.msk.f32.vlgmr.msra.gmra.mrb[0].mxu0 %vm287_vm3, %v6087_v19  ;;  %5211 = vmatprep.subr.msk.bf16.mxu1 %vm6066_vm2, %v5209_v30  ;;  %v769_v4 = vld [vmem:[%s8713_s5 + $0x48] sm:$0xff]  ;;  %v5271_v8 = vpack.c.bf16 %v4294_v3, %v4292_v2  ;;  %v4293_v10 = vld [vmem:[%s8713_s5 + $0x1e0] sm:$0xff]  ;;  %v770_v13 = vld [vmem:[%s8713_s5 + $0x50] sm:$0xff] }
  0x18   : > { %4253 = vmatmul.mubr.msk.f32.vlgmr.msra.gmra.mrb[0].mxu1 %vm287_vm3, %v6087_v19  ;;  %377 = vmatprep.mubr.f32.mxu0 %v5996_v0  ;;  %v768_v11 = vld [vmem:[%s8713_s5 + $0x40] sm:$0xff]  ;;  %v5223_v12 = vpack.c.bf16 %v771_v5, %v769_v4  ;;  %v4296_v14 = vld [vmem:[%s8713_s5 + $0x1f8] sm:$0xff]  ;;  %v4298_v15 = vld [vmem:[%s8713_s5 + $0x208] sm:$0xff]  ;;  %v5273_v18 = vpack.c.bf16 %v4293_v10, %v4291_v9 }
  0x19   : > { %477 = vmatprep.mubr.f32.mxu1 %v5996_v0  ;;  %5208 = vmatpush1.bf16.msk.msra.mxu0 %vm6066_vm2, %v5206_v29  ;;  %v773_v16 = vld [vmem:[%s8713_s5 + $0x68] sm:$0xff]  ;;  %v775_v17 = vld [vmem:[%s8713_s5 + $0x78] sm:$0xff]  ;;  %v5275_v20 = vpack.c.bf16 %v4298_v15, %v4296_v14  ;;  %v4295_v21 = vld [vmem:[%s8713_s5 + $0x1f0] sm:$0xff] }
  0x1a   : > { %5214 = vmatpush1.bf16.msk.msra.mxu1 %vm6066_vm2, %v5212_v32  ;;  %3543 = vperm.xlu0 %5986, %v3517_v42   ;;  %v4297_v22 = vld [vmem:[%s8713_s5 + $0x200] sm:$0xff]  ;;  %v5227_v24 = vpack.c.bf16 %v775_v17, %v773_v16  ;;  %v774_v25 = vld [vmem:[%s8713_s5 + $0x70] sm:$0xff]  ;;  %v4300_v26 = vld [vmem:[%s8713_s5 + $0x218] sm:$0xff] }
  0x1b   : > { %4244 = vmatmul.mubr.msk.f32.gmra.mrb[2].mxu0 %vm287_vm3, %v6132_v38  ;;  %5264 = vmatprep.subr.bf16.mxu1 %v5263_v40  ;;  %v772_v23 = vld [vmem:[%s8713_s5 + $0x60] sm:$0xff]  ;;  %v4302_v27 = vld [vmem:[%s8713_s5 + $0x228] sm:$0xff]  ;;  %v779_v29 = vld [vmem:[%s8713_s5 + $0x98] sm:$0xff]  ;;  %v5277_v30 = vpack.c.bf16 %v4297_v22, %v4295_v21 }
  0x1c   : > { %4254 = vmatmul.mubr.msk.f32.gmra.mrb[2].mxu1 %vm287_vm3, %v6132_v38  ;;  %383 = vmatprep.mubr.f32.mxu0 %v5996_v0  ;;  %v777_v28 = vld [vmem:[%s8713_s5 + $0x88] sm:$0xff]  ;;  %v5229_v31 = vpack.c.bf16 %v774_v25, %v772_v23  ;;  %v5279_v32 = vpack.c.bf16 %v4302_v27, %v4300_v26  ;;  %v4299_v33 = vld [vmem:[%s8713_s5 + $0x210] sm:$0xff]  ;;  %v4301_v34 = vld [vmem:[%s8713_s5 + $0x220] sm:$0xff] }
  0x1d   : > { %483 = vmatprep.mubr.f32.mxu1 %v5996_v0  ;;  %5216 = vmatprep.subr.bf16.mxu0 %v5215_v41  ;;  %v776_v35 = vld [vmem:[%s8713_s5 + $0x80] sm:$0xff]  ;;  %v5231_v36 = vpack.c.bf16 %v779_v29, %v777_v28  ;;  %v778_v37 = vld [vmem:[%s8713_s5 + $0x90] sm:$0xff]  ;;  %v4306_v39 = vld [vmem:[%s8713_s5 + $0x248] sm:$0xff]  ;;  %v5281_v42 = vpack.c.bf16 %v4301_v34, %v4299_v33 }
  0x1e   : > { %3553 = vperm.xlu0 %5986, %v3519_v45   ;;  %3548 = vperm.xlu1 %5987, %v3518_v47   ;;  %v781_v40 = vld [vmem:[%s8713_s5 + $0xa8] sm:$0xff]  ;;  %v783_v41 = vld [vmem:[%s8713_s5 + $0xb8] sm:$0xff]  ;;  %v4303_v45 = vld [vmem:[%s8713_s5 + $0x230] sm:$0xff] }
  0x1f   : > { %4245 = vmatmul.mubr.msk.f32.gmra.mrb[4].mxu0 %vm287_vm3, %v6153_v43  ;;  %v5235_v47 = vpack.c.bf16 %v783_v41, %v781_v40  ;;  %v780_v48 = vld [vmem:[%s8713_s5 + $0xa0] sm:$0xff]  ;;  %v782_v49 = vld [vmem:[%s8713_s5 + $0xb0] sm:$0xff]  ;;  %v4308_v52 = vld [vmem:[%s8713_s5 + $0x258] sm:$0xff] }
  0x20   : > { %4255 = vmatmul.mubr.msk.f32.gmra.mrb[4].mxu1 %vm287_vm3, %v6153_v43  ;;  %389 = vmatprep.mubr.f32.mxu0 %v5996_v0  ;;  %v5237_v51 = vpack.c.bf16 %v782_v49, %v780_v48  ;;  %v4310_v53 = vld [vmem:[%s8713_s5 + $0x268] sm:$0xff]  ;;  %v787_v56 = vld [vmem:[%s8713_s5 + $0xd8] sm:$0xff]  ;;  %v784_v60 = vld [vmem:[%s8713_s5 + $0xc0] sm:$0xff] }
  0x21   : > { %489 = vmatprep.mubr.f32.mxu1 %v5996_v0  ;;  %v785_v55 = vld [vmem:[%s8713_s5 + $0xc8] sm:$0xff]  ;;  %v786_v61 = vld [vmem:[%s8713_s5 + $0xd0] sm:$0xff]  ;;  %v4312_v1 = vld [vmem:[%s8713_s5 + $0x278] sm:$0xff] }
  0x22   : > { %3558 = vperm.xlu1 %5987, %v3520_v54   ;;  %v5287_v54 = vpack.c.bf16 %v4310_v53, %v4308_v52  ;;  %v4314_v2 = vld [vmem:[%s8713_s5 + $0x288] sm:$0xff]  ;;  %v791_v5 = vld [vmem:[%s8713_s5 + $0xf8] sm:$0xff]  ;;  %v788_v9 = vld [vmem:[%s8713_s5 + $0xe0] sm:$0xff] }
  0x23   : > { %4246 = vmatmul.mubr.msk.f32.gmra.mrb[6].mxu0 %vm287_vm3, %v6170_v46  ;;  %v5291_v3 = vpack.c.bf16 %v4314_v2, %v4312_v1  ;;  %v789_v4 = vld [vmem:[%s8713_s5 + $0xe8] sm:$0xff]  ;;  %v790_v10 = vld [vmem:[%s8713_s5 + $0xf0] sm:$0xff]  ;;  %v795_v17 = vld [vmem:[%s8713_s5 + $0x118] sm:$0xff] }
  0x24   : > { %4256 = vmatmul.mubr.msk.f32.gmra.mrb[6].mxu1 %vm287_vm3, %v6170_v46  ;;  %579 = vmatprep.mubr.f32.mxu0 %v5996_v0  ;;  %v4318_v14 = vld [vmem:[%s8713_s5 + $0x2a8] sm:$0xff]  ;;  %v792_v21 = vld [vmem:[%s8713_s5 + $0x100] sm:$0xff]  ;;  %v794_v22 = vld [vmem:[%s8713_s5 + $0x110] sm:$0xff] }
  0x25   : > { %687 = vmatprep.mubr.f32.mxu1 %v5996_v0  ;;  %v793_v16 = vld [vmem:[%s8713_s5 + $0x108] sm:$0xff]  ;;  %v4320_v25 = vld [vmem:[%s8713_s5 + $0x2b8] sm:$0xff]  ;;  %v796_v33 = vld [vmem:[%s8713_s5 + $0x120] sm:$0xff] }
  0x26   : > { %v4322_v26 = vld [vmem:[%s8713_s5 + $0x2c8] sm:$0xff]  ;;  %v799_v29 = vld [vmem:[%s8713_s5 + $0x138] sm:$0xff]  ;;  %v798_v34 = vld [vmem:[%s8713_s5 + $0x130] sm:$0xff] }
  0x27   : > { %4263 = vmatmul.mubr.msk.f32.vlgmr.msra.gmra.mrb[8].mxu0 %vm287_vm3, %v6087_v19  ;;  %v5299_v27 = vpack.c.bf16 %v4322_v26, %v4320_v25  ;;  %v797_v28 = vld [vmem:[%s8713_s5 + $0x128] sm:$0xff]  ;;  %v803_v41 = vld [vmem:[%s8713_s5 + $0x158] sm:$0xff]  ;;  %v4331_v2 = vld [vmem:[%s8713_s5 + $0x310] sm:$0xf] }
  0x28   : > { %4273 = vmatmul.mubr.msk.f32.vlgmr.msra.gmra.mrb[8].mxu1 %vm287_vm3, %v6087_v19  ;;  %585 = vmatprep.mubr.f32.mxu0 %v5996_v0  ;;  %v5225_v19 = vpack.c.bf16 %v770_v13, %v768_v11  ;;  %v4316_v13 = vld [vmem:[%s8713_s5 + $0x298] sm:$0xff]  ;;  %v801_v40 = vld [vmem:[%s8713_s5 + $0x148] sm:$0xff] }
  0x29   : > { %693 = vmatprep.mubr.f32.mxu1 %v5996_v0  ;;  %5266 = vmatpush1.bf16.msra.mxu1 %v5265_v57  ;;  %v4307_v57 = vld [vmem:[%s8713_s5 + $0x250] sm:$0xff]  ;;  %v5295_v15 = vpack.c.bf16 %v4318_v14, %v4316_v13  ;;  %v4328_v49 = vld [vmem:[%s8713_s5 + $0x2f8] sm:$0xff]  ;;  %v805_v52 = vld [vmem:[%s8713_s5 + $0x168] sm:$0xff] }
  0x2a   : > { %5218 = vmatpush1.bf16.msra.mxu0 %v5217_v58  ;;  %5268 = vmatprep.subr.bf16.mxu1 %v5267_v59  ;;  %v5239_v58 = vpack.c.bf16 %v787_v56, %v785_v55  ;;  %v4309_v59 = vld [vmem:[%s8713_s5 + $0x260] sm:$0xff]  ;;  %v807_v53 = vld [vmem:[%s8713_s5 + $0x178] sm:$0xff]  ;;  %v809_v1 = vld [vmem:[%s8713_s5 + $0x188] sm:$0xf] }
  0x2b   : > { %4264 = vmatmul.mubr.msk.f32.gmra.mrb[10].mxu0 %vm287_vm3, %v6132_v38  ;;  %5220 = vmatprep.subr.bf16.mxu0 %v5219_v63  ;;  %v5289_v62 = vpack.c.bf16 %v4309_v59, %v4307_v57  ;;  %v5241_v63 = vpack.c.bf16 %v786_v61, %v784_v60  ;;  %v5259_v55 = vpack.c.bf16 %v807_v53, %v805_v52  ;;  %v4329_v56 = vld [vmem:[%s8713_s5 + $0x300] sm:$0xff]  ;;  %v4332_v61 = vld [vmem:[%s8713_s5 + $0x318] sm:$0xf] }
  0x2c   : > { %4274 = vmatmul.mubr.msk.f32.gmra.mrb[10].mxu1 %vm287_vm3, %v6132_v38  ;;  %591 = vmatprep.mubr.f32.mxu0 %v5996_v0  ;;  %v4304_v38 = vld [vmem:[%s8713_s5 + $0x238] sm:$0xff]  ;;  %v804_v57 = vld [vmem:[%s8713_s5 + $0x160] sm:$0xff] }
  0x2d   : > { %699 = vmatprep.mubr.f32.mxu1 %v5996_v0  ;;  %5270 = vmatpush1.bf16.msra.mxu1 %v5269_v6  ;;  %v5283_v44 = vpack.c.bf16 %v4306_v39, %v4304_v38  ;;  %v4311_v6 = vld [vmem:[%s8713_s5 + $0x270] sm:$0xff]  ;;  %v4326_v38 = vld [vmem:[%s8713_s5 + $0x2e8] sm:$0xff] }
  0x2e   : > { %5222 = vmatpush1.bf16.msra.mxu0 %v5221_v7  ;;  %5272 = vmatprep.subr.bf16.mxu1 %v5271_v8  ;;  %v5243_v7 = vpack.c.bf16 %v791_v5, %v789_v4  ;;  %v4313_v8 = vld [vmem:[%s8713_s5 + $0x280] sm:$0xff] }
  0x2f   : > { %4265 = vmatmul.mubr.msk.f32.gmra.mrb[12].mxu0 %vm287_vm3, %v6153_v43  ;;  %5224 = vmatprep.subr.bf16.mxu0 %v5223_v12  ;;  %v5293_v11 = vpack.c.bf16 %v4313_v8, %v4311_v6  ;;  %v5245_v12 = vpack.c.bf16 %v790_v10, %v788_v9  ;;  %v808_v4 = vld [vmem:[%s8713_s5 + $0x180] sm:$0xf] }
  0x30   : > { %4275 = vmatmul.mubr.msk.f32.gmra.mrb[12].mxu1 %vm287_vm3, %v6153_v43  ;;  %597 = vmatprep.mubr.f32.mxu0 %v5996_v0  ;;  %v5233_v43 = vpack.c.bf16 %v778_v37, %v776_v35  ;;  %v4324_v37 = vld [vmem:[%s8713_s5 + $0x2d8] sm:$0xff] }
  0x31   : > { %705 = vmatprep.mubr.f32.mxu1 %v5996_v0  ;;  %5274 = vmatpush1.bf16.msra.mxu1 %v5273_v18  ;;  %v4315_v18 = vld [vmem:[%s8713_s5 + $0x290] sm:$0xff]  ;;  %v5303_v39 = vpack.c.bf16 %v4326_v38, %v4324_v37 }
  0x32   : > { %5226 = vmatpush1.bf16.msra.mxu0 %v5225_v19  ;;  %5276 = vmatprep.subr.bf16.mxu1 %v5275_v20  ;;  %v5247_v19 = vpack.c.bf16 %v795_v17, %v793_v16  ;;  %v4317_v20 = vld [vmem:[%s8713_s5 + $0x2a0] sm:$0xff] }
  0x33   : > { %4266 = vmatmul.mubr.msk.f32.gmra.mrb[14].mxu0 %vm287_vm3, %v6170_v46  ;;  %5228 = vmatprep.subr.bf16.mxu0 %v5227_v24  ;;  %v5297_v23 = vpack.c.bf16 %v4317_v20, %v4315_v18  ;;  %v5249_v24 = vpack.c.bf16 %v794_v22, %v792_v21 }
  0x34   : > { %4276 = vmatmul.mubr.msk.f32.gmra.mrb[14].mxu1 %vm287_vm3, %v6170_v46  ;;  %v4305_v46 = vld [vmem:[%s8713_s5 + $0x240] sm:$0xff] }
  0x35   : > { %5278 = vmatpush1.bf16.msra.mxu1 %v5277_v30  ;;  %v5285_v50 = vpack.c.bf16 %v4305_v46, %v4303_v45  ;;  %v4319_v30 = vld [vmem:[%s8713_s5 + $0x2b0] sm:$0xff]  ;;  %v800_v45 = vld [vmem:[%s8713_s5 + $0x140] sm:$0xff] }
  0x36   : > { %5230 = vmatpush1.bf16.msra.mxu0 %v5229_v31  ;;  %5280 = vmatprep.subr.bf16.mxu1 %v5279_v32  ;;  %v5251_v31 = vpack.c.bf16 %v799_v29, %v797_v28  ;;  %v4321_v32 = vld [vmem:[%s8713_s5 + $0x2c0] sm:$0xff]  ;;  %v802_v46 = vld [vmem:[%s8713_s5 + $0x150] sm:$0xff] }
  0x37   : > { %5232 = vmatprep.subr.bf16.mxu0 %v5231_v36  ;;  %v5301_v35 = vpack.c.bf16 %v4321_v32, %v4319_v30  ;;  %v5253_v36 = vpack.c.bf16 %v798_v34, %v796_v33  ;;  %v5257_v48 = vpack.c.bf16 %v802_v46, %v800_v45 }
  0x39   : > { %5282 = vmatpush1.bf16.msra.mxu1 %v5281_v42  ;;  %v4323_v42 = vld [vmem:[%s8713_s5 + $0x2d0] sm:$0xff] }
  0x3a   : > { %5234 = vmatpush1.bf16.msra.mxu0 %v5233_v43  ;;  %5284 = vmatprep.subr.bf16.mxu1 %v5283_v44  ;;  %v5255_v43 = vpack.c.bf16 %v803_v41, %v801_v40  ;;  %v4325_v44 = vld [vmem:[%s8713_s5 + $0x2e0] sm:$0xff] }
  0x3b   : > { %5236 = vmatprep.subr.bf16.mxu0 %v5235_v47  ;;  %v5305_v47 = vpack.c.bf16 %v4325_v44, %v4323_v42  ;;  %v4365_v44 = vld [vmem:[%s8713_s5 + $0x330] sm:$0xff] }
  0x3d   : > { %5286 = vmatpush1.bf16.msra.mxu1 %v5285_v50  ;;  %v4330_v50 = vld [vmem:[%s8713_s5 + $0x308] sm:$0xff] }
  0x3e   : > { %5238 = vmatpush1.bf16.msra.mxu0 %v5237_v51  ;;  %5288 = vmatprep.subr.bf16.mxu1 %v5287_v54  ;;  %v5307_v51 = vpack.c.bf16 %v4330_v50, %v4328_v49  ;;  %v4327_v54 = vld [vmem:[%s8713_s5 + $0x2f0] sm:$0xff]  ;;  %v4370_v49 = vld [vmem:[%s8713_s5 + $0x358] sm:$0xff] }
  0x3f   : > { %5240 = vmatprep.subr.bf16.mxu0 %v5239_v58  ;;  %v806_v58 = vld [vmem:[%s8713_s5 + $0x170] sm:$0xff]  ;;  %v5309_v59 = vpack.c.bf16 %v4329_v56, %v4327_v54 }
  0x40   : > { %v5261_v60 = vpack.c.bf16 %v806_v58, %v804_v57 }
  0x41   : > { %5290 = vmatpush1.bf16.msra.mxu1 %v5289_v62  ;;  %v4364_v62 = vld [vmem:[%s8713_s5 + $0x328] sm:$0xff] }
  0x42   : > { %5242 = vmatpush1.bf16.msra.mxu0 %v5241_v63  ;;  %5292 = vmatprep.subr.bf16.mxu1 %v5291_v3  ;;  %v4366_v63 = vld [vmem:[%s8713_s5 + $0x338] sm:$0xff] }
  0x43   : > { %5244 = vmatprep.subr.bf16.mxu0 %v5243_v7  ;;  %v5327_v3 = vpack.c.bf16 %v4366_v63, %v4364_v62  ;;  %v4367_v63 = vld [vmem:[%s8713_s5 + $0x340] sm:$0xff] }
  0x45   : > { %5294 = vmatpush1.bf16.msra.mxu1 %v5293_v11 }
  0x46   : > { %5246 = vmatpush1.bf16.msra.mxu0 %v5245_v12  ;;  %5296 = vmatprep.subr.bf16.mxu1 %v5295_v15 }
  0x47   : > { %5248 = vmatprep.subr.bf16.mxu0 %v5247_v19 }
  0x49   : > { %5298 = vmatpush1.bf16.msra.mxu1 %v5297_v23 }
  0x4a   : > { %5250 = vmatpush1.bf16.msra.mxu0 %v5249_v24  ;;  %5300 = vmatprep.subr.bf16.mxu1 %v5299_v27 }
  0x4b   : > { %5252 = vmatprep.subr.bf16.mxu0 %v5251_v31 }
  0x4d   : > { %5302 = vmatpush1.bf16.msra.mxu1 %v5301_v35 }
  0x4e   : > { %5254 = vmatpush1.bf16.msra.mxu0 %v5253_v36  ;;  %5304 = vmatprep.subr.bf16.mxu1 %v5303_v39 }
  0x4f   : > { %5256 = vmatprep.subr.bf16.mxu0 %v5255_v43  ;;  %v4363_v43 = vld [vmem:[%s8713_s5 + $0x320] sm:$0xff] }
  0x50   : > { %v5329_v56 = vpack.c.bf16 %v4365_v44, %v4363_v43  ;;  %v4381_v43 = vld [vmem:[%s8713_s5 + $0x3b0] sm:$0xff]  ;;  %v4384_v44 = vld [vmem:[%s8713_s5 + $0x3c8] sm:$0xff] }
  0x51   : > { %5306 = vmatpush1.bf16.msra.mxu1 %v5305_v47 }
  0x52   : > { %5258 = vmatpush1.bf16.msra.mxu0 %v5257_v48  ;;  %5308 = vmatprep.subr.bf16.mxu1 %v5307_v51  ;;  %v4368_v48 = vld [vmem:[%s8713_s5 + $0x348] sm:$0xff] }
  0x53   : > { %5260 = vmatprep.subr.bf16.mxu0 %v5259_v55  ;;  %v5331_v62 = vpack.c.bf16 %v4370_v49, %v4368_v48  ;;  %v4383_v48 = vld [vmem:[%s8713_s5 + $0x3c0] sm:$0xff]  ;;  %v4385_v49 = vld [vmem:[%s8713_s5 + $0x3d0] sm:$0xff] }
  0x55   : > { %5310 = vmatpush1.bf16.msra.mxu1 %v5309_v59 }
  0x56   : > { %5262 = vmatpush1.bf16.msra.mxu0 %v5261_v60  ;;  %4333 = vmatprep.subr.msk.mxu1 %vm823_vm4, %v4332_v61 }
  0x57   : > { %4277 = vmatprep.subr.msk.mxu0 %vm823_vm4, %v809_v1  ;;  %v4369_v1 = vld [vmem:[%s8713_s5 + $0x350] sm:$0xff] }
  0x59   : > { %4334 = vmatpush1.msk.msra.mxu1 %vm823_vm4, %v4331_v2 }
  0x5a   : > { %4278 = vmatpush1.msk.msra.mxu0 %vm823_vm4, %v808_v4  ;;  %5328 = vmatprep.subr.bf16.mxu1 %v5327_v3 }
  0x87   : > { %v727_v33 = vpop.permute.xlu0 %726  ;;  %v737_v51 = vpop.permute.xlu1 %736 }
  0x8b   : > { %v732_v52 = vpop.permute.xlu0 %731 }
  0xea   : > { %v373_v5 = vpop.f32.mrb[0].mxu0 }
  0xeb   : > { %v473_v6 = vpop.f32.mrb[0].mxu1  ;;  %v375_v7 = vpop.f32.mrb[1].mxu0 }
  0xec   : > { %v496_v8 = vmax.f32 %v373_v5, %v473_v6  ;;  %v475_v9 = vpop.f32.mrb[1].mxu1  ;;  %v4372_v5 = vld [vmem:[%s8713_s5 + $0x368] sm:$0xff]  ;;  %v4374_v6 = vld [vmem:[%s8713_s5 + $0x378] sm:$0xff] }
  0xed   : > { %v497_v10 = vmax.f32 %v375_v7, %v475_v9 }
  0xee   : > { %v379_v11 = vpop.f32.mrb[2].mxu0 }
  0xef   : > { %v479_v12 = vpop.f32.mrb[2].mxu1  ;;  %v381_v13 = vpop.f32.mrb[3].mxu0 }
  0xf0   : > { %v498_v14 = vmax.f32 %v379_v11, %v479_v12  ;;  %v481_v15 = vpop.f32.mrb[3].mxu1  ;;  %v5333_v11 = vpack.c.bf16 %v4369_v1, %v4367_v63  ;;  %v4393_v63 = vld [vmem:[%s8713_s5 + $0x410] sm:$0xff]  ;;  %v4396_v1 = vld [vmem:[%s8713_s5 + $0x428] sm:$0xff] }
  0xf1   : > { %v499_v16 = vmax.f32 %v381_v13, %v481_v15 }
  0xf2   : > { %v385_v17 = vpop.f32.mrb[4].mxu0 }
  0xf3   : > { %v485_v18 = vpop.f32.mrb[4].mxu1  ;;  %v387_v19 = vpop.f32.mrb[5].mxu0 }
  0xf4   : > { %v500_v20 = vmax.f32 %v385_v17, %v485_v18  ;;  %v487_v21 = vpop.f32.mrb[5].mxu1  ;;  %v5335_v17 = vpack.c.bf16 %v4374_v6, %v4372_v5  ;;  %v4371_v18 = vld [vmem:[%s8713_s5 + $0x360] sm:$0xff]  ;;  %v4397_v6 = vld [vmem:[%s8713_s5 + $0x430] sm:$0xff] }
  0xf5   : > { %v501_v22 = vmax.f32 %v387_v19, %v487_v21  ;;  %v4373_v19 = vld [vmem:[%s8713_s5 + $0x370] sm:$0xff]  ;;  %v4395_v5 = vld [vmem:[%s8713_s5 + $0x420] sm:$0xff] }
  0xf6   : > { %v391_v23 = vpop.f32.mrb[6].mxu0 }
  0xf7   : > { %v491_v24 = vpop.f32.mrb[6].mxu1  ;;  %v6505_v25 = vpop.f32.mrb[7].mxu0 }
  0xf8   : > { %v502_v26 = vmax.f32 %v391_v23, %v491_v24  ;;  %v6507_v27 = vpop.f32.mrb[7].mxu1  ;;  %v742_v23 = vpop.permute.xlu1 %741  ;;  %v4376_v24 = vld [vmem:[%s8713_s5 + $0x388] sm:$0xff] }
  0xf9   : > { %v503_v28 = vmax.f32 %v6505_v25, %v6507_v27 }
  0xfa   : > { %v581_v29 = vpop.f32.mrb[8].mxu0 }
  0xfb   : > { %v604_v30 = vmax.f32 %v496_v8, %v581_v29  ;;  %v583_v31 = vpop.f32.mrb[9].mxu0  ;;  %v689_v32 = vpop.f32.mrb[8].mxu1 }
  0xfc   : > { %v605_v34 = vmax.f32 %v497_v10, %v583_v31  ;;  %v691_v35 = vpop.f32.mrb[9].mxu1 }
  0xfd   : > { %v712_v36 = vmax.f32 %v604_v30, %v689_v32 }
  0xfe   : > { %v713_v37 = vmax.f32 %v605_v34, %v691_v35  ;;  %v587_v38 = vpop.f32.mrb[10].mxu0  ;;  %v4377_v34 = vld [vmem:[%s8713_s5 + $0x390] sm:$0xff] }
  0xff   : > { %v744_v39 = vadd.f32 %v727_v33, %v712_v36  ;;  %v606_v40 = vmax.f32 %v498_v14, %v587_v38  ;;  %v589_v41 = vpop.f32.mrb[11].mxu0  ;;  %v695_v42 = vpop.f32.mrb[10].mxu1  ;;  %v4380_v36 = vld [vmem:[%s8713_s5 + $0x3a8] sm:$0xff] }
 0x100   : > { %v745_v45 = vadd.f32 %v727_v33, %v713_v37  ;;  %v607_v46 = vmax.f32 %v499_v16, %v589_v41  ;;  %v697_v47 = vpop.f32.mrb[11].mxu1  ;;  %v4375_v33 = vld [vmem:[%s8713_s5 + $0x380] sm:$0xff]  ;;  %v4382_v37 = vld [vmem:[%s8713_s5 + $0x3b8] sm:$0xff] }
 0x101   : > { %v714_v50 = vmax.f32 %v606_v40, %v695_v42  ;;  %v6525_v57 = vmax.f32 %v744_v39, 0.0  ;;  %v5341_v39 = vpack.c.bf16 %v4377_v34, %v4375_v33  ;;  %v5343_v41 = vpack.c.bf16 %v4382_v37, %v4380_v36  ;;  %v4379_v42 = vld [vmem:[%s8713_s5 + $0x3a0] sm:$0xff]  ;;  %v4435_v33 = vld [vmem:[%s8713_s5 + $0x4b0] sm:$0xff]  ;;  %v4442_v36 = vld [vmem:[%s8713_s5 + $0x4e8] sm:$0xff] }
 0x102   : > { %v6523_v53 = vmax.f32 %v745_v45, 0.0  ;;  %v715_v54 = vmax.f32 %v607_v46, %v697_v47  ;;  %v593_v55 = vpop.f32.mrb[12].mxu0  ;;  %v4386_v45 = vld [vmem:[%s8713_s5 + $0x3d8] sm:$0xff]  ;;  %v5345_v46 = vpack.c.bf16 %v4381_v43, %v4379_v42  ;;  %v4437_v34 = vld [vmem:[%s8713_s5 + $0x4c0] sm:$0xff]  ;;  %v4439_v43 = vld [vmem:[%s8713_s5 + $0x4d0] sm:$0xff] }
 0x103   : > { %v746_v58 = vadd.f32 %v732_v52, %v714_v50  ;;  %v608_v59 = vmax.f32 %v500_v20, %v593_v55  ;;  %v595_v60 = vpop.f32.mrb[13].mxu0  ;;  %v701_v61 = vpop.f32.mrb[12].mxu1  ;;  %v5347_v47 = vpack.c.bf16 %v4386_v45, %v4384_v44  ;;  %v4388_v50 = vld [vmem:[%s8713_s5 + $0x3e8] sm:$0xff]  ;;  %v4387_v55 = vld [vmem:[%s8713_s5 + $0x3e0] sm:$0xff]  ;;  %v4444_v45 = vld [vmem:[%s8713_s5 + $0x4f8] sm:$0xff] }
 0x104   : > { %v747_v2 = vadd.f32 %v732_v52, %v715_v54  ;;  %v609_v3 = vmax.f32 %v501_v22, %v595_v60  ;;  %4279 = vmatprep.mubr.msk.f32.mxu0 %vm810_vm5, %v6523_v53  ;;  %4335 = vmatprep.mubr.msk.f32.mxu1 %vm810_vm5, %v6523_v53  ;;  %v703_v4 = vpop.f32.mrb[13].mxu1  ;;  %v5349_v52 = vpack.c.bf16 %v4385_v49, %v4383_v48  ;;  %v4411_v37 = vld [vmem:[%s8713_s5 + $0x4a0] sm:$0xf]  ;;  %v4443_v49 = vld [vmem:[%s8713_s5 + $0x4f0] sm:$0xff] }
 0x105   : > { %v716_v7 = vmax.f32 %v608_v59, %v701_v61  ;;  %895 = vmatmul.mubr.f32.vlgmr.msra.gmra.mrb[16].mxu0 %v6525_v57  ;;  %1049 = vmatmul.mubr.f32.vlgmr.msra.gmra.mrb[16].mxu1 %v6525_v57  ;;  %v6547_v12 = vmax.f32 %v746_v58, 0.0  ;;  %v4392_v58 = vld [vmem:[%s8713_s5 + $0x408] sm:$0xff]  ;;  %v4394_v59 = vld [vmem:[%s8713_s5 + $0x418] sm:$0xff]  ;;  %v4441_v44 = vld [vmem:[%s8713_s5 + $0x4e0] sm:$0xff] }
 0x106   : > { %v6545_v8 = vmax.f32 %v747_v2, 0.0  ;;  %v717_v9 = vmax.f32 %v609_v3, %v703_v4  ;;  %5330 = vmatpush1.bf16.msra.mxu1 %v5329_v56  ;;  %v599_v10 = vpop.f32.mrb[14].mxu0  ;;  %v4389_v56 = vld [vmem:[%s8713_s5 + $0x3f0] sm:$0xff]  ;;  %v5355_v61 = vpack.c.bf16 %v4394_v59, %v4392_v58  ;;  %v4398_v2 = vld [vmem:[%s8713_s5 + $0x438] sm:$0xff]  ;;  %v4449_v58 = vld [vmem:[%s8713_s5 + $0x520] sm:$0xff] }
 0x107   : > { %v748_v13 = vadd.f32 %v737_v51, %v716_v7  ;;  %v610_v14 = vmax.f32 %v502_v26, %v599_v10  ;;  %v601_v15 = vpop.f32.mrb[15].mxu0  ;;  %v707_v16 = vpop.f32.mrb[14].mxu1  ;;  %5332 = vmatprep.subr.bf16.mxu1 %v5331_v62  ;;  %v4378_v26 = vld [vmem:[%s8713_s5 + $0x398] sm:$0xff]  ;;  %v5353_v60 = vpack.c.bf16 %v4389_v56, %v4387_v55  ;;  %v4391_v62 = vld [vmem:[%s8713_s5 + $0x400] sm:$0xff]  ;;  %v5359_v4 = vpack.c.bf16 %v4398_v2, %v4396_v1  ;;  %v4400_v7 = vld [vmem:[%s8713_s5 + $0x448] sm:$0xff] }
 0x108   : > { %v749_v20 = vadd.f32 %v737_v51, %v717_v9  ;;  %v611_v21 = vmax.f32 %v503_v28, %v601_v15  ;;  %4280 = vmatprep.mubr.msk.f32.mxu0 %vm810_vm5, %v6545_v8  ;;  %4336 = vmatprep.mubr.msk.f32.mxu1 %vm810_vm5, %v6545_v8  ;;  %v709_v22 = vpop.f32.mrb[15].mxu1  ;;  %v5337_v28 = vpack.c.bf16 %v4373_v19, %v4371_v18  ;;  %v4390_v51 = vld [vmem:[%s8713_s5 + $0x3f8] sm:$0xff]  ;;  %v4404_v15 = vld [vmem:[%s8713_s5 + $0x468] sm:$0xff]  ;;  %v4403_v19 = vld [vmem:[%s8713_s5 + $0x460] sm:$0xff] }
 0x109   : > { %v718_v29 = vmax.f32 %v610_v14, %v707_v16  ;;  %901 = vmatmul.mubr.f32.gmra.mrb[18].mxu0 %v6547_v12  ;;  %1055 = vmatmul.mubr.f32.gmra.mrb[18].mxu1 %v6547_v12  ;;  %v6572_v30 = vmax.f32 %v748_v13, 0.0  ;;  %v5339_v32 = vpack.c.bf16 %v4378_v26, %v4376_v24  ;;  %v5351_v54 = vpack.c.bf16 %v4390_v51, %v4388_v50  ;;  %v4402_v9 = vld [vmem:[%s8713_s5 + $0x458] sm:$0xff]  ;;  %v4399_v13 = vld [vmem:[%s8713_s5 + $0x440] sm:$0xff]  ;;  %v4401_v14 = vld [vmem:[%s8713_s5 + $0x450] sm:$0xff] }
 0x10a   : > { %v6570_v25 = vmax.f32 %v749_v20, 0.0  ;;  %v719_v27 = vmax.f32 %v611_v21, %v709_v22  ;;  %5334 = vmatpush1.bf16.msra.mxu1 %v5333_v11  ;;  %v5357_v3 = vpack.c.bf16 %v4393_v63, %v4391_v62  ;;  %v5361_v10 = vpack.c.bf16 %v4397_v6, %v4395_v5  ;;  %v4406_v16 = vld [vmem:[%s8713_s5 + $0x478] sm:$0xff]  ;;  %v4405_v20 = vld [vmem:[%s8713_s5 + $0x470] sm:$0xff]  ;;  %v4408_v21 = vld [vmem:[%s8713_s5 + $0x488] sm:$0xff] }
 0x10b   : > { %v750_v31 = vadd.f32 %v742_v23, %v718_v29  ;;  %5336 = vmatprep.subr.bf16.mxu1 %v5335_v17  ;;  %v5363_v11 = vpack.c.bf16 %v4402_v9, %v4400_v7  ;;  %v5365_v17 = vpack.c.bf16 %v4401_v14, %v4399_v13  ;;  %v5367_v18 = vpack.c.bf16 %v4406_v16, %v4404_v15  ;;  %v4410_v22 = vld [vmem:[%s8713_s5 + $0x498] sm:$0xff]  ;;  %v4407_v26 = vld [vmem:[%s8713_s5 + $0x480] sm:$0xff]  ;;  %v4409_v29 = vld [vmem:[%s8713_s5 + $0x490] sm:$0xff] }
 0x10c   : > { %v751_v35 = vadd.f32 %v742_v23, %v719_v27  ;;  %4281 = vmatprep.mubr.msk.f32.mxu0 %vm810_vm5, %v6570_v25  ;;  %4337 = vmatprep.mubr.msk.f32.mxu1 %vm810_vm5, %v6570_v25  ;;  %v5369_v23 = vpack.c.bf16 %v4405_v20, %v4403_v19  ;;  %v5371_v24 = vpack.c.bf16 %v4410_v22, %v4408_v21  ;;  %v4445_v50 = vld [vmem:[%s8713_s5 + $0x500] sm:$0xff]  ;;  %v4448_v51 = vld [vmem:[%s8713_s5 + $0x518] sm:$0xff]  ;;  %v4447_v56 = vld [vmem:[%s8713_s5 + $0x510] sm:$0xff] }
 0x10d   : > { %907 = vmatmul.mubr.f32.gmra.mrb[20].mxu0 %v6572_v30  ;;  %1061 = vmatmul.mubr.f32.gmra.mrb[20].mxu1 %v6572_v30  ;;  %v6594_v40 = vmax.f32 %v750_v31, 0.0  ;;  %v5373_v27 = vpack.c.bf16 %v4409_v29, %v4407_v26  ;;  %v4436_v31 = vld [vmem:[%s8713_s5 + $0x4b8] sm:$0xff]  ;;  %v4451_v63 = vld [vmem:[%s8713_s5 + $0x530] sm:$0xff]  ;;  %v4453_v1 = vld [vmem:[%s8713_s5 + $0x540] sm:$0xff] }
 0x10e   : > { %v6592_v38 = vmax.f32 %v751_v35, 0.0  ;;  %5338 = vmatpush1.bf16.msra.mxu1 %v5337_v28  ;;  %v4412_v28 = vld [vmem:[%s8713_s5 + $0x4a8] sm:$0xf]  ;;  %v4440_v35 = vld [vmem:[%s8713_s5 + $0x4d8] sm:$0xff]  ;;  %v4455_v6 = vld [vmem:[%s8713_s5 + $0x550] sm:$0xff] }
 0x10f   : > { %5340 = vmatprep.subr.bf16.mxu1 %v5339_v32  ;;  %v4438_v32 = vld [vmem:[%s8713_s5 + $0x4c8] sm:$0xff]  ;;  %v5387_v42 = vpack.c.bf16 %v4442_v36, %v4440_v35  ;;  %v4452_v59 = vld [vmem:[%s8713_s5 + $0x538] sm:$0xff]  ;;  %v4457_v7 = vld [vmem:[%s8713_s5 + $0x560] sm:$0xff] }
 0x110   : > { %4282 = vmatprep.mubr.msk.f32.mxu0 %vm810_vm5, %v6592_v38  ;;  %4338 = vmatprep.mubr.msk.f32.mxu1 %vm810_vm5, %v6592_v38  ;;  %v4456_v2 = vld [vmem:[%s8713_s5 + $0x558] sm:$0xff]  ;;  %v4459_v14 = vld [vmem:[%s8713_s5 + $0x570] sm:$0xff]  ;;  %v4461_v15 = vld [vmem:[%s8713_s5 + $0x580] sm:$0xff] }
 0x111   : > { %913 = vmatmul.mubr.f32.gmra.mrb[22].mxu0 %v6594_v40  ;;  %1067 = vmatmul.mubr.f32.gmra.mrb[22].mxu1 %v6594_v40  ;;  %v4460_v9 = vld [vmem:[%s8713_s5 + $0x578] sm:$0xff]  ;;  %v4463_v20 = vld [vmem:[%s8713_s5 + $0x590] sm:$0xff]  ;;  %v4465_v21 = vld [vmem:[%s8713_s5 + $0x5a0] sm:$0xff] }
 0x112   : > { %5342 = vmatpush1.bf16.msra.mxu1 %v5341_v39  ;;  %4415 = vmatprep.mubr.msk.f32.mxu1 %vm810_vm5, %v6523_v53  ;;  %v5383_v39 = vpack.c.bf16 %v4438_v32, %v4436_v31  ;;  %v4464_v16 = vld [vmem:[%s8713_s5 + $0x598] sm:$0xff]  ;;  %v4467_v29 = vld [vmem:[%s8713_s5 + $0x5b0] sm:$0xff]  ;;  %v4474_v31 = vld [vmem:[%s8713_s5 + $0x5e8] sm:$0xff] }
 0x113   : > { %5344 = vmatprep.subr.bf16.mxu1 %v5343_v41  ;;  %1171 = vmatprep.mubr.f32.mxu0 %v5996_v0  ;;  %v5385_v41 = vpack.c.bf16 %v4437_v34, %v4435_v33  ;;  %v4468_v22 = vld [vmem:[%s8713_s5 + $0x5b8] sm:$0xff]  ;;  %v4471_v34 = vld [vmem:[%s8713_s5 + $0x5d0] sm:$0xff]  ;;  %v4473_v35 = vld [vmem:[%s8713_s5 + $0x5e0] sm:$0xff] }
 0x114   : > { %v4476_v36 = vld [vmem:[%s8713_s5 + $0x5f8] sm:$0xff] }
 0x116   : > { %5346 = vmatpush1.bf16.msra.mxu1 %v5345_v46  ;;  %v4446_v46 = vld [vmem:[%s8713_s5 + $0x508] sm:$0xff] }
 0x117   : > { %5348 = vmatprep.subr.bf16.mxu1 %v5347_v47  ;;  %v5389_v47 = vpack.c.bf16 %v4441_v44, %v4439_v43  ;;  %v5391_v48 = vpack.c.bf16 %v4446_v46, %v4444_v45  ;;  %v4477_v43 = vld [vmem:[%s8713_s5 + $0x600] sm:$0xff]  ;;  %v4480_v44 = vld [vmem:[%s8713_s5 + $0x618] sm:$0xff]  ;;  %v4482_v45 = vld [vmem:[%s8713_s5 + $0x628] sm:$0xff] }
 0x11a   : > { %5350 = vmatpush1.bf16.msra.mxu1 %v5349_v52  ;;  %v4450_v52 = vld [vmem:[%s8713_s5 + $0x528] sm:$0xff] }
 0x11b   : > { %5352 = vmatprep.subr.bf16.mxu1 %v5351_v54  ;;  %v5393_v54 = vpack.c.bf16 %v4445_v50, %v4443_v49  ;;  %v5395_v55 = vpack.c.bf16 %v4450_v52, %v4448_v51  ;;  %v4481_v49 = vld [vmem:[%s8713_s5 + $0x620] sm:$0xff]  ;;  %v4484_v51 = vld [vmem:[%s8713_s5 + $0x638] sm:$0xf]  ;;  %v4508_v52 = vld [vmem:[%s8713_s5 + $0x648] sm:$0xff] }
 0x11e   : > { %5354 = vmatpush1.bf16.msra.mxu1 %v5353_v60  ;;  %v4454_v60 = vld [vmem:[%s8713_s5 + $0x548] sm:$0xff] }
 0x11f   : > { %5356 = vmatprep.subr.bf16.mxu1 %v5355_v61  ;;  %v5397_v61 = vpack.c.bf16 %v4449_v58, %v4447_v56  ;;  %v5399_v62 = vpack.c.bf16 %v4454_v60, %v4452_v59  ;;  %v4509_v56 = vld [vmem:[%s8713_s5 + $0x650] sm:$0xff]  ;;  %v4512_v58 = vld [vmem:[%s8713_s5 + $0x668] sm:$0xff]  ;;  %v4514_v59 = vld [vmem:[%s8713_s5 + $0x678] sm:$0xff] }
 0x120   : > { %v4483_v60 = vld [vmem:[%s8713_s5 + $0x630] sm:$0xf] }
 0x122   : > { %5358 = vmatpush1.bf16.msra.mxu1 %v5357_v3  ;;  %v4458_v3 = vld [vmem:[%s8713_s5 + $0x568] sm:$0xff] }
 0x123   : > { %5360 = vmatprep.subr.bf16.mxu1 %v5359_v4  ;;  %v5401_v4 = vpack.c.bf16 %v4453_v1, %v4451_v63  ;;  %v5403_v5 = vpack.c.bf16 %v4458_v3, %v4456_v2  ;;  %v5443_v63 = vpack.c.bf16 %v4514_v59, %v4512_v58  ;;  %v4511_v1 = vld [vmem:[%s8713_s5 + $0x660] sm:$0xff]  ;;  %v4513_v2 = vld [vmem:[%s8713_s5 + $0x670] sm:$0xff]  ;;  %v4516_v3 = vld [vmem:[%s8713_s5 + $0x688] sm:$0xff] }
 0x124   : > { %v4545_v58 = vld [vmem:[%s8713_s5 + $0x770] sm:$0xff]  ;;  %v4548_v59 = vld [vmem:[%s8713_s5 + $0x788] sm:$0xff] }
 0x126   : > { %5362 = vmatpush1.bf16.msra.mxu1 %v5361_v10  ;;  %v4462_v10 = vld [vmem:[%s8713_s5 + $0x588] sm:$0xff] }
 0x127   : > { %5364 = vmatprep.subr.bf16.mxu1 %v5363_v11  ;;  %v5405_v11 = vpack.c.bf16 %v4457_v7, %v4455_v6  ;;  %v5407_v13 = vpack.c.bf16 %v4462_v10, %v4460_v9  ;;  %v4515_v7 = vld [vmem:[%s8713_s5 + $0x680] sm:$0xff]  ;;  %v4517_v9 = vld [vmem:[%s8713_s5 + $0x690] sm:$0xff]  ;;  %v4520_v10 = vld [vmem:[%s8713_s5 + $0x6a8] sm:$0xff] }
 0x12a   : > { %5366 = vmatpush1.bf16.msra.mxu1 %v5365_v17  ;;  %v4466_v17 = vld [vmem:[%s8713_s5 + $0x5a8] sm:$0xff] }
 0x12b   : > { %5368 = vmatprep.subr.bf16.mxu1 %v5367_v18  ;;  %v5409_v18 = vpack.c.bf16 %v4461_v15, %v4459_v14  ;;  %v5411_v19 = vpack.c.bf16 %v4466_v17, %v4464_v16  ;;  %v4519_v15 = vld [vmem:[%s8713_s5 + $0x6a0] sm:$0xff]  ;;  %v4521_v16 = vld [vmem:[%s8713_s5 + $0x6b0] sm:$0xff]  ;;  %v4524_v17 = vld [vmem:[%s8713_s5 + $0x6c8] sm:$0xff] }
 0x12e   : > { %5370 = vmatpush1.bf16.msra.mxu1 %v5369_v23  ;;  %v4470_v23 = vld [vmem:[%s8713_s5 + $0x5c8] sm:$0xff] }
 0x12f   : > { %5372 = vmatprep.subr.bf16.mxu1 %v5371_v24  ;;  %v5413_v24 = vpack.c.bf16 %v4465_v21, %v4463_v20  ;;  %v5415_v26 = vpack.c.bf16 %v4470_v23, %v4468_v22  ;;  %v4523_v21 = vld [vmem:[%s8713_s5 + $0x6c0] sm:$0xff]  ;;  %v4525_v22 = vld [vmem:[%s8713_s5 + $0x6d0] sm:$0xff]  ;;  %v4528_v23 = vld [vmem:[%s8713_s5 + $0x6e8] sm:$0xff] }
 0x132   : > { %5374 = vmatpush1.bf16.msra.mxu1 %v5373_v27  ;;  %v4469_v27 = vld [vmem:[%s8713_s5 + $0x5c0] sm:$0xff] }
 0x133   : > { %4413 = vmatprep.subr.msk.mxu1 %vm823_vm4, %v4412_v28  ;;  %v4472_v28 = vld [vmem:[%s8713_s5 + $0x5d8] sm:$0xff]  ;;  %v5417_v32 = vpack.c.bf16 %v4469_v27, %v4467_v29  ;;  %v4527_v27 = vld [vmem:[%s8713_s5 + $0x6e0] sm:$0xff] }
 0x134   : > { %v5419_v33 = vpack.c.bf16 %v4474_v31, %v4472_v28  ;;  %v4529_v28 = vld [vmem:[%s8713_s5 + $0x6f0] sm:$0xff]  ;;  %v4532_v31 = vld [vmem:[%s8713_s5 + $0x708] sm:$0xff] }
 0x136   : > { %4414 = vmatpush1.msk.msra.mxu1 %vm823_vm4, %v4411_v37  ;;  %v4478_v37 = vld [vmem:[%s8713_s5 + $0x608] sm:$0xff] }
 0x137   : > { %1479 = vmatmul.mubr.f32.vlgmr.msra.gmra.mrb[24].mxu1 %v6525_v57  ;;  %5384 = vmatprep.subr.bf16.mxu1 %v5383_v39  ;;  %v5421_v39 = vpack.c.bf16 %v4473_v35, %v4471_v34  ;;  %v4531_v35 = vld [vmem:[%s8713_s5 + $0x700] sm:$0xff] }
 0x138   : > { %4416 = vmatprep.mubr.msk.f32.mxu1 %vm810_vm5, %v6545_v8  ;;  %5386 = vmatpush1.bf16.msra.mxu1 %v5385_v41  ;;  %v5423_v41 = vpack.c.bf16 %v4478_v37, %v4476_v36  ;;  %v4533_v36 = vld [vmem:[%s8713_s5 + $0x710] sm:$0xff]  ;;  %v4536_v37 = vld [vmem:[%s8713_s5 + $0x728] sm:$0xff] }
 0x139   : > { %5388 = vmatprep.subr.bf16.mxu1 %v5387_v42  ;;  %v4475_v42 = vld [vmem:[%s8713_s5 + $0x5f0] sm:$0xff] }
 0x13a   : > { %v5425_v46 = vpack.c.bf16 %v4477_v43, %v4475_v42  ;;  %v4535_v43 = vld [vmem:[%s8713_s5 + $0x720] sm:$0xff] }
 0x13b   : > { %1485 = vmatmul.mubr.f32.gmra.mrb[26].mxu1 %v6547_v12 }
 0x13c   : > { %4417 = vmatprep.mubr.msk.f32.mxu1 %vm810_vm5, %v6570_v25  ;;  %5390 = vmatpush1.bf16.msra.mxu1 %v5389_v47  ;;  %v5427_v47 = vpack.c.bf16 %v4482_v45, %v4480_v44  ;;  %v4537_v44 = vld [vmem:[%s8713_s5 + $0x730] sm:$0xff]  ;;  %v4540_v45 = vld [vmem:[%s8713_s5 + $0x748] sm:$0xff] }
 0x13d   : > { %5392 = vmatprep.subr.bf16.mxu1 %v5391_v48  ;;  %v4479_v48 = vld [vmem:[%s8713_s5 + $0x610] sm:$0xff] }
 0x13e   : > { %v5429_v50 = vpack.c.bf16 %v4481_v49, %v4479_v48  ;;  %v4539_v49 = vld [vmem:[%s8713_s5 + $0x740] sm:$0xff] }
 0x13f   : > { %1491 = vmatmul.mubr.f32.gmra.mrb[28].mxu1 %v6572_v30 }
 0x140   : > { %4418 = vmatprep.mubr.msk.f32.mxu1 %vm810_vm5, %v6592_v38  ;;  %5394 = vmatpush1.bf16.msra.mxu1 %v5393_v54  ;;  %v4510_v54 = vld [vmem:[%s8713_s5 + $0x658] sm:$0xff] }
 0x141   : > { %5396 = vmatprep.subr.bf16.mxu1 %v5395_v55  ;;  %v4507_v55 = vld [vmem:[%s8713_s5 + $0x640] sm:$0xff] }
 0x143   : > { %1497 = vmatmul.mubr.f32.gmra.mrb[30].mxu1 %v6594_v40 }
 0x144   : > { %5398 = vmatpush1.bf16.msra.mxu1 %v5397_v61  ;;  %4487 = vmatprep.mubr.msk.f32.mxu1 %vm810_vm5, %v6523_v53  ;;  %v5439_v61 = vpack.c.bf16 %v4510_v54, %v4508_v52  ;;  %v4546_v52 = vld [vmem:[%s8713_s5 + $0x778] sm:$0xff] }
 0x145   : > { %5400 = vmatprep.subr.bf16.mxu1 %v5399_v62  ;;  %v5441_v62 = vpack.c.bf16 %v4509_v56, %v4507_v55  ;;  %v4543_v56 = vld [vmem:[%s8713_s5 + $0x760] sm:$0xff] }
 0x148   : > { %5402 = vmatpush1.bf16.msra.mxu1 %v5401_v4  ;;  %v4518_v4 = vld [vmem:[%s8713_s5 + $0x698] sm:$0xff] }
 0x149   : > { %5404 = vmatprep.subr.bf16.mxu1 %v5403_v5  ;;  %v5445_v5 = vpack.c.bf16 %v4513_v2, %v4511_v1  ;;  %v5447_v6 = vpack.c.bf16 %v4518_v4, %v4516_v3  ;;  %v4549_v1 = vld [vmem:[%s8713_s5 + $0x790] sm:$0xff]  ;;  %v4552_v2 = vld [vmem:[%s8713_s5 + $0x7a8] sm:$0xff]  ;;  %v4554_v3 = vld [vmem:[%s8713_s5 + $0x7b8] sm:$0xff] }
 0x14c   : > { %5406 = vmatpush1.bf16.msra.mxu1 %v5405_v11  ;;  %v4522_v11 = vld [vmem:[%s8713_s5 + $0x6b8] sm:$0xff] }
 0x14d   : > { %5408 = vmatprep.subr.bf16.mxu1 %v5407_v13  ;;  %v5449_v13 = vpack.c.bf16 %v4517_v9, %v4515_v7  ;;  %v5451_v14 = vpack.c.bf16 %v4522_v11, %v4520_v10  ;;  %v4553_v7 = vld [vmem:[%s8713_s5 + $0x7b0] sm:$0xff]  ;;  %v4556_v10 = vld [vmem:[%s8713_s5 + $0x7c8] sm:$0xf] }
 0x14e   : > { %v4652_v11 = vld [vmem:[%s8713_s5 + $0x968] sm:$0xff] }
 0x150   : > { %5410 = vmatpush1.bf16.msra.mxu1 %v5409_v18  ;;  %v4526_v18 = vld [vmem:[%s8713_s5 + $0x6d8] sm:$0xff] }
 0x151   : > { %5412 = vmatprep.subr.bf16.mxu1 %v5411_v19  ;;  %v5453_v19 = vpack.c.bf16 %v4521_v16, %v4519_v15  ;;  %v5455_v20 = vpack.c.bf16 %v4526_v18, %v4524_v17  ;;  %v4653_v15 = vld [vmem:[%s8713_s5 + $0x970] sm:$0xff]  ;;  %v4656_v16 = vld [vmem:[%s8713_s5 + $0x988] sm:$0xff]  ;;  %v4658_v17 = vld [vmem:[%s8713_s5 + $0x998] sm:$0xff] }
 0x152   : > { %v4555_v18 = vld [vmem:[%s8713_s5 + $0x7c0] sm:$0xf] }
 0x154   : > { %5414 = vmatpush1.bf16.msra.mxu1 %v5413_v24  ;;  %v4530_v24 = vld [vmem:[%s8713_s5 + $0x6f8] sm:$0xff] }
 0x155   : > { %5416 = vmatprep.subr.bf16.mxu1 %v5415_v26  ;;  %v5457_v26 = vpack.c.bf16 %v4525_v22, %v4523_v21  ;;  %v5459_v29 = vpack.c.bf16 %v4530_v24, %v4528_v23  ;;  %v5555_v21 = vpack.c.bf16 %v4658_v17, %v4656_v16  ;;  %v4655_v22 = vld [vmem:[%s8713_s5 + $0x980] sm:$0xff]  ;;  %v4657_v23 = vld [vmem:[%s8713_s5 + $0x990] sm:$0xff]  ;;  %v4660_v24 = vld [vmem:[%s8713_s5 + $0x9a8] sm:$0xff] }
 0x156   : > { %v4689_v16 = vld [vmem:[%s8713_s5 + $0xa90] sm:$0xff]  ;;  %v4692_v17 = vld [vmem:[%s8713_s5 + $0xaa8] sm:$0xff] }
 0x158   : > { %5418 = vmatpush1.bf16.msra.mxu1 %v5417_v32  ;;  %v4534_v32 = vld [vmem:[%s8713_s5 + $0x718] sm:$0xff] }
 0x159   : > { %5420 = vmatprep.subr.bf16.mxu1 %v5419_v33  ;;  %v5461_v33 = vpack.c.bf16 %v4529_v28, %v4527_v27  ;;  %v5463_v34 = vpack.c.bf16 %v4534_v32, %v4532_v31  ;;  %v4659_v28 = vld [vmem:[%s8713_s5 + $0x9a0] sm:$0xff]  ;;  %v4661_v31 = vld [vmem:[%s8713_s5 + $0x9b0] sm:$0xff]  ;;  %v4664_v32 = vld [vmem:[%s8713_s5 + $0x9c8] sm:$0xff] }
 0x15c   : > { %5422 = vmatpush1.bf16.msra.mxu1 %v5421_v39  ;;  %v4538_v39 = vld [vmem:[%s8713_s5 + $0x738] sm:$0xff] }
 0x15d   : > { %5424 = vmatprep.subr.bf16.mxu1 %v5423_v41  ;;  %v5465_v41 = vpack.c.bf16 %v4533_v36, %v4531_v35  ;;  %v5467_v42 = vpack.c.bf16 %v4538_v39, %v4536_v37  ;;  %v4663_v36 = vld [vmem:[%s8713_s5 + $0x9c0] sm:$0xff]  ;;  %v4665_v37 = vld [vmem:[%s8713_s5 + $0x9d0] sm:$0xff]  ;;  %v4668_v39 = vld [vmem:[%s8713_s5 + $0x9e8] sm:$0xff] }
 0x160   : > { %5426 = vmatpush1.bf16.msra.mxu1 %v5425_v46  ;;  %v4542_v46 = vld [vmem:[%s8713_s5 + $0x758] sm:$0xff] }
 0x161   : > { %5428 = vmatprep.subr.bf16.mxu1 %v5427_v47  ;;  %v5469_v47 = vpack.c.bf16 %v4537_v44, %v4535_v43  ;;  %v5471_v48 = vpack.c.bf16 %v4542_v46, %v4540_v45  ;;  %v4667_v44 = vld [vmem:[%s8713_s5 + $0x9e0] sm:$0xff]  ;;  %v4669_v45 = vld [vmem:[%s8713_s5 + $0x9f0] sm:$0xff]  ;;  %v4672_v46 = vld [vmem:[%s8713_s5 + $0xa08] sm:$0xff] }
 0x164   : > { %5430 = vmatpush1.bf16.msra.mxu1 %v5429_v50  ;;  %v4541_v50 = vld [vmem:[%s8713_s5 + $0x750] sm:$0xff] }
 0x165   : > { %4485 = vmatprep.subr.msk.mxu1 %vm823_vm4, %v4484_v51  ;;  %v4544_v51 = vld [vmem:[%s8713_s5 + $0x768] sm:$0xff]  ;;  %v5473_v54 = vpack.c.bf16 %v4541_v50, %v4539_v49  ;;  %v4671_v50 = vld [vmem:[%s8713_s5 + $0xa00] sm:$0xff] }
 0x166   : > { %v5475_v55 = vpack.c.bf16 %v4546_v52, %v4544_v51  ;;  %v4673_v51 = vld [vmem:[%s8713_s5 + $0xa10] sm:$0xff]  ;;  %v4676_v52 = vld [vmem:[%s8713_s5 + $0xa28] sm:$0xff] }
 0x168   : > { %4486 = vmatpush1.msk.msra.mxu1 %vm823_vm4, %v4483_v60  ;;  %v4550_v60 = vld [vmem:[%s8713_s5 + $0x798] sm:$0xff] }
 0x169   : > { %1787 = vmatmul.mubr.f32.vlgmr.msra.gmra.mrb[32].mxu1 %v6525_v57  ;;  %5440 = vmatprep.subr.bf16.mxu1 %v5439_v61  ;;  %v5477_v61 = vpack.c.bf16 %v4545_v58, %v4543_v56  ;;  %v4675_v58 = vld [vmem:[%s8713_s5 + $0xa20] sm:$0xff] }
 0x16a   : > { %4488 = vmatprep.mubr.msk.f32.mxu1 %vm810_vm5, %v6545_v8  ;;  %5442 = vmatpush1.bf16.msra.mxu1 %v5441_v62  ;;  %v5479_v62 = vpack.c.bf16 %v4550_v60, %v4548_v59  ;;  %v4677_v59 = vld [vmem:[%s8713_s5 + $0xa30] sm:$0xff]  ;;  %v4680_v60 = vld [vmem:[%s8713_s5 + $0xa48] sm:$0xff] }
 0x16b   : > { %5444 = vmatprep.subr.bf16.mxu1 %v5443_v63  ;;  %v4547_v63 = vld [vmem:[%s8713_s5 + $0x780] sm:$0xff] }
 0x16c   : > { %v5481_v4 = vpack.c.bf16 %v4549_v1, %v4547_v63  ;;  %v4679_v1 = vld [vmem:[%s8713_s5 + $0xa40] sm:$0xff] }
 0x16d   : > { %1793 = vmatmul.mubr.f32.gmra.mrb[34].mxu1 %v6547_v12 }
 0x16e   : > { %4489 = vmatprep.mubr.msk.f32.mxu1 %vm810_vm5, %v6570_v25  ;;  %5446 = vmatpush1.bf16.msra.mxu1 %v5445_v5  ;;  %v5483_v5 = vpack.c.bf16 %v4554_v3, %v4552_v2  ;;  %v4681_v2 = vld [vmem:[%s8713_s5 + $0xa50] sm:$0xff]  ;;  %v4684_v3 = vld [vmem:[%s8713_s5 + $0xa68] sm:$0xff] }
 0x16f   : > { %5448 = vmatprep.subr.bf16.mxu1 %v5447_v6  ;;  %v4551_v6 = vld [vmem:[%s8713_s5 + $0x7a0] sm:$0xff] }
 0x170   : > { %v5485_v9 = vpack.c.bf16 %v4553_v7, %v4551_v6  ;;  %v4683_v7 = vld [vmem:[%s8713_s5 + $0xa60] sm:$0xff] }
 0x171   : > { %1799 = vmatmul.mubr.f32.gmra.mrb[36].mxu1 %v6572_v30 }
 0x172   : > { %4490 = vmatprep.mubr.msk.f32.mxu1 %vm810_vm5, %v6592_v38  ;;  %5450 = vmatpush1.bf16.msra.mxu1 %v5449_v13  ;;  %v4654_v13 = vld [vmem:[%s8713_s5 + $0x978] sm:$0xff] }
 0x173   : > { %5452 = vmatprep.subr.bf16.mxu1 %v5451_v14  ;;  %v4651_v14 = vld [vmem:[%s8713_s5 + $0x960] sm:$0xff] }
 0x175   : > { %1805 = vmatmul.mubr.f32.gmra.mrb[38].mxu1 %v6594_v40 }
 0x176   : > { %5454 = vmatpush1.bf16.msra.mxu1 %v5453_v19  ;;  %4559 = vmatprep.mubr.msk.f32.mxu1 %vm810_vm5, %v6523_v53  ;;  %v5551_v19 = vpack.c.bf16 %v4654_v13, %v4652_v11  ;;  %v4690_v11 = vld [vmem:[%s8713_s5 + $0xa98] sm:$0xff] }
 0x177   : > { %5456 = vmatprep.subr.bf16.mxu1 %v5455_v20  ;;  %v5553_v20 = vpack.c.bf16 %v4653_v15, %v4651_v14  ;;  %v4687_v15 = vld [vmem:[%s8713_s5 + $0xa80] sm:$0xff] }
 0x17a   : > { %5458 = vmatpush1.bf16.msra.mxu1 %v5457_v26  ;;  %v4662_v26 = vld [vmem:[%s8713_s5 + $0x9b8] sm:$0xff] }
 0x17b   : > { %5460 = vmatprep.subr.bf16.mxu1 %v5459_v29  ;;  %v5557_v29 = vpack.c.bf16 %v4657_v23, %v4655_v22  ;;  %v5559_v27 = vpack.c.bf16 %v4662_v26, %v4660_v24  ;;  %v4693_v22 = vld [vmem:[%s8713_s5 + $0xab0] sm:$0xff]  ;;  %v4696_v23 = vld [vmem:[%s8713_s5 + $0xac8] sm:$0xff]  ;;  %v4698_v24 = vld [vmem:[%s8713_s5 + $0xad8] sm:$0xff] }
 0x17e   : > { %5462 = vmatpush1.bf16.msra.mxu1 %v5461_v33  ;;  %v4666_v33 = vld [vmem:[%s8713_s5 + $0x9d8] sm:$0xff] }
 0x17f   : > { %5464 = vmatprep.subr.bf16.mxu1 %v5463_v34  ;;  %v5561_v34 = vpack.c.bf16 %v4661_v31, %v4659_v28  ;;  %v5563_v35 = vpack.c.bf16 %v4666_v33, %v4664_v32  ;;  %v4697_v28 = vld [vmem:[%s8713_s5 + $0xad0] sm:$0xff]  ;;  %v4700_v32 = vld [vmem:[%s8713_s5 + $0xae8] sm:$0xf]  ;;  %v4724_v33 = vld [vmem:[%s8713_s5 + $0xaf8] sm:$0xff] }
 0x182   : > { %5466 = vmatpush1.bf16.msra.mxu1 %v5465_v41  ;;  %v4670_v41 = vld [vmem:[%s8713_s5 + $0x9f8] sm:$0xff] }
 0x183   : > { %5468 = vmatprep.subr.bf16.mxu1 %v5467_v42  ;;  %v5565_v42 = vpack.c.bf16 %v4665_v37, %v4663_v36  ;;  %v5567_v43 = vpack.c.bf16 %v4670_v41, %v4668_v39  ;;  %v4725_v36 = vld [vmem:[%s8713_s5 + $0xb00] sm:$0xff]  ;;  %v4728_v37 = vld [vmem:[%s8713_s5 + $0xb18] sm:$0xff]  ;;  %v4730_v39 = vld [vmem:[%s8713_s5 + $0xb28] sm:$0xff] }
 0x184   : > { %v4699_v41 = vld [vmem:[%s8713_s5 + $0xae0] sm:$0xf] }
 0x186   : > { %5470 = vmatpush1.bf16.msra.mxu1 %v5469_v47  ;;  %v4674_v47 = vld [vmem:[%s8713_s5 + $0xa18] sm:$0xff] }
 0x187   : > { %5472 = vmatprep.subr.bf16.mxu1 %v5471_v48  ;;  %v5569_v48 = vpack.c.bf16 %v4669_v45, %v4667_v44  ;;  %v5571_v49 = vpack.c.bf16 %v4674_v47, %v4672_v46  ;;  %v5611_v44 = vpack.c.bf16 %v4730_v39, %v4728_v37  ;;  %v4727_v45 = vld [vmem:[%s8713_s5 + $0xb10] sm:$0xff]  ;;  %v4729_v46 = vld [vmem:[%s8713_s5 + $0xb20] sm:$0xff]  ;;  %v4732_v47 = vld [vmem:[%s8713_s5 + $0xb38] sm:$0xff] }
 0x18a   : > { %5474 = vmatpush1.bf16.msra.mxu1 %v5473_v54  ;;  %v4678_v54 = vld [vmem:[%s8713_s5 + $0xa38] sm:$0xff] }
 0x18b   : > { %5476 = vmatprep.subr.bf16.mxu1 %v5475_v55  ;;  %v5573_v55 = vpack.c.bf16 %v4673_v51, %v4671_v50  ;;  %v5575_v56 = vpack.c.bf16 %v4678_v54, %v4676_v52  ;;  %v4731_v51 = vld [vmem:[%s8713_s5 + $0xb30] sm:$0xff]  ;;  %v4733_v52 = vld [vmem:[%s8713_s5 + $0xb40] sm:$0xff]  ;;  %v4736_v54 = vld [vmem:[%s8713_s5 + $0xb58] sm:$0xff] }
 0x18e   : > { %5478 = vmatpush1.bf16.msra.mxu1 %v5477_v61  ;;  %v4682_v61 = vld [vmem:[%s8713_s5 + $0xa58] sm:$0xff] }
 0x18f   : > { %5480 = vmatprep.subr.bf16.mxu1 %v5479_v62  ;;  %v5577_v62 = vpack.c.bf16 %v4677_v59, %v4675_v58  ;;  %v5579_v63 = vpack.c.bf16 %v4682_v61, %v4680_v60  ;;  %v4735_v59 = vld [vmem:[%s8713_s5 + $0xb50] sm:$0xff]  ;;  %v4737_v60 = vld [vmem:[%s8713_s5 + $0xb60] sm:$0xff]  ;;  %v4740_v61 = vld [vmem:[%s8713_s5 + $0xb78] sm:$0xff] }
 0x192   : > { %5482 = vmatpush1.bf16.msra.mxu1 %v5481_v4  ;;  %v4686_v4 = vld [vmem:[%s8713_s5 + $0xa78] sm:$0xff] }
 0x193   : > { %5484 = vmatprep.subr.bf16.mxu1 %v5483_v5  ;;  %v5581_v5 = vpack.c.bf16 %v4681_v2, %v4679_v1  ;;  %v5583_v6 = vpack.c.bf16 %v4686_v4, %v4684_v3  ;;  %v4739_v2 = vld [vmem:[%s8713_s5 + $0xb70] sm:$0xff]  ;;  %v4741_v3 = vld [vmem:[%s8713_s5 + $0xb80] sm:$0xff] }
 0x196   : > { %5486 = vmatpush1.bf16.msra.mxu1 %v5485_v9  ;;  %v4685_v9 = vld [vmem:[%s8713_s5 + $0xa70] sm:$0xff] }
 0x197   : > { %4557 = vmatprep.subr.msk.mxu1 %vm823_vm4, %v4556_v10  ;;  %v4688_v10 = vld [vmem:[%s8713_s5 + $0xa88] sm:$0xff]  ;;  %v5585_v13 = vpack.c.bf16 %v4685_v9, %v4683_v7 }
 0x198   : > { %v5587_v14 = vpack.c.bf16 %v4690_v11, %v4688_v10  ;;  %v4746_v7 = vld [vmem:[%s8713_s5 + $0xba8] sm:$0xff]  ;;  %v5625_v11 = vpack.c.bf16 %v4741_v3, %v4739_v2  ;;  %v4759_v2 = vld [vmem:[%s8713_s5 + $0xc10] sm:$0xff]  ;;  %v4761_v3 = vld [vmem:[%s8713_s5 + $0xc20] sm:$0xff] }
 0x19a   : > { %4558 = vmatpush1.msk.msra.mxu1 %vm823_vm4, %v4555_v18  ;;  %v4694_v18 = vld [vmem:[%s8713_s5 + $0xab8] sm:$0xff] }
 0x19b   : > { %2095 = vmatmul.mubr.f32.vlgmr.msra.gmra.mrb[40].mxu1 %v6525_v57  ;;  %5552 = vmatprep.subr.bf16.mxu1 %v5551_v19  ;;  %v5589_v19 = vpack.c.bf16 %v4689_v16, %v4687_v15  ;;  %v4745_v15 = vld [vmem:[%s8713_s5 + $0xba0] sm:$0xff] }
 0x19c   : > { %4560 = vmatprep.mubr.msk.f32.mxu1 %vm810_vm5, %v6545_v8  ;;  %5554 = vmatpush1.bf16.msra.mxu1 %v5553_v20  ;;  %v5591_v20 = vpack.c.bf16 %v4694_v18, %v4692_v17  ;;  %v4748_v18 = vld [vmem:[%s8713_s5 + $0xbb8] sm:$0xff] }
 0x19d   : > { %5556 = vmatprep.subr.bf16.mxu1 %v5555_v21  ;;  %v4691_v21 = vld [vmem:[%s8713_s5 + $0xaa0] sm:$0xff] }
 0x19e   : > { %v5593_v26 = vpack.c.bf16 %v4693_v22, %v4691_v21 }
 0x19f   : > { %2101 = vmatmul.mubr.f32.gmra.mrb[42].mxu1 %v6547_v12 }
 0x1a0   : > { %4561 = vmatprep.mubr.msk.f32.mxu1 %vm810_vm5, %v6570_v25  ;;  %5558 = vmatpush1.bf16.msra.mxu1 %v5557_v29  ;;  %v5595_v29 = vpack.c.bf16 %v4698_v24, %v4696_v23 }
 0x1a1   : > { %5560 = vmatprep.subr.bf16.mxu1 %v5559_v27  ;;  %v4695_v27 = vld [vmem:[%s8713_s5 + $0xac0] sm:$0xff] }
 0x1a2   : > { %v5597_v31 = vpack.c.bf16 %v4697_v28, %v4695_v27  ;;  %v4747_v28 = vld [vmem:[%s8713_s5 + $0xbb0] sm:$0xff] }
 0x1a3   : > { %2107 = vmatmul.mubr.f32.gmra.mrb[44].mxu1 %v6572_v30 }
 0x1a4   : > { %4562 = vmatprep.mubr.msk.f32.mxu1 %vm810_vm5, %v6592_v38  ;;  %5562 = vmatpush1.bf16.msra.mxu1 %v5561_v34  ;;  %v4726_v34 = vld [vmem:[%s8713_s5 + $0xb08] sm:$0xff] }
 0x1a5   : > { %5564 = vmatprep.subr.bf16.mxu1 %v5563_v35  ;;  %v4723_v35 = vld [vmem:[%s8713_s5 + $0xaf0] sm:$0xff] }
 0x1a7   : > { %2113 = vmatmul.mubr.f32.gmra.mrb[46].mxu1 %v6594_v40 }
 0x1a8   : > { %5566 = vmatpush1.bf16.msra.mxu1 %v5565_v42  ;;  %4703 = vmatprep.mubr.msk.f32.mxu1 %vm810_vm5, %v6523_v53  ;;  %v5607_v42 = vpack.c.bf16 %v4726_v34, %v4724_v33  ;;  %v4752_v34 = vld [vmem:[%s8713_s5 + $0xbd8] sm:$0xff] }
 0x1a9   : > { %5568 = vmatprep.subr.bf16.mxu1 %v5567_v43  ;;  %v5609_v43 = vpack.c.bf16 %v4725_v36, %v4723_v35  ;;  %v4754_v35 = vld [vmem:[%s8713_s5 + $0xbe8] sm:$0xff] }
 0x1ac   : > { %5570 = vmatpush1.bf16.msra.mxu1 %v5569_v48  ;;  %v4734_v48 = vld [vmem:[%s8713_s5 + $0xb48] sm:$0xff] }
 0x1ad   : > { %5572 = vmatprep.subr.bf16.mxu1 %v5571_v49  ;;  %v5613_v49 = vpack.c.bf16 %v4729_v46, %v4727_v45  ;;  %v5615_v50 = vpack.c.bf16 %v4734_v48, %v4732_v47  ;;  %v4756_v46 = vld [vmem:[%s8713_s5 + $0xbf8] sm:$0xff]  ;;  %v4758_v47 = vld [vmem:[%s8713_s5 + $0xc08] sm:$0xff] }
 0x1b0   : > { %5574 = vmatpush1.bf16.msra.mxu1 %v5573_v55  ;;  %v4738_v55 = vld [vmem:[%s8713_s5 + $0xb68] sm:$0xff] }
 0x1b1   : > { %5576 = vmatprep.subr.bf16.mxu1 %v5575_v56  ;;  %v5617_v56 = vpack.c.bf16 %v4733_v52, %v4731_v51  ;;  %v5619_v58 = vpack.c.bf16 %v4738_v55, %v4736_v54 }
 0x1b4   : > { %5578 = vmatpush1.bf16.msra.mxu1 %v5577_v62  ;;  %v4742_v62 = vld [vmem:[%s8713_s5 + $0xb88] sm:$0xff] }
 0x1b5   : > { %5580 = vmatprep.subr.bf16.mxu1 %v5579_v63  ;;  %v5621_v63 = vpack.c.bf16 %v4737_v60, %v4735_v59  ;;  %v5623_v1 = vpack.c.bf16 %v4742_v62, %v4740_v61  ;;  %v4757_v59 = vld [vmem:[%s8713_s5 + $0xc00] sm:$0xff]  ;;  %v4760_v60 = vld [vmem:[%s8713_s5 + $0xc18] sm:$0xff]  ;;  %v4762_v61 = vld [vmem:[%s8713_s5 + $0xc28] sm:$0xff] }
 0x1b6   : > { %v4339_v62 = vld [vmem:[%s8711_s3 + $0x40] sm:$0xff] }
 0x1b8   : > { %5582 = vmatpush1.bf16.msra.mxu1 %v5581_v5 }
 0x1b9   : > { %5584 = vmatprep.subr.bf16.mxu1 %v5583_v6  ;;  %v4744_v6 = vld [vmem:[%s8713_s5 + $0xb98] sm:$0xff] }
 0x1bc   : > { %5586 = vmatpush1.bf16.msra.mxu1 %v5585_v13  ;;  %v5627_v13 = vpack.c.bf16 %v4746_v7, %v4744_v6  ;;  %v4340_v6 = vld [vmem:[%s8711_s3 + $0x48] sm:$0xff]  ;;  %v5645_v7 = vpack.c.bf16 %v4761_v3, %v4759_v2  ;;  %v4818_v3 = vld [vmem:[%s8713_s5 + $0xd38] sm:$0xff] }
 0x1bd   : > { %5588 = vmatprep.subr.bf16.mxu1 %v5587_v14  ;;  %v4743_v14 = vld [vmem:[%s8713_s5 + $0xb90] sm:$0xff]  ;;  %v4816_v2 = vld [vmem:[%s8713_s5 + $0xd28] sm:$0xff] }
 0x1c0   : > { %5590 = vmatpush1.bf16.msra.mxu1 %v5589_v19  ;;  %v4750_v19 = vld [vmem:[%s8713_s5 + $0xbc8] sm:$0xff] }
 0x1c1   : > { %5592 = vmatprep.subr.bf16.mxu1 %v5591_v20  ;;  %v5631_v27 = vpack.c.bf16 %v4750_v19, %v4748_v18  ;;  %v4767_v18 = vld [vmem:[%s8713_s5 + $0xc50] sm:$0xff]  ;;  %v4769_v19 = vld [vmem:[%s8713_s5 + $0xc60] sm:$0xff] }
 0x1c4   : > { %5594 = vmatpush1.bf16.msra.mxu1 %v5593_v26 }
 0x1c5   : > { %5596 = vmatprep.subr.bf16.mxu1 %v5595_v29  ;;  %v5629_v29 = vpack.c.bf16 %v4745_v15, %v4743_v14  ;;  %v4770_v14 = vld [vmem:[%s8713_s5 + $0xc68] sm:$0xff]  ;;  %v4341_v15 = vld [vmem:[%s8711_s3 + $0x50] sm:$0xff] }
 0x1c8   : > { %5598 = vmatpush1.bf16.msra.mxu1 %v5597_v31  ;;  %v4749_v31 = vld [vmem:[%s8713_s5 + $0xbc0] sm:$0xff] }
 0x1c9   : > { %4701 = vmatprep.subr.msk.mxu1 %vm823_vm4, %v4700_v32  ;;  %v5633_v39 = vpack.c.bf16 %v4749_v31, %v4747_v28  ;;  %v4800_v28 = vld [vmem:[%s8713_s5 + $0xca8] sm:$0xff]  ;;  %v4802_v31 = vld [vmem:[%s8713_s5 + $0xcb8] sm:$0xff] }
 0x1cc   : > { %4702 = vmatpush1.msk.msra.mxu1 %vm823_vm4, %v4699_v41  ;;  %v5635_v41 = vpack.c.bf16 %v4754_v35, %v4752_v34  ;;  %v5667_v35 = vpack.c.bf16 %v4802_v31, %v4800_v28  ;;  %v4823_v31 = vld [vmem:[%s8713_s5 + $0xd60] sm:$0xff] }
 0x1cd   : > { %2711 = vmatmul.mubr.f32.vlgmr.msra.gmra.mrb[48].mxu1 %v6525_v57  ;;  %5608 = vmatprep.subr.bf16.mxu1 %v5607_v42  ;;  %v4751_v42 = vld [vmem:[%s8713_s5 + $0xbd0] sm:$0xff] }
 0x1ce   : > { %4704 = vmatprep.mubr.msk.f32.mxu1 %vm810_vm5, %v6545_v8  ;;  %5610 = vmatpush1.bf16.msra.mxu1 %v5609_v43  ;;  %v4753_v43 = vld [vmem:[%s8713_s5 + $0xbe0] sm:$0xff] }
 0x1cf   : > { %5612 = vmatprep.subr.bf16.mxu1 %v5611_v44  ;;  %v5637_v55 = vpack.c.bf16 %v4753_v43, %v4751_v42  ;;  %v4806_v42 = vld [vmem:[%s8713_s5 + $0xcd8] sm:$0xff] }
 0x1d1   : > { %2717 = vmatmul.mubr.f32.gmra.mrb[50].mxu1 %v6547_v12 }
 0x1d2   : > { %4705 = vmatprep.mubr.msk.f32.mxu1 %vm810_vm5, %v6570_v25  ;;  %5614 = vmatpush1.bf16.msra.mxu1 %v5613_v49 }
 0x1d3   : > { %5616 = vmatprep.subr.bf16.mxu1 %v5615_v50 }
 0x1d5   : > { %2723 = vmatmul.mubr.f32.gmra.mrb[52].mxu1 %v6572_v30 }
 0x1d6   : > { %4706 = vmatprep.mubr.msk.f32.mxu1 %vm810_vm5, %v6592_v38  ;;  %5618 = vmatpush1.bf16.msra.mxu1 %v5617_v56  ;;  %v5639_v56 = vpack.c.bf16 %v4758_v47, %v4756_v46  ;;  %v4805_v46 = vld [vmem:[%s8713_s5 + $0xcd0] sm:$0xff] }
 0x1d7   : > { %5620 = vmatprep.subr.bf16.mxu1 %v5619_v58  ;;  %v4755_v58 = vld [vmem:[%s8713_s5 + $0xbf0] sm:$0xff] }
 0x1d8   : > { %v7264_v4 = vpop.f32.mrb[16].mxu0  ;;  %v1050_v5 = vpop.f32.mrb[16].mxu1  ;;  %v4345_v47 = vld [vmem:[%s8711_s3 + $0x70] sm:$0xff] }
 0x1d9   : > { %2729 = vmatmul.mubr.f32.gmra.mrb[54].mxu1 %v6594_v40  ;;  %v898_v9 = vpop.f32.mrb[17].mxu0  ;;  %v1052_v10 = vpop.f32.mrb[17].mxu1 }
 0x1da   : > { %5622 = vmatpush1.bf16.msra.mxu1 %v5621_v63  ;;  %4775 = vmatprep.mubr.msk.f32.mxu1 %vm810_vm5, %v6523_v53  ;;  %v5641_v63 = vpack.c.bf16 %v4757_v59, %v4755_v58  ;;  %v4814_v58 = vld [vmem:[%s8713_s5 + $0xd18] sm:$0xff] }
 0x1db   : > { %5624 = vmatprep.subr.bf16.mxu1 %v5623_v1  ;;  %v5643_v1 = vpack.c.bf16 %v4762_v61, %v4760_v60  ;;  %v4811_v61 = vld [vmem:[%s8713_s5 + $0xd00] sm:$0xff] }
 0x1dc   : > { %v902_v16 = vpop.f32.mrb[18].mxu0  ;;  %v1056_v17 = vpop.f32.mrb[18].mxu1 }
 0x1dd   : > { %v5321_v20 = vpack.c.bf16 %v902_v16, %v7264_v4  ;;  %v5313_v21 = vpack.c.bf16 %v1056_v17, %v1050_v5  ;;  %v904_v22 = vpop.f32.mrb[19].mxu0  ;;  %v1058_v23 = vpop.f32.mrb[19].mxu1  ;;  %v4764_v4 = vld [vmem:[%s8713_s5 + $0xc38] sm:$0xff]  ;;  %v4766_v5 = vld [vmem:[%s8713_s5 + $0xc48] sm:$0xff] }
 0x1de   : > { %v5319_v24 = vpack.c.bf16 %v904_v22, %v898_v9  ;;  %v5311_v26 = vpack.c.bf16 %v1058_v23, %v1052_v10  ;;  %5626 = vmatpush1.bf16.msra.mxu1 %v5625_v11  ;;  %v5647_v9 = vpack.c.bf16 %v4766_v5, %v4764_v4  ;;  %v4763_v10 = vld [vmem:[%s8713_s5 + $0xc30] sm:$0xff]  ;;  %v4765_v11 = vld [vmem:[%s8713_s5 + $0xc40] sm:$0xff]  ;;  %v4772_v22 = vld [vmem:[%s8713_s5 + $0xc78] sm:$0xf] }
 0x1df   : > { %5628 = vmatprep.subr.bf16.mxu1 %v5627_v13  ;;  %v4768_v13 = vld [vmem:[%s8713_s5 + $0xc58] sm:$0xff]  ;;  %v5649_v16 = vpack.c.bf16 %v4765_v11, %v4763_v10  ;;  %v4796_v23 = vld [vmem:[%s8713_s5 + $0xc88] sm:$0xff] }
 0x1e0   : > { %v908_v32 = vpop.f32.mrb[20].mxu0  ;;  %v1062_v33 = vpop.f32.mrb[20].mxu1  ;;  %5312 = vmatprep.subr.bf16.mxu0 %v5311_v26  ;;  %v5651_v17 = vpack.c.bf16 %v4770_v14, %v4768_v13  ;;  %v4795_v26 = vld [vmem:[%s8713_s5 + $0xc80] sm:$0xff]  ;;  %v4820_v11 = vld [vmem:[%s8713_s5 + $0xd48] sm:$0xff]  ;;  %v4822_v13 = vld [vmem:[%s8713_s5 + $0xd58] sm:$0xff] }
 0x1e1   : > { %v910_v36 = vpop.f32.mrb[21].mxu0  ;;  %v1064_v37 = vpop.f32.mrb[21].mxu1  ;;  %5314 = vmatpush1.bf16.msra.mxu0 %v5313_v21  ;;  %v5653_v21 = vpack.c.bf16 %v4769_v19, %v4767_v18  ;;  %v920_v14 = vld [vmem:[%s8711_s3 + $0x8] sm:$0xff]  ;;  %v5687_v19 = vpack.c.bf16 %v4822_v13, %v4820_v11  ;;  %v4843_v11 = vld [vmem:[%s8713_s5 + $0xe00] sm:$0xf] }
 0x1e2   : > { %5630 = vmatpush1.bf16.msra.mxu1 %v5629_v29  ;;  %v4797_v29 = vld [vmem:[%s8713_s5 + $0xc90] sm:$0xff]  ;;  %v4420_v13 = vld [vmem:[%s8711_s3 + $0x88] sm:$0xff] }
 0x1e3   : > { %5632 = vmatprep.subr.bf16.mxu1 %v5631_v27  ;;  %v4343_v27 = vld [vmem:[%s8711_s3 + $0x60] sm:$0xff]  ;;  %v5665_v34 = vpack.c.bf16 %v4797_v29, %v4795_v26  ;;  %v921_v26 = vld [vmem:[%s8711_s3 + $0x10] sm:$0xff] }
 0x1e4   : > { %v914_v44 = vpop.f32.mrb[22].mxu0  ;;  %v1068_v45 = vpop.f32.mrb[22].mxu1 }
 0x1e5   : > { %v5325_v48 = vpack.c.bf16 %v914_v44, %v908_v32  ;;  %v5317_v49 = vpack.c.bf16 %v1068_v45, %v1062_v33  ;;  %v916_v50 = vpop.f32.mrb[23].mxu0  ;;  %v1070_v51 = vpop.f32.mrb[23].mxu1  ;;  %v4771_v32 = vld [vmem:[%s8713_s5 + $0xc70] sm:$0xf]  ;;  %v4803_v45 = vld [vmem:[%s8713_s5 + $0xcc0] sm:$0xff] }
 0x1e6   : > { %v5323_v52 = vpack.c.bf16 %v916_v50, %v910_v36  ;;  %v5315_v54 = vpack.c.bf16 %v1070_v51, %v1064_v37  ;;  %5634 = vmatpush1.bf16.msra.mxu1 %v5633_v39  ;;  %v4799_v36 = vld [vmem:[%s8713_s5 + $0xca0] sm:$0xff]  ;;  %v4801_v37 = vld [vmem:[%s8713_s5 + $0xcb0] sm:$0xff]  ;;  %v4344_v39 = vld [vmem:[%s8711_s3 + $0x68] sm:$0xff]  ;;  %v5673_v50 = vpack.c.bf16 %v4805_v46, %v4803_v45 }
 0x1e7   : > { %5636 = vmatprep.subr.bf16.mxu1 %v5635_v41  ;;  %v4804_v41 = vld [vmem:[%s8713_s5 + $0xcc8] sm:$0xff]  ;;  %v5669_v43 = vpack.c.bf16 %v4801_v37, %v4799_v36  ;;  %v922_v36 = vld [vmem:[%s8711_s3 + $0x18] sm:$0xff]  ;;  %v4829_v45 = vld [vmem:[%s8713_s5 + $0xd90] sm:$0xff] }
 0x1e8   : > { %5316 = vmatprep.subr.bf16.mxu0 %v5315_v54  ;;  %v5671_v44 = vpack.c.bf16 %v4806_v42, %v4804_v41  ;;  %v4809_v54 = vld [vmem:[%s8713_s5 + $0xcf0] sm:$0xff]  ;;  %v4832_v46 = vld [vmem:[%s8713_s5 + $0xda8] sm:$0xff] }
 0x1e9   : > { %5318 = vmatpush1.bf16.msra.mxu0 %v5317_v49  ;;  %v4810_v49 = vld [vmem:[%s8713_s5 + $0xcf8] sm:$0xff] }
 0x1ea   : > { %5638 = vmatpush1.bf16.msra.mxu1 %v5637_v55  ;;  %5320 = vmatprep.subr.bf16.mxu0 %v5319_v24  ;;  %v4798_v24 = vld [vmem:[%s8713_s5 + $0xc98] sm:$0xff] }
 0x1eb   : > { %5640 = vmatprep.subr.bf16.mxu1 %v5639_v56  ;;  %v5663_v33 = vpack.c.bf16 %v4798_v24, %v4796_v23  ;;  %v4346_v55 = vld [vmem:[%s8711_s3 + $0x78] sm:$0xff]  ;;  %v4812_v56 = vld [vmem:[%s8713_s5 + $0xd08] sm:$0xff] }
 0x1ec   : > { %4347 = vmatmul.mubr.msk.f32.vlgmr.msra.gmra.mrb[24].mxu0 %vm1082_vm6, %v4339_v62  ;;  %v5679_v60 = vpack.c.bf16 %v4814_v58, %v4812_v56  ;;  %v4813_v62 = vld [vmem:[%s8713_s5 + $0xd10] sm:$0xff]  ;;  %v4824_v23 = vld [vmem:[%s8713_s5 + $0xd68] sm:$0xff]  ;;  %v4826_v24 = vld [vmem:[%s8713_s5 + $0xd78] sm:$0xff] }
 0x1ed   : > { %5322 = vmatpush1.bf16.msra.mxu0 %v5321_v20  ;;  %1177 = vmatprep.mubr.f32.mxu0 %v5996_v0  ;;  %v4342_v20 = vld [vmem:[%s8711_s3 + $0x58] sm:$0xff]  ;;  %v5681_v5 = vpack.c.bf16 %v4813_v62, %v4811_v61  ;;  %v5691_v28 = vpack.c.bf16 %v4826_v24, %v4824_v23  ;;  %v924_v56 = vld [vmem:[%s8711_s3 + $0x28] sm:$0xff]  ;;  %v4837_v61 = vld [vmem:[%s8713_s5 + $0xdd0] sm:$0xff] }
 0x1ee   : > { %5642 = vmatpush1.bf16.msra.mxu1 %v5641_v63  ;;  %5324 = vmatprep.subr.bf16.mxu0 %v5323_v52  ;;  %v4807_v52 = vld [vmem:[%s8713_s5 + $0xce0] sm:$0xff]  ;;  %v4840_v62 = vld [vmem:[%s8713_s5 + $0xde8] sm:$0xff]  ;;  %v4425_v24 = vld [vmem:[%s8711_s3 + $0xb0] sm:$0xff] }
 0x1ef   : > { %5644 = vmatprep.subr.bf16.mxu1 %v5643_v1  ;;  %v5677_v59 = vpack.c.bf16 %v4809_v54, %v4807_v52  ;;  %v919_v1 = vld [vmem:[%s8711_s3] sm:$0xff]  ;;  %v4833_v52 = vld [vmem:[%s8713_s5 + $0xdb0] sm:$0xff]  ;;  %v4836_v54 = vld [vmem:[%s8713_s5 + $0xdc8] sm:$0xff] }
 0x1f0   : > { %4348 = vmatmul.mubr.msk.f32.gmra.mrb[26].mxu0 %vm1082_vm6, %v4340_v6  ;;  %v5683_v6 = vpack.c.bf16 %v4818_v3, %v4816_v2 }
 0x1f1   : > { %5326 = vmatpush1.bf16.msra.mxu0 %v5325_v48  ;;  %1183 = vmatprep.mubr.f32.mxu0 %v5996_v0  ;;  %v4808_v48 = vld [vmem:[%s8713_s5 + $0xce8] sm:$0xff] }
 0x1f2   : > { %5646 = vmatpush1.bf16.msra.mxu1 %v5645_v7  ;;  %v5675_v51 = vpack.c.bf16 %v4810_v49, %v4808_v48  ;;  %v4815_v7 = vld [vmem:[%s8713_s5 + $0xd20] sm:$0xff] }
 0x1f3   : > { %5648 = vmatprep.subr.bf16.mxu1 %v5647_v9  ;;  %v4817_v9 = vld [vmem:[%s8713_s5 + $0xd30] sm:$0xff]  ;;  %v923_v48 = vld [vmem:[%s8711_s3 + $0x20] sm:$0xff] }
 0x1f4   : > { %4349 = vmatmul.mubr.msk.f32.gmra.mrb[28].mxu0 %vm1082_vm6, %v4341_v15  ;;  %v5685_v18 = vpack.c.bf16 %v4817_v9, %v4815_v7  ;;  %v4844_v9 = vld [vmem:[%s8713_s5 + $0xe08] sm:$0xf] }
 0x1f5   : > { %1189 = vmatprep.mubr.f32.mxu0 %v5996_v0 }
 0x1f6   : > { %5650 = vmatpush1.bf16.msra.mxu1 %v5649_v16 }
 0x1f7   : > { %5652 = vmatprep.subr.bf16.mxu1 %v5651_v17 }
 0x1f8   : > { %4350 = vmatmul.mubr.msk.f32.gmra.mrb[30].mxu0 %vm1082_vm6, %v4342_v20  ;;  %v4819_v20 = vld [vmem:[%s8713_s5 + $0xd40] sm:$0xff] }
 0x1f9   : > { %1195 = vmatprep.mubr.f32.mxu0 %v5996_v0 }
 0x1fa   : > { %5654 = vmatpush1.bf16.msra.mxu1 %v5653_v21  ;;  %v4821_v21 = vld [vmem:[%s8713_s5 + $0xd50] sm:$0xff] }
 0x1fb   : > { %4773 = vmatprep.subr.msk.mxu1 %vm823_vm4, %v4772_v22 }
 0x1fc   : > { %4351 = vmatmul.mubr.msk.f32.gmra.mrb[32].mxu0 %vm1082_vm6, %v4343_v27  ;;  %v5689_v27 = vpack.c.bf16 %v4821_v21, %v4819_v20 }
 0x1fd   : > { %1201 = vmatprep.mubr.f32.mxu0 %v5996_v0 }
 0x1fe   : > { %4774 = vmatpush1.msk.msra.mxu1 %vm823_vm4, %v4771_v32  ;;  %v4825_v32 = vld [vmem:[%s8713_s5 + $0xd70] sm:$0xff] }
 0x1ff   : > { %3019 = vmatmul.mubr.f32.vlgmr.msra.gmra.mrb[56].mxu1 %v6525_v57  ;;  %5664 = vmatprep.subr.bf16.mxu1 %v5663_v33  ;;  %v5693_v42 = vpack.c.bf16 %v4825_v32, %v4823_v31 }
 0x200   : > { %4776 = vmatprep.mubr.msk.f32.mxu1 %vm810_vm5, %v6545_v8  ;;  %5666 = vmatpush1.bf16.msra.mxu1 %v5665_v34  ;;  %v4828_v34 = vld [vmem:[%s8713_s5 + $0xd88] sm:$0xff] }
 0x201   : > { %5668 = vmatprep.subr.bf16.mxu1 %v5667_v35  ;;  %4352 = vmatmul.mubr.msk.f32.gmra.mrb[34].mxu0 %vm1082_vm6, %v4344_v39  ;;  %v4830_v35 = vld [vmem:[%s8713_s5 + $0xd98] sm:$0xff] }
 0x202   : > { %1207 = vmatprep.mubr.f32.mxu0 %v5996_v0 }
 0x203   : > { %3025 = vmatmul.mubr.f32.gmra.mrb[58].mxu1 %v6547_v12 }
 0x204   : > { %4777 = vmatprep.mubr.msk.f32.mxu1 %vm810_vm5, %v6570_v25  ;;  %5670 = vmatpush1.bf16.msra.mxu1 %v5669_v43  ;;  %v5695_v43 = vpack.c.bf16 %v4830_v35, %v4828_v34  ;;  %v4491_v34 = vld [vmem:[%s8711_s3 + $0xc0] sm:$0xff]  ;;  %v4492_v35 = vld [vmem:[%s8711_s3 + $0xc8] sm:$0xff] }
 0x205   : > { %5672 = vmatprep.subr.bf16.mxu1 %v5671_v44  ;;  %4353 = vmatmul.mubr.msk.f32.gmra.mrb[36].mxu0 %vm1082_vm6, %v4345_v47  ;;  %v4827_v44 = vld [vmem:[%s8713_s5 + $0xd80] sm:$0xff]  ;;  %v4834_v47 = vld [vmem:[%s8713_s5 + $0xdb8] sm:$0xff] }
 0x206   : > { %1213 = vmatprep.mubr.f32.mxu0 %v5996_v0  ;;  %v5697_v49 = vpack.c.bf16 %v4829_v45, %v4827_v44 }
 0x207   : > { %3031 = vmatmul.mubr.f32.gmra.mrb[60].mxu1 %v6572_v30 }
 0x208   : > { %4778 = vmatprep.mubr.msk.f32.mxu1 %vm810_vm5, %v6592_v38  ;;  %5674 = vmatpush1.bf16.msra.mxu1 %v5673_v50  ;;  %v5699_v50 = vpack.c.bf16 %v4834_v47, %v4832_v46 }
 0x209   : > { %5676 = vmatprep.subr.bf16.mxu1 %v5675_v51  ;;  %4354 = vmatmul.mubr.msk.f32.gmra.mrb[38].mxu0 %vm1082_vm6, %v4346_v55  ;;  %v4831_v51 = vld [vmem:[%s8713_s5 + $0xda0] sm:$0xff]  ;;  %v4838_v55 = vld [vmem:[%s8713_s5 + $0xdd8] sm:$0xff] }
 0x20a   : > { %v1480_v63 = vpop.f32.mrb[24].mxu1  ;;  %1308 = vmatprep.mubr.f32.mxu0 %v5996_v0  ;;  %v5701_v58 = vpack.c.bf16 %v4833_v52, %v4831_v51  ;;  %v4580_v52 = vld [vmem:[%s8713_s5 + $0x7d8] sm:$0xff] }
 0x20b   : > { %v1482_v4 = vpop.f32.mrb[25].mxu1  ;;  %3037 = vmatmul.mubr.f32.gmra.mrb[62].mxu1 %v6594_v40 }
 0x20c   : > { %5678 = vmatpush1.bf16.msra.mxu1 %v5677_v59  ;;  %4847 = vmatprep.mubr.msk.f32.mxu1 %vm810_vm5, %v6523_v53  ;;  %v5703_v59 = vpack.c.bf16 %v4838_v55, %v4836_v54  ;;  %v4582_v54 = vld [vmem:[%s8713_s5 + $0x7e8] sm:$0xff] }
 0x20d   : > { %5680 = vmatprep.subr.bf16.mxu1 %v5679_v60  ;;  %4355 = vmatmul.mubr.msk.f32.vlgmr.msra.gmra.mrb[24].mxu0 %vm1082_vm6, %v919_v1  ;;  %v4835_v60 = vld [vmem:[%s8713_s5 + $0xdc0] sm:$0xff]  ;;  %v925_v1 = vld [vmem:[%s8711_s3 + $0x30] sm:$0xff] }
 0x20e   : > { %v1486_v10 = vpop.f32.mrb[26].mxu1  ;;  %1314 = vmatprep.mubr.f32.mxu0 %v5996_v0  ;;  %v5705_v2 = vpack.c.bf16 %v4837_v61, %v4835_v60  ;;  %v5495_v60 = vpack.c.bf16 %v4582_v54, %v4580_v52  ;;  %v4579_v61 = vld [vmem:[%s8713_s5 + $0x7d0] sm:$0xff] }
 0x20f   : > { %v5377_v15 = vpack.c.bf16 %v1486_v10, %v1480_v63  ;;  %v1488_v16 = vpop.f32.mrb[27].mxu1  ;;  %v4842_v63 = vld [vmem:[%s8713_s5 + $0xdf8] sm:$0xff]  ;;  %v4419_v10 = vld [vmem:[%s8711_s3 + $0x80] sm:$0xff]  ;;  %v4607_v54 = vld [vmem:[%s8713_s5 + $0x8b0] sm:$0xff] }
 0x210   : > { %v5375_v17 = vpack.c.bf16 %v1488_v16, %v1482_v4  ;;  %5682 = vmatpush1.bf16.msra.mxu1 %v5681_v5  ;;  %v5707_v3 = vpack.c.bf16 %v4842_v63, %v4840_v62  ;;  %v4839_v4 = vld [vmem:[%s8713_s5 + $0xde0] sm:$0xff]  ;;  %v4841_v5 = vld [vmem:[%s8713_s5 + $0xdf0] sm:$0xff]  ;;  %v4584_v63 = vld [vmem:[%s8713_s5 + $0x7f8] sm:$0xff] }
 0x211   : > { %5684 = vmatprep.subr.bf16.mxu1 %v5683_v6  ;;  %4356 = vmatmul.mubr.msk.f32.gmra.mrb[26].mxu0 %vm1082_vm6, %v920_v14  ;;  %v926_v6 = vld [vmem:[%s8711_s3 + $0x38] sm:$0xff]  ;;  %v5709_v7 = vpack.c.bf16 %v4841_v5, %v4839_v4  ;;  %v4421_v14 = vld [vmem:[%s8711_s3 + $0x90] sm:$0xff]  ;;  %v4423_v16 = vld [vmem:[%s8711_s3 + $0xa0] sm:$0xff] }
 0x212   : > { %v1492_v22 = vpop.f32.mrb[28].mxu1  ;;  %5376 = vmatprep.subr.bf16.mxu0 %v5375_v17  ;;  %1320 = vmatprep.mubr.f32.mxu0 %v5996_v0  ;;  %v4581_v62 = vld [vmem:[%s8713_s5 + $0x7e0] sm:$0xff]  ;;  %v4583_v5 = vld [vmem:[%s8713_s5 + $0x7f0] sm:$0xff] }
 0x213   : > { %v1494_v29 = vpop.f32.mrb[29].mxu1  ;;  %5378 = vmatpush1.bf16.msra.mxu0 %v5377_v15  ;;  %v4422_v15 = vld [vmem:[%s8711_s3 + $0x98] sm:$0xff] }
 0x214   : > { %5686 = vmatpush1.bf16.msra.mxu1 %v5685_v18 }
 0x215   : > { %5688 = vmatprep.subr.bf16.mxu1 %v5687_v19  ;;  %4357 = vmatmul.mubr.msk.f32.gmra.mrb[28].mxu0 %vm1082_vm6, %v921_v26  ;;  %v4424_v19 = vld [vmem:[%s8711_s3 + $0xa8] sm:$0xff] }
 0x216   : > { %v1498_v33 = vpop.f32.mrb[30].mxu1  ;;  %1326 = vmatprep.mubr.f32.mxu0 %v5996_v0 }
 0x217   : > { %v5381_v37 = vpack.c.bf16 %v1498_v33, %v1492_v22  ;;  %v1500_v39 = vpop.f32.mrb[31].mxu1 }
 0x218   : > { %v5379_v41 = vpack.c.bf16 %v1500_v39, %v1494_v29  ;;  %5690 = vmatpush1.bf16.msra.mxu1 %v5689_v27  ;;  %v4426_v27 = vld [vmem:[%s8711_s3 + $0xb8] sm:$0xff]  ;;  %v4495_v39 = vld [vmem:[%s8711_s3 + $0xe0] sm:$0xff] }
 0x219   : > { %5692 = vmatprep.subr.bf16.mxu1 %v5691_v28  ;;  %4358 = vmatmul.mubr.msk.f32.gmra.mrb[30].mxu0 %vm1082_vm6, %v922_v36  ;;  %v4493_v36 = vld [vmem:[%s8711_s3 + $0xd0] sm:$0xff] }
 0x21a   : > { %5380 = vmatprep.subr.bf16.mxu0 %v5379_v41  ;;  %1332 = vmatprep.mubr.f32.mxu0 %v5996_v0  ;;  %v4496_v41 = vld [vmem:[%s8711_s3 + $0xe8] sm:$0xff] }
 0x21b   : > { %5382 = vmatpush1.bf16.msra.mxu0 %v5381_v37  ;;  %v4494_v37 = vld [vmem:[%s8711_s3 + $0xd8] sm:$0xff] }
 0x21c   : > { %5694 = vmatpush1.bf16.msra.mxu1 %v5693_v42  ;;  %v4497_v42 = vld [vmem:[%s8711_s3 + $0xf0] sm:$0xff] }
 0x21d   : > { %5696 = vmatprep.subr.bf16.mxu1 %v5695_v43  ;;  %4359 = vmatmul.mubr.msk.f32.gmra.mrb[32].mxu0 %vm1082_vm6, %v923_v48  ;;  %v4498_v43 = vld [vmem:[%s8711_s3 + $0xf8] sm:$0xff] }
 0x21e   : > { %1338 = vmatprep.mubr.f32.mxu0 %v5996_v0 }
 0x220   : > { %5698 = vmatpush1.bf16.msra.mxu1 %v5697_v49 }
 0x221   : > { %5700 = vmatprep.subr.bf16.mxu1 %v5699_v50  ;;  %4360 = vmatmul.mubr.msk.f32.gmra.mrb[34].mxu0 %vm1082_vm6, %v924_v56 }
 0x222   : > { %1344 = vmatprep.mubr.f32.mxu0 %v5996_v0 }
 0x224   : > { %5702 = vmatpush1.bf16.msra.mxu1 %v5701_v58 }
 0x225   : > { %5704 = vmatprep.subr.bf16.mxu1 %v5703_v59  ;;  %4361 = vmatmul.mubr.msk.f32.gmra.mrb[36].mxu0 %vm1082_vm6, %v925_v1  ;;  %v4586_v1 = vld [vmem:[%s8713_s5 + $0x808] sm:$0xff] }
 0x226   : > { %1350 = vmatprep.mubr.f32.mxu0 %v5996_v0  ;;  %v5499_v4 = vpack.c.bf16 %v4586_v1, %v4584_v63  ;;  %v4613_v63 = vld [vmem:[%s8713_s5 + $0x8e0] sm:$0xff]  ;;  %v4616_v1 = vld [vmem:[%s8713_s5 + $0x8f8] sm:$0xff] }
 0x228   : > { %5706 = vmatpush1.bf16.msra.mxu1 %v5705_v2  ;;  %v4563_v2 = vld [vmem:[%s8711_s3 + $0x100] sm:$0xff] }
 0x229   : > { %5708 = vmatprep.subr.bf16.mxu1 %v5707_v3  ;;  %4362 = vmatmul.mubr.msk.f32.gmra.mrb[38].mxu0 %vm1082_vm6, %v926_v6  ;;  %v5497_v3 = vpack.c.bf16 %v4581_v62, %v4579_v61  ;;  %v4585_v6 = vld [vmem:[%s8713_s5 + $0x800] sm:$0xff]  ;;  %v4611_v62 = vld [vmem:[%s8713_s5 + $0x8d0] sm:$0xff] }
 0x22a   : > { %1600 = vmatprep.mubr.f32.mxu0 %v5996_v0 }
 0x22c   : > { %5710 = vmatpush1.bf16.msra.mxu1 %v5709_v7  ;;  %v4588_v7 = vld [vmem:[%s8713_s5 + $0x818] sm:$0xff] }
 0x22d   : > { %4845 = vmatprep.subr.msk.mxu1 %vm823_vm4, %v4844_v9  ;;  %4427 = vmatmul.mubr.msk.f32.vlgmr.msra.gmra.mrb[24].mxu0 %vm1082_vm6, %v4419_v10  ;;  %v4590_v9 = vld [vmem:[%s8713_s5 + $0x828] sm:$0xff] }
 0x22e   : > { %1606 = vmatprep.mubr.f32.mxu0 %v5996_v0  ;;  %v4564_v10 = vld [vmem:[%s8711_s3 + $0x108] sm:$0xff] }
 0x230   : > { %4846 = vmatpush1.msk.msra.mxu1 %vm823_vm4, %v4843_v11  ;;  %v5501_v11 = vpack.c.bf16 %v4585_v6, %v4583_v5  ;;  %v4615_v6 = vld [vmem:[%s8713_s5 + $0x8f0] sm:$0xff] }
 0x231   : > { %3327 = vmatmul.mubr.f32.vlgmr.msra.gmra.mrb[64].mxu1 %v6525_v57  ;;  %4428 = vmatmul.mubr.msk.f32.gmra.mrb[26].mxu0 %vm1082_vm6, %v4420_v13  ;;  %v5503_v13 = vpack.c.bf16 %v4590_v9, %v4588_v7  ;;  %v4617_v7 = vld [vmem:[%s8713_s5 + $0x900] sm:$0xff] }
 0x232   : > { %4848 = vmatprep.mubr.msk.f32.mxu1 %vm810_vm5, %v6545_v8  ;;  %1612 = vmatprep.mubr.f32.mxu0 %v5996_v0 }
 0x235   : > { %3333 = vmatmul.mubr.f32.gmra.mrb[66].mxu1 %v6547_v12  ;;  %4429 = vmatmul.mubr.msk.f32.gmra.mrb[28].mxu0 %vm1082_vm6, %v4421_v14  ;;  %v4587_v14 = vld [vmem:[%s8713_s5 + $0x810] sm:$0xff] }
 0x236   : > { %4849 = vmatprep.mubr.msk.f32.mxu1 %vm810_vm5, %v6570_v25  ;;  %1618 = vmatprep.mubr.f32.mxu0 %v5996_v0 }
 0x239   : > { %3339 = vmatmul.mubr.f32.gmra.mrb[68].mxu1 %v6572_v30  ;;  %4430 = vmatmul.mubr.msk.f32.gmra.mrb[30].mxu0 %vm1082_vm6, %v4422_v15  ;;  %v4589_v15 = vld [vmem:[%s8713_s5 + $0x820] sm:$0xff] }
 0x23a   : > { %4850 = vmatprep.mubr.msk.f32.mxu1 %vm810_vm5, %v6592_v38  ;;  %1624 = vmatprep.mubr.f32.mxu0 %v5996_v0 }
 0x23c   : > { %v1788_v17 = vpop.f32.mrb[32].mxu1 }
 0x23d   : > { %v1790_v18 = vpop.f32.mrb[33].mxu1  ;;  %3345 = vmatmul.mubr.f32.gmra.mrb[70].mxu1 %v6594_v40  ;;  %4431 = vmatmul.mubr.msk.f32.gmra.mrb[32].mxu0 %vm1082_vm6, %v4423_v16  ;;  %v4592_v16 = vld [vmem:[%s8713_s5 + $0x838] sm:$0xff] }
 0x23e   : > { %1630 = vmatprep.mubr.f32.mxu0 %v5996_v0 }
 0x240   : > { %v1794_v20 = vpop.f32.mrb[34].mxu1 }
 0x241   : > { %v5433_v21 = vpack.c.bf16 %v1794_v20, %v1788_v17  ;;  %v1796_v22 = vpop.f32.mrb[35].mxu1  ;;  %4432 = vmatmul.mubr.msk.f32.gmra.mrb[34].mxu0 %vm1082_vm6, %v4424_v19  ;;  %v4594_v17 = vld [vmem:[%s8713_s5 + $0x848] sm:$0xff]  ;;  %v5505_v19 = vpack.c.bf16 %v4589_v15, %v4587_v14  ;;  %v4619_v15 = vld [vmem:[%s8713_s5 + $0x910] sm:$0xff] }
 0x242   : > { %v5431_v23 = vpack.c.bf16 %v1796_v22, %v1790_v18  ;;  %1636 = vmatprep.mubr.f32.mxu0 %v5996_v0  ;;  %v4565_v18 = vld [vmem:[%s8711_s3 + $0x110] sm:$0xff]  ;;  %v5507_v20 = vpack.c.bf16 %v4594_v17, %v4592_v16  ;;  %v4593_v22 = vld [vmem:[%s8713_s5 + $0x840] sm:$0xff] }
 0x243   : > { %v4621_v16 = vld [vmem:[%s8713_s5 + $0x920] sm:$0xff] }
 0x244   : > { %v1800_v26 = vpop.f32.mrb[36].mxu1  ;;  %5432 = vmatprep.subr.bf16.mxu0 %v5431_v23  ;;  %v4596_v23 = vld [vmem:[%s8713_s5 + $0x858] sm:$0xff] }
 0x245   : > { %v1802_v29 = vpop.f32.mrb[37].mxu1  ;;  %5434 = vmatpush1.bf16.msra.mxu0 %v5433_v21  ;;  %v4591_v21 = vld [vmem:[%s8713_s5 + $0x830] sm:$0xff] }
 0x246   : > { %4433 = vmatmul.mubr.msk.f32.gmra.mrb[36].mxu0 %vm1082_vm6, %v4425_v24  ;;  %v4598_v24 = vld [vmem:[%s8713_s5 + $0x868] sm:$0xff] }
 0x247   : > { %1642 = vmatprep.mubr.f32.mxu0 %v5996_v0 }
 0x248   : > { %v1806_v28 = vpop.f32.mrb[38].mxu1 }
 0x249   : > { %v5437_v31 = vpack.c.bf16 %v1806_v28, %v1800_v26  ;;  %v1808_v32 = vpop.f32.mrb[39].mxu1  ;;  %v4566_v26 = vld [vmem:[%s8711_s3 + $0x118] sm:$0xff]  ;;  %v4595_v28 = vld [vmem:[%s8713_s5 + $0x850] sm:$0xff] }
 0x24a   : > { %v5435_v33 = vpack.c.bf16 %v1808_v32, %v1802_v29  ;;  %4434 = vmatmul.mubr.msk.f32.gmra.mrb[38].mxu0 %vm1082_vm6, %v4426_v27  ;;  %v5509_v29 = vpack.c.bf16 %v4593_v22, %v4591_v21  ;;  %v5511_v27 = vpack.c.bf16 %v4598_v24, %v4596_v23  ;;  %v4600_v32 = vld [vmem:[%s8713_s5 + $0x878] sm:$0xff]  ;;  %v5537_v22 = vpack.c.bf16 %v4621_v16, %v4619_v15  ;;  %v3593_v15 = vld [vmem:[%s8714_s6] sm:$0xff]  ;;  %v3594_v16 = vld [vmem:[%s8714_s6 + $0x8] sm:$0xff] }
 0x24b   : > { %1908 = vmatprep.mubr.f32.mxu0 %v5996_v0 }
 0x24c   : > { %5436 = vmatprep.subr.bf16.mxu0 %v5435_v33  ;;  %v4602_v33 = vld [vmem:[%s8713_s5 + $0x888] sm:$0xff] }
 0x24d   : > { %5438 = vmatpush1.bf16.msra.mxu0 %v5437_v31  ;;  %v4597_v31 = vld [vmem:[%s8713_s5 + $0x860] sm:$0xff] }
 0x250   : > { %4499 = vmatmul.mubr.msk.f32.vlgmr.msra.gmra.mrb[24].mxu0 %vm1082_vm6, %v4491_v34  ;;  %v4567_v34 = vld [vmem:[%s8711_s3 + $0x120] sm:$0xff] }
 0x251   : > { %1914 = vmatprep.mubr.f32.mxu0 %v5996_v0 }
 0x254   : > { %4500 = vmatmul.mubr.msk.f32.gmra.mrb[26].mxu0 %vm1082_vm6, %v4492_v35  ;;  %v5513_v35 = vpack.c.bf16 %v4597_v31, %v4595_v28 }
 0x255   : > { %1920 = vmatprep.mubr.f32.mxu0 %v5996_v0 }
 0x258   : > { %4501 = vmatmul.mubr.msk.f32.gmra.mrb[28].mxu0 %vm1082_vm6, %v4493_v36  ;;  %v5515_v36 = vpack.c.bf16 %v4602_v33, %v4600_v32 }
 0x259   : > { %1926 = vmatprep.mubr.f32.mxu0 %v5996_v0 }
 0x25c   : > { %4502 = vmatmul.mubr.msk.f32.gmra.mrb[30].mxu0 %vm1082_vm6, %v4494_v37  ;;  %v4599_v37 = vld [vmem:[%s8713_s5 + $0x870] sm:$0xff] }
 0x25d   : > { %1932 = vmatprep.mubr.f32.mxu0 %v5996_v0 }
 0x260   : > { %4503 = vmatmul.mubr.msk.f32.gmra.mrb[32].mxu0 %vm1082_vm6, %v4495_v39  ;;  %v4601_v39 = vld [vmem:[%s8713_s5 + $0x880] sm:$0xff] }
 0x261   : > { %1938 = vmatprep.mubr.f32.mxu0 %v5996_v0 }
 0x264   : > { %4504 = vmatmul.mubr.msk.f32.gmra.mrb[34].mxu0 %vm1082_vm6, %v4496_v41  ;;  %v4604_v41 = vld [vmem:[%s8713_s5 + $0x898] sm:$0xff] }
 0x265   : > { %1944 = vmatprep.mubr.f32.mxu0 %v5996_v0 }
 0x268   : > { %4505 = vmatmul.mubr.msk.f32.gmra.mrb[36].mxu0 %vm1082_vm6, %v4497_v42  ;;  %v4606_v42 = vld [vmem:[%s8713_s5 + $0x8a8] sm:$0xff] }
 0x269   : > { %1950 = vmatprep.mubr.f32.mxu0 %v5996_v0 }
 0x26c   : > { %4506 = vmatmul.mubr.msk.f32.gmra.mrb[38].mxu0 %vm1082_vm6, %v4498_v43  ;;  %v4568_v43 = vld [vmem:[%s8711_s3 + $0x128] sm:$0xff] }
 0x26d   : > { %2216 = vmatprep.mubr.f32.mxu0 %v5996_v0 }
 0x26e   : > { %v2096_v44 = vpop.f32.mrb[40].mxu1 }
 0x26f   : > { %v2098_v45 = vpop.f32.mrb[41].mxu1 }
 0x272   : > { %v2102_v46 = vpop.f32.mrb[42].mxu1 }
 0x273   : > { %v5489_v47 = vpack.c.bf16 %v2102_v46, %v2096_v44  ;;  %v2104_v48 = vpop.f32.mrb[43].mxu1  ;;  %v5517_v44 = vpack.c.bf16 %v4601_v39, %v4599_v37  ;;  %v4603_v46 = vld [vmem:[%s8713_s5 + $0x890] sm:$0xff] }
 0x274   : > { %v5487_v49 = vpack.c.bf16 %v2104_v48, %v2098_v45  ;;  %v5519_v45 = vpack.c.bf16 %v4606_v42, %v4604_v41  ;;  %v4608_v48 = vld [vmem:[%s8713_s5 + $0x8b8] sm:$0xff] }
 0x276   : > { %v2108_v50 = vpop.f32.mrb[44].mxu1  ;;  %5488 = vmatprep.subr.bf16.mxu0 %v5487_v49  ;;  %v4610_v49 = vld [vmem:[%s8713_s5 + $0x8c8] sm:$0xff] }
 0x277   : > { %v2110_v51 = vpop.f32.mrb[45].mxu1  ;;  %5490 = vmatpush1.bf16.msra.mxu0 %v5489_v47  ;;  %v4605_v47 = vld [vmem:[%s8713_s5 + $0x8a0] sm:$0xff]  ;;  %v5523_v52 = vpack.c.bf16 %v4610_v49, %v4608_v48 }
 0x27a   : > { %v2114_v55 = vpop.f32.mrb[46].mxu1 }
 0x27b   : > { %v5493_v56 = vpack.c.bf16 %v2114_v55, %v2108_v50  ;;  %v2116_v58 = vpop.f32.mrb[47].mxu1  ;;  %v4569_v50 = vld [vmem:[%s8711_s3 + $0x130] sm:$0xff]  ;;  %v4609_v55 = vld [vmem:[%s8713_s5 + $0x8c0] sm:$0xff] }
 0x27c   : > { %v5491_v59 = vpack.c.bf16 %v2116_v58, %v2110_v51  ;;  %v5521_v51 = vpack.c.bf16 %v4605_v47, %v4603_v46  ;;  %v4614_v58 = vld [vmem:[%s8713_s5 + $0x8e8] sm:$0xff] }
 0x27e   : > { %5492 = vmatprep.subr.bf16.mxu0 %v5491_v59  ;;  %v4570_v59 = vld [vmem:[%s8711_s3 + $0x138] sm:$0xff] }
 0x27f   : > { %5494 = vmatpush1.bf16.msra.mxu0 %v5493_v56  ;;  %v4612_v56 = vld [vmem:[%s8713_s5 + $0x8d8] sm:$0xff] }
 0x280   : > { %5496 = vmatprep.subr.bf16.mxu0 %v5495_v60  ;;  %v5525_v60 = vpack.c.bf16 %v4609_v55, %v4607_v54  ;;  %v5527_v61 = vpack.c.bf16 %v4614_v58, %v4612_v56 }
 0x282   : > { %4571 = vmatmul.mubr.msk.f32.vlgmr.msra.gmra.mrb[24].mxu0 %vm1082_vm6, %v4563_v2  ;;  %v4618_v2 = vld [vmem:[%s8713_s5 + $0x908] sm:$0xff] }
 0x283   : > { %5498 = vmatpush1.bf16.msra.mxu0 %v5497_v3  ;;  %2222 = vmatprep.mubr.f32.mxu0 %v5996_v0  ;;  %v5529_v3 = vpack.c.bf16 %v4613_v63, %v4611_v62  ;;  %v5531_v5 = vpack.c.bf16 %v4618_v2, %v4616_v1 }
 0x284   : > { %5500 = vmatprep.subr.bf16.mxu0 %v5499_v4 }
 0x286   : > { %4572 = vmatmul.mubr.msk.f32.gmra.mrb[26].mxu0 %vm1082_vm6, %v4564_v10  ;;  %v4620_v10 = vld [vmem:[%s8713_s5 + $0x918] sm:$0xff] }
 0x287   : > { %5502 = vmatpush1.bf16.msra.mxu0 %v5501_v11  ;;  %2228 = vmatprep.mubr.f32.mxu0 %v5996_v0  ;;  %v5533_v11 = vpack.c.bf16 %v4617_v7, %v4615_v6 }
 0x288   : > { %5504 = vmatprep.subr.bf16.mxu0 %v5503_v13 }
 0x28a   : > { %4573 = vmatmul.mubr.msk.f32.gmra.mrb[28].mxu0 %vm1082_vm6, %v4565_v18 }
 0x28b   : > { %5506 = vmatpush1.bf16.msra.mxu0 %v5505_v19  ;;  %2234 = vmatprep.mubr.f32.mxu0 %v5996_v0  ;;  %v4624_v19 = vld [vmem:[%s8713_s5 + $0x938] sm:$0xff] }
 0x28c   : > { %5508 = vmatprep.subr.bf16.mxu0 %v5507_v20  ;;  %v4626_v20 = vld [vmem:[%s8713_s5 + $0x948] sm:$0xff] }
 0x28d   : > { %v5539_v24 = vpack.c.bf16 %v4626_v20, %v4624_v19  ;;  %v5721_v19 = vpack.c.bf16 %v3594_v16, %v3593_v15  ;;  %v3611_v20 = vld [vmem:[%s8714_s6 + $0x90] sm:$0xff]  ;;  %v4642_v15 = vld [vmem:[%s8711_s3 + $0x178] sm:$0xff]  ;;  %v4707_v16 = vld [vmem:[%s8711_s3 + $0x180] sm:$0xff] }
 0x28e   : > { %4574 = vmatmul.mubr.msk.f32.gmra.mrb[30].mxu0 %vm1082_vm6, %v4566_v26  ;;  %v4623_v26 = vld [vmem:[%s8713_s5 + $0x930] sm:$0xff] }
 0x28f   : > { %5510 = vmatpush1.bf16.msra.mxu0 %v5509_v29  ;;  %2240 = vmatprep.mubr.f32.mxu0 %v5996_v0  ;;  %v4625_v29 = vld [vmem:[%s8713_s5 + $0x940] sm:$0xff] }
 0x290   : > { %5512 = vmatprep.subr.bf16.mxu0 %v5511_v27  ;;  %v5541_v28 = vpack.c.bf16 %v4625_v29, %v4623_v26  ;;  %v3595_v26 = vld [vmem:[%s8714_s6 + $0x10] sm:$0xff]  ;;  %v3613_v29 = vld [vmem:[%s8714_s6 + $0xa0] sm:$0xff] }
 0x292   : > { %4575 = vmatmul.mubr.msk.f32.gmra.mrb[32].mxu0 %vm1082_vm6, %v4567_v34  ;;  %v4628_v34 = vld [vmem:[%s8713_s5 + $0x958] sm:$0xf] }
 0x293   : > { %5514 = vmatpush1.bf16.msra.mxu0 %v5513_v35  ;;  %2246 = vmatprep.mubr.f32.mxu0 %v5996_v0 }
 0x294   : > { %5516 = vmatprep.subr.bf16.mxu0 %v5515_v36  ;;  %v4627_v36 = vld [vmem:[%s8713_s5 + $0x950] sm:$0xf] }
 0x296   : > { %4576 = vmatmul.mubr.msk.f32.gmra.mrb[34].mxu0 %vm1082_vm6, %v4568_v43 }
 0x297   : > { %5518 = vmatpush1.bf16.msra.mxu0 %v5517_v44  ;;  %2252 = vmatprep.mubr.f32.mxu0 %v5996_v0 }
 0x298   : > { %5520 = vmatprep.subr.bf16.mxu0 %v5519_v45 }
 0x29a   : > { %4577 = vmatmul.mubr.msk.f32.gmra.mrb[36].mxu0 %vm1082_vm6, %v4569_v50 }
 0x29b   : > { %5522 = vmatpush1.bf16.msra.mxu0 %v5521_v51  ;;  %2258 = vmatprep.mubr.f32.mxu0 %v5996_v0 }
 0x29c   : > { %5524 = vmatprep.subr.bf16.mxu0 %v5523_v52 }
 0x29e   : > { %4578 = vmatmul.mubr.msk.f32.gmra.mrb[38].mxu0 %vm1082_vm6, %v4570_v59 }
 0x29f   : > { %5526 = vmatpush1.bf16.msra.mxu0 %v5525_v60  ;;  %4631 = vmatprep.mubr.msk.f32.mxu0 %vm810_vm5, %v6523_v53  ;;  %v4622_v53 = vld [vmem:[%s8713_s5 + $0x928] sm:$0xff] }
 0x2a0   : > { %v7851_v4 = vpop.f32.mrb[48].mxu1  ;;  %5528 = vmatprep.subr.bf16.mxu0 %v5527_v61  ;;  %v5535_v14 = vpack.c.bf16 %v4622_v53, %v4620_v10  ;;  %v3609_v10 = vld [vmem:[%s8714_s6 + $0x80] sm:$0xff]  ;;  %v3610_v53 = vld [vmem:[%s8714_s6 + $0x88] sm:$0xff] }
 0x2a1   : > { %v7859_v9 = vpop.f32.mrb[49].mxu1 }
 0x2a3   : > { %5530 = vmatpush1.bf16.msra.mxu0 %v5529_v3 }
 0x2a4   : > { %v7867_v13 = vpop.f32.mrb[50].mxu1  ;;  %5532 = vmatprep.subr.bf16.mxu0 %v5531_v5 }
 0x2a5   : > { %v5601_v17 = vpack.c.bf16 %v7867_v13, %v7851_v4  ;;  %v7877_v18 = vpop.f32.mrb[51].mxu1  ;;  %v3597_v13 = vld [vmem:[%s8714_s6 + $0x20] sm:$0xff] }
 0x2a6   : > { %v5599_v21 = vpack.c.bf16 %v7877_v18, %v7859_v9  ;;  %v3596_v9 = vld [vmem:[%s8714_s6 + $0x18] sm:$0xff]  ;;  %v4636_v18 = vld [vmem:[%s8711_s3 + $0x148] sm:$0xff] }
 0x2a7   : > { %5534 = vmatpush1.bf16.msra.mxu0 %v5533_v11  ;;  %v4635_v11 = vld [vmem:[%s8711_s3 + $0x140] sm:$0xff] }
 0x2a8   : > { %v7887_v23 = vpop.f32.mrb[52].mxu1  ;;  %5536 = vmatprep.subr.bf16.mxu0 %v5535_v14  ;;  %v5719_v14 = vpack.c.bf16 %v3610_v53, %v3609_v10  ;;  %v4640_v53 = vld [vmem:[%s8711_s3 + $0x168] sm:$0xff] }
 0x2a9   : > { %v7895_v27 = vpop.f32.mrb[53].mxu1 }
 0x2aa   : > { %5720 = vmatprep.subr.bf16.mxu1 %v5719_v14  ;;  %v4641_v14 = vld [vmem:[%s8711_s3 + $0x170] sm:$0xff] }
 0x2ab   : > { %5538 = vmatpush1.bf16.msra.mxu0 %v5537_v22  ;;  %v3612_v22 = vld [vmem:[%s8714_s6 + $0x98] sm:$0xff]  ;;  %5722 = vmatpush3.bf16.msra.mxu1 %v5721_v19  ;;  %v4708_v19 = vld [vmem:[%s8711_s3 + $0x188] sm:$0xff] }
 0x2ac   : > { %v7897_v31 = vpop.f32.mrb[54].mxu1  ;;  %5540 = vmatprep.subr.bf16.mxu0 %v5539_v24  ;;  %v5723_v24 = vpack.c.bf16 %v3612_v22, %v3611_v20  ;;  %v4851_v20 = vld [vmem:[%s8711_s3 + $0x200] sm:$0xff] }
 0x2ad   : > { %v5605_v32 = vpack.c.bf16 %v7897_v31, %v7887_v23  ;;  %v7901_v33 = vpop.f32.mrb[55].mxu1  ;;  %v3617_v23 = vld [vmem:[%s8714_s6 + $0xc0] sm:$0xff]  ;;  %v3618_v31 = vld [vmem:[%s8714_s6 + $0xc8] sm:$0xff] }
 0x2ae   : > { %v5603_v35 = vpack.c.bf16 %v7901_v33, %v7895_v27  ;;  %5724 = vmatprep.subr.bf16.mxu1 %v5723_v24  ;;  %v3616_v27 = vld [vmem:[%s8714_s6 + $0xb8] sm:$0xff]  ;;  %v4637_v33 = vld [vmem:[%s8711_s3 + $0x150] sm:$0xff] }
 0x2af   : > { %5542 = vmatpush1.bf16.msra.mxu0 %v5541_v28  ;;  %v3614_v28 = vld [vmem:[%s8714_s6 + $0xa8] sm:$0xff] }
 0x2b0   : > { %4629 = vmatprep.subr.msk.mxu0 %vm823_vm4, %v4628_v34  ;;  %v5727_v4 = vpack.c.bf16 %v3614_v28, %v3613_v29  ;;  %v4852_v29 = vld [vmem:[%s8711_s3 + $0x208] sm:$0xff] }
 0x2b3   : > { %4630 = vmatpush1.msk.msra.mxu0 %vm823_vm4, %v4627_v36  ;;  %v3615_v36 = vld [vmem:[%s8714_s6 + $0xb0] sm:$0xff] }
 0x2b4   : > { %2403 = vmatmul.mubr.f32.vlgmr.msra.gmra.mrb[40].mxu0 %v6525_v57 }
 0x2b5   : > { %4632 = vmatprep.mubr.msk.f32.mxu0 %vm810_vm5, %v6545_v8 }
 0x2b8   : > { %2409 = vmatmul.mubr.f32.gmra.mrb[42].mxu0 %v6547_v12 }
 0x2b9   : > { %4633 = vmatprep.mubr.msk.f32.mxu0 %vm810_vm5, %v6570_v25 }
 0x2bc   : > { %2415 = vmatmul.mubr.f32.gmra.mrb[44].mxu0 %v6572_v30 }
 0x2bd   : > { %4634 = vmatprep.mubr.msk.f32.mxu0 %vm810_vm5, %v6592_v38 }
 0x2c0   : > { %2421 = vmatmul.mubr.f32.gmra.mrb[46].mxu0 %v6594_v40 }
 0x2c1   : > { %2524 = vmatprep.mubr.f32.mxu0 %v5996_v0 }
 0x2d2   : > { %v7924_v37 = vpop.f32.mrb[56].mxu1 }
 0x2d3   : > { %v7926_v57 = vpop.f32.mrb[57].mxu1 }
 0x2d6   : > { %v7928_v39 = vpop.f32.mrb[58].mxu1 }
 0x2d7   : > { %v5657_v8 = vpack.c.bf16 %v7928_v39, %v7924_v37  ;;  %v7932_v12 = vpop.f32.mrb[59].mxu1  ;;  %v4709_v37 = vld [vmem:[%s8711_s3 + $0x190] sm:$0xff]  ;;  %v4710_v39 = vld [vmem:[%s8711_s3 + $0x198] sm:$0xff] }
 0x2d8   : > { %v5655_v25 = vpack.c.bf16 %v7932_v12, %v7926_v57  ;;  %v4638_v57 = vld [vmem:[%s8711_s3 + $0x158] sm:$0xff]  ;;  %v5735_v12 = vpack.c.bf16 %v3618_v31, %v3617_v23  ;;  %v4891_v23 = vld [vmem:[%s8714_s6 + $0x1c0] sm:$0xff]  ;;  %v4892_v31 = vld [vmem:[%s8714_s6 + $0x1c8] sm:$0xff] }
 0x2da   : > { %v7936_v30 = vpop.f32.mrb[60].mxu1 }
 0x2db   : > { %v7938_v38 = vpop.f32.mrb[61].mxu1 }
 0x2de   : > { %v7940_v40 = vpop.f32.mrb[62].mxu1 }
 0x2df   : > { %v5661_v41 = vpack.c.bf16 %v7940_v40, %v7936_v30  ;;  %v7944_v42 = vpop.f32.mrb[63].mxu1  ;;  %v4712_v30 = vld [vmem:[%s8711_s3 + $0x1a8] sm:$0xff]  ;;  %v4714_v40 = vld [vmem:[%s8711_s3 + $0x1b8] sm:$0xff] }
 0x2e0   : > { %v5659_v43 = vpack.c.bf16 %v7944_v42, %v7938_v38  ;;  %v4713_v38 = vld [vmem:[%s8711_s3 + $0x1b0] sm:$0xff]  ;;  %v4883_v42 = vld [vmem:[%s8714_s6 + $0x180] sm:$0xff] }
 0x304   : > { %v7948_v44 = vpop.f32.mrb[64].mxu1 }
 0x305   : > { %v7950_v45 = vpop.f32.mrb[65].mxu1 }
 0x308   : > { %v7952_v46 = vpop.f32.mrb[66].mxu1 }
 0x309   : > { %v5713_v47 = vpack.c.bf16 %v7952_v46, %v7948_v44  ;;  %v7956_v48 = vpop.f32.mrb[67].mxu1  ;;  %v4781_v44 = vld [vmem:[%s8711_s3 + $0x1d0] sm:$0xff]  ;;  %v4782_v46 = vld [vmem:[%s8711_s3 + $0x1d8] sm:$0xff] }
 0x30a   : > { %v5711_v49 = vpack.c.bf16 %v7956_v48, %v7950_v45  ;;  %v4780_v45 = vld [vmem:[%s8711_s3 + $0x1c8] sm:$0xff] }
 0x30c   : > { %v7960_v50 = vpop.f32.mrb[68].mxu1 }
 0x30d   : > { %v7962_v51 = vpop.f32.mrb[69].mxu1 }
 0x310   : > { %v7964_v52 = vpop.f32.mrb[70].mxu1 }
 0x311   : > { %v5717_v54 = vpack.c.bf16 %v7964_v52, %v7960_v50  ;;  %v7968_v55 = vpop.f32.mrb[71].mxu1  ;;  %v4785_v50 = vld [vmem:[%s8711_s3 + $0x1f0] sm:$0xff]  ;;  %v4867_v52 = vld [vmem:[%s8714_s6 + $0x100] sm:$0xff] }
 0x312   : > { %v5715_v56 = vpack.c.bf16 %v7968_v55, %v7962_v51  ;;  %v4786_v51 = vld [vmem:[%s8711_s3 + $0x1f8] sm:$0xff]  ;;  %v4885_v55 = vld [vmem:[%s8714_s6 + $0x190] sm:$0xff] }
 0x387   : > { %v2404_v58 = vpop.f32.mrb[40].mxu0 }
 0x388   : > { %v2406_v59 = vpop.f32.mrb[41].mxu0 }
 0x38b   : > { %v2410_v60 = vpop.f32.mrb[42].mxu0 }
 0x38c   : > { %v5545_v61 = vpack.c.bf16 %v2410_v60, %v2404_v58  ;;  %v2412_v62 = vpop.f32.mrb[43].mxu0  ;;  %v3599_v58 = vld [vmem:[%s8714_s6 + $0x30] sm:$0xff]  ;;  %v3602_v60 = vld [vmem:[%s8714_s6 + $0x48] sm:$0xff] }
 0x38d   : > { %v5543_v63 = vpack.c.bf16 %v2412_v62, %v2406_v59  ;;  %v3600_v59 = vld [vmem:[%s8714_s6 + $0x38] sm:$0xff] }
 0x38e   : > { %v3620_v62 = vld [vmem:[%s8714_s6 + $0xd8] sm:$0xff] }
 0x38f   : > { %v2416_v1 = vpop.f32.mrb[44].mxu0  ;;  %5544 = vmatprep.subr.bf16.mxu0 %v5543_v63 }
 0x390   : > { %v2418_v2 = vpop.f32.mrb[45].mxu0  ;;  %5546 = vmatpush1.bf16.msra.mxu0 %v5545_v61  ;;  %v3619_v61 = vld [vmem:[%s8714_s6 + $0xd0] sm:$0xff] }
 0x393   : > { %v2422_v3 = vpop.f32.mrb[46].mxu0 }
 0x394   : > { %v5549_v5 = vpack.c.bf16 %v2422_v3, %v2416_v1  ;;  %v2424_v6 = vpop.f32.mrb[47].mxu0  ;;  %v4639_v1 = vld [vmem:[%s8711_s3 + $0x160] sm:$0xff]  ;;  %v3603_v3 = vld [vmem:[%s8714_s6 + $0x50] sm:$0xff] }
 0x395   : > { %v5547_v7 = vpack.c.bf16 %v2424_v6, %v2418_v2  ;;  %v5739_v2 = vpack.c.bf16 %v3620_v62, %v3619_v61  ;;  %v3621_v6 = vld [vmem:[%s8714_s6 + $0xe0] sm:$0xff]  ;;  %v4893_v61 = vld [vmem:[%s8714_s6 + $0x1d0] sm:$0xff]  ;;  %v4894_v62 = vld [vmem:[%s8714_s6 + $0x1d8] sm:$0xff] }
 0x397   : > { %5548 = vmatprep.subr.bf16.mxu0 %v5547_v7  ;;  %v3622_v7 = vld [vmem:[%s8714_s6 + $0xe8] sm:$0xff] }
 0x398   : > { %5550 = vmatpush1.bf16.msra.mxu0 %v5549_v5  ;;  %v3604_v5 = vld [vmem:[%s8714_s6 + $0x58] sm:$0xff] }
 0x399   : > { %5600 = vmatprep.subr.bf16.mxu0 %v5599_v21  ;;  %v5725_v21 = vpack.c.bf16 %v3596_v9, %v3595_v26  ;;  %v5741_v10 = vpack.c.bf16 %v3604_v5, %v3603_v3  ;;  %v4869_v26 = vld [vmem:[%s8714_s6 + $0x110] sm:$0xff]  ;;  %v4870_v9 = vld [vmem:[%s8714_s6 + $0x118] sm:$0xff] }
 0x39a   : > { %v5757_v28 = vpack.c.bf16 %v4870_v9, %v4869_v26  ;;  %v4877_v3 = vld [vmem:[%s8714_s6 + $0x150] sm:$0xff]  ;;  %v4878_v5 = vld [vmem:[%s8714_s6 + $0x158] sm:$0xff]  ;;  %v4900_v26 = vld [vmem:[%s8714_s6 + $0x208] sm:$0xff] }
 0x39b   : > { %4643 = vmatmul.mubr.msk.f32.vlgmr.msra.gmra.mrb[24].mxu0 %vm1082_vm6, %v4635_v11  ;;  %5726 = vmatpush3.bf16.msra.mxu1 %v5725_v21  ;;  %v5743_v11 = vpack.c.bf16 %v3622_v7, %v3621_v6  ;;  %v4888_v21 = vld [vmem:[%s8714_s6 + $0x1a8] sm:$0xff]  ;;  %v4895_v6 = vld [vmem:[%s8714_s6 + $0x1e0] sm:$0xff] }
 0x39c   : > { %5602 = vmatpush1.bf16.msra.mxu0 %v5601_v17  ;;  %2530 = vmatprep.mubr.f32.mxu0 %v5996_v0  ;;  %v3598_v17 = vld [vmem:[%s8714_s6 + $0x28] sm:$0xff] }
 0x39d   : > { %5604 = vmatprep.subr.bf16.mxu0 %v5603_v35  ;;  %v5729_v34 = vpack.c.bf16 %v3598_v17, %v3597_v13  ;;  %v5731_v35 = vpack.c.bf16 %v3616_v27, %v3615_v36  ;;  %5728 = vmatprep.subr.bf16.mxu1 %v5727_v4  ;;  %v4871_v13 = vld [vmem:[%s8714_s6 + $0x120] sm:$0xff]  ;;  %v4872_v17 = vld [vmem:[%s8714_s6 + $0x128] sm:$0xff]  ;;  %v4890_v36 = vld [vmem:[%s8714_s6 + $0x1b8] sm:$0xff] }
 0x39e   : > { %v4853_v27 = vld [vmem:[%s8711_s3 + $0x210] sm:$0xff]  ;;  %v4896_v7 = vld [vmem:[%s8714_s6 + $0x1e8] sm:$0xff] }
 0x39f   : > { %4644 = vmatmul.mubr.msk.f32.gmra.mrb[26].mxu0 %vm1082_vm6, %v4636_v18  ;;  %5730 = vmatpush3.bf16.msra.mxu1 %v5729_v34  ;;  %v4887_v18 = vld [vmem:[%s8714_s6 + $0x1a0] sm:$0xff]  ;;  %v4889_v34 = vld [vmem:[%s8714_s6 + $0x1b0] sm:$0xff] }
 0x3a0   : > { %5606 = vmatpush1.bf16.msra.mxu0 %v5605_v32  ;;  %2536 = vmatprep.mubr.f32.mxu0 %v5996_v0  ;;  %v5733_v32 = vpack.c.bf16 %v3600_v59, %v3599_v58  ;;  %v5759_v4 = vpack.c.bf16 %v4888_v21, %v4887_v18  ;;  %v4873_v58 = vld [vmem:[%s8714_s6 + $0x130] sm:$0xff]  ;;  %v4874_v59 = vld [vmem:[%s8714_s6 + $0x138] sm:$0xff]  ;;  %v4931_v21 = vld [vmem:[%s8714_s6 + $0x300] sm:$0xff] }
 0x3a1   : > { %5656 = vmatprep.subr.bf16.mxu0 %v5655_v25  ;;  %5732 = vmatprep.subr.bf16.mxu1 %v5731_v35  ;;  %v3601_v25 = vld [vmem:[%s8714_s6 + $0x40] sm:$0xff]  ;;  %v5763_v35 = vpack.c.bf16 %v4890_v36, %v4889_v34  ;;  %v4950_v34 = vld [vmem:[%s8714_s6 + $0x398] sm:$0xff]  ;;  %v3529_v36 = vpop.permute.xlu1 %3528 }
 0x3a2   : > { %v5737_v63 = vpack.c.bf16 %v3602_v60, %v3601_v25  ;;  %v4875_v25 = vld [vmem:[%s8714_s6 + $0x140] sm:$0xff]  ;;  %v4876_v60 = vld [vmem:[%s8714_s6 + $0x148] sm:$0xff] }
 0x3a3   : > { %4645 = vmatmul.mubr.msk.f32.gmra.mrb[28].mxu0 %vm1082_vm6, %v4637_v33  ;;  %5734 = vmatpush3.bf16.msra.mxu1 %v5733_v32  ;;  %v5761_v33 = vpack.c.bf16 %v4872_v17, %v4871_v13  ;;  %v4854_v32 = vld [vmem:[%s8711_s3 + $0x218] sm:$0xff]  ;;  %v4949_v17 = vld [vmem:[%s8714_s6 + $0x390] sm:$0xff] }
 0x3a4   : > { %2542 = vmatprep.mubr.f32.mxu0 %v5996_v0  ;;  %5736 = vmatprep.subr.bf16.mxu1 %v5735_v12  ;;  %v5767_v12 = vpack.c.bf16 %v4892_v31, %v4891_v23  ;;  %v4918_v13 = vld [vmem:[%s8714_s6 + $0x298] sm:$0xff] }
 0x3a5   : > { %v4902_v23 = vld [vmem:[%s8714_s6 + $0x218] sm:$0xff] }
 0x3a7   : > { %4646 = vmatmul.mubr.msk.f32.gmra.mrb[30].mxu0 %vm1082_vm6, %v4638_v57  ;;  %5738 = vmatpush3.bf16.msra.mxu1 %v5737_v63  ;;  %v5765_v57 = vpack.c.bf16 %v4874_v59, %v4873_v58  ;;  %v4855_v63 = vld [vmem:[%s8711_s3 + $0x220] sm:$0xff]  ;;  %v4901_v59 = vld [vmem:[%s8714_s6 + $0x210] sm:$0xff] }
 0x3a8   : > { %2548 = vmatprep.mubr.f32.mxu0 %v5996_v0  ;;  %5740 = vmatprep.subr.bf16.mxu1 %v5739_v2  ;;  %v5771_v2 = vpack.c.bf16 %v4894_v62, %v4893_v61  ;;  %v4934_v61 = vld [vmem:[%s8714_s6 + $0x318] sm:$0xff]  ;;  %v4919_v62 = vld [vmem:[%s8714_s6 + $0x2a0] sm:$0xff] }
 0x3ab   : > { %4647 = vmatmul.mubr.msk.f32.gmra.mrb[32].mxu0 %vm1082_vm6, %v4639_v1  ;;  %5742 = vmatpush3.bf16.msra.mxu1 %v5741_v10  ;;  %v5769_v1 = vpack.c.bf16 %v4876_v60, %v4875_v25  ;;  %v4856_v10 = vld [vmem:[%s8711_s3 + $0x228] sm:$0xff]  ;;  %v5819_v25 = vpack.c.bf16 %v4950_v34, %v4949_v17  ;;  %v4933_v60 = vld [vmem:[%s8714_s6 + $0x310] sm:$0xff]  ;;  %v4907_v17 = vld [vmem:[%s8714_s6 + $0x240] sm:$0xff] }
 0x3ac   : > { %2554 = vmatprep.mubr.f32.mxu0 %v5996_v0  ;;  %5744 = vmatprep.subr.bf16.mxu1 %v5743_v11  ;;  %v5775_v11 = vpack.c.bf16 %v4896_v7, %v4895_v6  ;;  %v4908_v34 = vld [vmem:[%s8714_s6 + $0x248] sm:$0xff] }
 0x3af   : > { %4648 = vmatmul.mubr.msk.f32.gmra.mrb[34].mxu0 %vm1082_vm6, %v4640_v53  ;;  %v5773_v53 = vpack.c.bf16 %v4878_v5, %v4877_v3  ;;  %v4952_v3 = vld [vmem:[%s8714_s6 + $0x3a8] sm:$0xff] }
 0x3b0   : > { %2560 = vmatprep.mubr.f32.mxu0 %v5996_v0 }
 0x3b3   : > { %4649 = vmatmul.mubr.msk.f32.gmra.mrb[36].mxu0 %vm1082_vm6, %v4641_v14  ;;  %v4857_v14 = vld [vmem:[%s8711_s3 + $0x230] sm:$0xff] }
 0x3b4   : > { %2566 = vmatprep.mubr.f32.mxu0 %v5996_v0 }
 0x3b7   : > { %4650 = vmatmul.mubr.msk.f32.gmra.mrb[38].mxu0 %vm1082_vm6, %v4642_v15  ;;  %v4858_v15 = vld [vmem:[%s8711_s3 + $0x238] sm:$0xff] }
 0x3b8   : > { %2832 = vmatprep.mubr.f32.mxu0 %v5996_v0 }
 0x3bb   : > { %4715 = vmatmul.mubr.msk.f32.vlgmr.msra.gmra.mrb[24].mxu0 %vm1082_vm6, %v4707_v16  ;;  %v3605_v16 = vld [vmem:[%s8714_s6 + $0x60] sm:$0xff] }
 0x3bc   : > { %5658 = vmatpush1.bf16.msra.mxu0 %v5657_v8  ;;  %2838 = vmatprep.mubr.f32.mxu0 %v5996_v0  ;;  %v4711_v8 = vld [vmem:[%s8711_s3 + $0x1a0] sm:$0xff] }
 0x3bd   : > { %5660 = vmatprep.subr.bf16.mxu0 %v5659_v43  ;;  %v4884_v43 = vld [vmem:[%s8714_s6 + $0x188] sm:$0xff] }
 0x3be   : > { %v5751_v48 = vpack.c.bf16 %v4884_v43, %v4883_v42  ;;  %v4898_v42 = vld [vmem:[%s8714_s6 + $0x1f8] sm:$0xff]  ;;  %v3607_v43 = vld [vmem:[%s8714_s6 + $0x70] sm:$0xff] }
 0x3bf   : > { %4716 = vmatmul.mubr.msk.f32.gmra.mrb[26].mxu0 %vm1082_vm6, %v4708_v19  ;;  %v3606_v19 = vld [vmem:[%s8714_s6 + $0x68] sm:$0xff] }
 0x3c0   : > { %5662 = vmatpush1.bf16.msra.mxu0 %v5661_v41  ;;  %2844 = vmatprep.mubr.f32.mxu0 %v5996_v0  ;;  %v4779_v41 = vld [vmem:[%s8711_s3 + $0x1c0] sm:$0xff] }
 0x3c1   : > { %5712 = vmatprep.subr.bf16.mxu0 %v5711_v49  ;;  %v4784_v49 = vld [vmem:[%s8711_s3 + $0x1e8] sm:$0xff] }
 0x3c3   : > { %4717 = vmatmul.mubr.msk.f32.gmra.mrb[28].mxu0 %vm1082_vm6, %v4709_v37  ;;  %v4879_v37 = vld [vmem:[%s8714_s6 + $0x160] sm:$0xff] }
 0x3c4   : > { %2850 = vmatprep.mubr.f32.mxu0 %v5996_v0 }
 0x3c7   : > { %4718 = vmatmul.mubr.msk.f32.gmra.mrb[30].mxu0 %vm1082_vm6, %v4710_v39  ;;  %v5745_v39 = vpack.c.bf16 %v3606_v19, %v3605_v16 }
 0x3c8   : > { %2856 = vmatprep.mubr.f32.mxu0 %v5996_v0 }
 0x3c9   : > { %5746 = vmatpush3.bf16.msra.mxu1 %v5745_v39 }
 0x3cb   : > { %4719 = vmatmul.mubr.msk.f32.gmra.mrb[32].mxu0 %vm1082_vm6, %v4711_v8 }
 0x3cc   : > { %2862 = vmatprep.mubr.f32.mxu0 %v5996_v0 }
 0x3cf   : > { %4720 = vmatmul.mubr.msk.f32.gmra.mrb[34].mxu0 %vm1082_vm6, %v4712_v30  ;;  %v3623_v30 = vld [vmem:[%s8714_s6 + $0xf0] sm:$0xff] }
 0x3d0   : > { %2868 = vmatprep.mubr.f32.mxu0 %v5996_v0 }
 0x3d3   : > { %4721 = vmatmul.mubr.msk.f32.gmra.mrb[36].mxu0 %vm1082_vm6, %v4713_v38  ;;  %v3624_v38 = vld [vmem:[%s8714_s6 + $0xf8] sm:$0xff] }
 0x3d4   : > { %2874 = vmatprep.mubr.f32.mxu0 %v5996_v0 }
 0x3d7   : > { %4722 = vmatmul.mubr.msk.f32.gmra.mrb[38].mxu0 %vm1082_vm6, %v4714_v40  ;;  %v4897_v40 = vld [vmem:[%s8714_s6 + $0x1f0] sm:$0xff] }
 0x3d8   : > { %3140 = vmatprep.mubr.f32.mxu0 %v5996_v0 }
 0x3db   : > { %4787 = vmatmul.mubr.msk.f32.vlgmr.msra.gmra.mrb[24].mxu0 %vm1082_vm6, %v4779_v41  ;;  %v5747_v41 = vpack.c.bf16 %v3624_v38, %v3623_v30  ;;  %v4921_v30 = vld [vmem:[%s8714_s6 + $0x2b0] sm:$0xff] }
 0x3dc   : > { %5714 = vmatpush1.bf16.msra.mxu0 %v5713_v47  ;;  %3146 = vmatprep.mubr.f32.mxu0 %v5996_v0  ;;  %v4783_v47 = vld [vmem:[%s8711_s3 + $0x1e0] sm:$0xff] }
 0x3dd   : > { %5716 = vmatprep.subr.bf16.mxu0 %v5715_v56  ;;  %v4886_v56 = vld [vmem:[%s8714_s6 + $0x198] sm:$0xff]  ;;  %5748 = vmatprep.subr.bf16.mxu1 %v5747_v41  ;;  %v4953_v41 = vld [vmem:[%s8714_s6 + $0x3b0] sm:$0xff] }
 0x3de   : > { %v5755_v24 = vpack.c.bf16 %v4886_v56, %v4885_v55  ;;  %v4948_v55 = vld [vmem:[%s8714_s6 + $0x388] sm:$0xff] }
 0x3df   : > { %4788 = vmatmul.mubr.msk.f32.gmra.mrb[26].mxu0 %vm1082_vm6, %v4780_v45  ;;  %v3608_v45 = vld [vmem:[%s8714_s6 + $0x78] sm:$0xff] }
 0x3e0   : > { %5718 = vmatpush1.bf16.msra.mxu0 %v5717_v54  ;;  %3152 = vmatprep.mubr.f32.mxu0 %v5996_v0  ;;  %v4868_v54 = vld [vmem:[%s8714_s6 + $0x108] sm:$0xff] }
 0x3e1   : > { %5752 = vmatprep.subr.bf16.mxu0 %v5751_v48  ;;  %v5753_v22 = vpack.c.bf16 %v4868_v54, %v4867_v52  ;;  %v5779_v48 = vpack.c.bf16 %v4898_v42, %v4897_v40  ;;  %v4947_v52 = vld [vmem:[%s8714_s6 + $0x380] sm:$0xff]  ;;  %v4922_v40 = vld [vmem:[%s8714_s6 + $0x2b8] sm:$0xff] }
 0x3e2   : > { %v5815_v56 = vpack.c.bf16 %v4948_v55, %v4947_v52  ;;  %v4954_v42 = vld [vmem:[%s8714_s6 + $0x3b8] sm:$0xff] }
 0x3e3   : > { %4789 = vmatmul.mubr.msk.f32.gmra.mrb[28].mxu0 %vm1082_vm6, %v4781_v44  ;;  %v5749_v44 = vpack.c.bf16 %v3608_v45, %v3607_v43  ;;  %v3539_v43 = vpop.permute.xlu1 %3538  ;;  %v5827_v55 = vpack.c.bf16 %v4954_v42, %v4953_v41 }
 0x3e4   : > { %3158 = vmatprep.mubr.f32.mxu0 %v5996_v0 }
 0x3e5   : > { %5750 = vmatpush3.bf16.msra.mxu1 %v5749_v44 }
 0x3e7   : > { %4790 = vmatmul.mubr.msk.f32.gmra.mrb[30].mxu0 %vm1082_vm6, %v4782_v46  ;;  %v4881_v46 = vld [vmem:[%s8714_s6 + $0x170] sm:$0xff] }
 0x3e8   : > { %3164 = vmatprep.mubr.f32.mxu0 %v5996_v0 }
 0x3eb   : > { %4791 = vmatmul.mubr.msk.f32.gmra.mrb[32].mxu0 %vm1082_vm6, %v4783_v47  ;;  %v4882_v47 = vld [vmem:[%s8714_s6 + $0x178] sm:$0xff] }
 0x3ec   : > { %3170 = vmatprep.mubr.f32.mxu0 %v5996_v0 }
 0x3ef   : > { %4792 = vmatmul.mubr.msk.f32.gmra.mrb[34].mxu0 %vm1082_vm6, %v4784_v49  ;;  %v5781_v49 = vpack.c.bf16 %v4882_v47, %v4881_v46  ;;  %v4905_v47 = vld [vmem:[%s8714_s6 + $0x230] sm:$0xff] }
 0x3f0   : > { %3176 = vmatprep.mubr.f32.mxu0 %v5996_v0 }
 0x3f3   : > { %4793 = vmatmul.mubr.msk.f32.gmra.mrb[36].mxu0 %vm1082_vm6, %v4785_v50  ;;  %v4915_v50 = vld [vmem:[%s8714_s6 + $0x280] sm:$0xff] }
 0x3f4   : > { %3182 = vmatprep.mubr.f32.mxu0 %v5996_v0 }
 0x3f7   : > { %4794 = vmatmul.mubr.msk.f32.gmra.mrb[38].mxu0 %vm1082_vm6, %v4786_v51  ;;  %v4916_v51 = vld [vmem:[%s8714_s6 + $0x288] sm:$0xff] }
 0x3f8   : > { %3448 = vmatprep.mubr.f32.mxu0 %v5996_v0  ;;  %v5783_v54 = vpack.c.bf16 %v4916_v51, %v4915_v50 }
 0x3fa   : > { %5784 = vmatprep.subr.bf16.mxu1 %v5783_v54  ;;  %v5795_v54 = vpack.c.bf16 %v4922_v40, %v4921_v30  ;;  %v4959_v30 = vld [vmem:[%s8714_s6 + $0x3e0] sm:$0xff] }
 0x3fb   : > { %4859 = vmatmul.mubr.msk.f32.vlgmr.msra.gmra.mrb[24].mxu0 %vm1082_vm6, %v4851_v20  ;;  %v3524_v20 = vpop.permute.xlu0 %3523 }
 0x3fc   : > { %3454 = vmatprep.mubr.f32.mxu0 %v5996_v0  ;;  %5754 = vmatpush3.bf16.msra.mxu0 %v5753_v22 }
 0x3fd   : > { %5756 = vmatprep.subr.bf16.mxu0 %v5755_v24  ;;  %v4899_v24 = vld [vmem:[%s8714_s6 + $0x200] sm:$0xff] }
 0x3ff   : > { %4860 = vmatmul.mubr.msk.f32.gmra.mrb[26].mxu0 %vm1082_vm6, %v4852_v29  ;;  %v4932_v29 = vld [vmem:[%s8714_s6 + $0x308] sm:$0xff]  ;;  %v3534_v5 = vpop.permute.xlu0 %3533 }
 0x400   : > { %3460 = vmatprep.mubr.f32.mxu0 %v5996_v0  ;;  %5758 = vmatpush3.bf16.msra.mxu0 %v5757_v28  ;;  %v4917_v28 = vld [vmem:[%s8714_s6 + $0x290] sm:$0xff]  ;;  %v5817_v58 = vpack.c.bf16 %v4932_v29, %v4931_v21 }
 0x401   : > { %5760 = vmatprep.subr.bf16.mxu0 %v5759_v4 }
 0x403   : > { %4861 = vmatmul.mubr.msk.f32.gmra.mrb[28].mxu0 %vm1082_vm6, %v4853_v27  ;;  %v3544_v21 = vpop.permute.xlu0 %3543 }
 0x404   : > { %3466 = vmatprep.mubr.f32.mxu0 %v5996_v0  ;;  %5762 = vmatpush3.bf16.msra.mxu0 %v5761_v33 }
 0x405   : > { %5764 = vmatprep.subr.bf16.mxu0 %v5763_v35  ;;  %v5785_v35 = vpack.c.bf16 %v4900_v26, %v4899_v24  ;;  %v4924_v26 = vld [vmem:[%s8714_s6 + $0x2c8] sm:$0xff] }
 0x407   : > { %4862 = vmatmul.mubr.msk.f32.gmra.mrb[30].mxu0 %vm1082_vm6, %v4854_v32  ;;  %v3554_v40 = vpop.permute.xlu0 %3553 }
 0x408   : > { %3472 = vmatprep.mubr.f32.mxu0 %v5996_v0  ;;  %5766 = vmatpush3.bf16.msra.mxu0 %v5765_v57 }
 0x409   : > { %5768 = vmatprep.subr.bf16.mxu0 %v5767_v12  ;;  %v5787_v12 = vpack.c.bf16 %v4918_v13, %v4917_v28 }
 0x40b   : > { %4863 = vmatmul.mubr.msk.f32.gmra.mrb[32].mxu0 %vm1082_vm6, %v4855_v63 }
 0x40c   : > { %3478 = vmatprep.mubr.f32.mxu0 %v5996_v0  ;;  %5770 = vmatpush3.bf16.msra.mxu0 %v5769_v1  ;;  %v4920_v1 = vld [vmem:[%s8714_s6 + $0x2a8] sm:$0xff] }
 0x40d   : > { %5772 = vmatprep.subr.bf16.mxu0 %v5771_v2  ;;  %v4951_v2 = vld [vmem:[%s8714_s6 + $0x3a0] sm:$0xff] }
 0x40e   : > { %v5823_v39 = vpack.c.bf16 %v4952_v3, %v4951_v2  ;;  %v5801_v2 = vpack.c.bf16 %v4908_v34, %v4907_v17 }
 0x40f   : > { %4864 = vmatmul.mubr.msk.f32.gmra.mrb[34].mxu0 %vm1082_vm6, %v4856_v10  ;;  %v5789_v10 = vpack.c.bf16 %v4902_v23, %v4901_v59  ;;  %v4939_v23 = vld [vmem:[%s8714_s6 + $0x340] sm:$0xff] }
 0x410   : > { %3484 = vmatprep.mubr.f32.mxu0 %v5996_v0  ;;  %5774 = vmatpush3.bf16.msra.mxu0 %v5773_v53  ;;  %v5821_v53 = vpack.c.bf16 %v4934_v61, %v4933_v60  ;;  %v4957_v60 = vld [vmem:[%s8714_s6 + $0x3d0] sm:$0xff]  ;;  %v4958_v61 = vld [vmem:[%s8714_s6 + $0x3d8] sm:$0xff] }
 0x411   : > { %5776 = vmatprep.subr.bf16.mxu0 %v5775_v11  ;;  %v4903_v11 = vld [vmem:[%s8714_s6 + $0x220] sm:$0xff] }
 0x413   : > { %4865 = vmatmul.mubr.msk.f32.gmra.mrb[36].mxu0 %vm1082_vm6, %v4857_v14  ;;  %v4904_v14 = vld [vmem:[%s8714_s6 + $0x228] sm:$0xff] }
 0x414   : > { %3490 = vmatprep.mubr.f32.mxu0 %v5996_v0  ;;  %v4880_v0 = vld [vmem:[%s8714_s6 + $0x168] sm:$0xff]  ;;  %v5793_v44 = vpack.c.bf16 %v4904_v14, %v4903_v11 }
 0x415   : > { %v5777_v8 = vpack.c.bf16 %v4880_v0, %v4879_v37  ;;  %v5791_v37 = vpack.c.bf16 %v4920_v1, %v4919_v62  ;;  %v4935_v0 = vld [vmem:[%s8714_s6 + $0x320] sm:$0xff]  ;;  %v3549_v62 = vpop.permute.xlu1 %3548 }
 0x417   : > { %4866 = vmatmul.mubr.msk.f32.gmra.mrb[38].mxu0 %vm1082_vm6, %v4858_v15 }
 0x418   : > { %5778 = vmatpush3.bf16.msra.mxu0 %v5777_v8  ;;  %v4936_v8 = vld [vmem:[%s8714_s6 + $0x328] sm:$0xff] }
 0x419   : > { %5780 = vmatprep.subr.bf16.mxu0 %v5779_v48  ;;  %v5825_v46 = vpack.c.bf16 %v4936_v8, %v4935_v0  ;;  %v4928_v8 = vld [vmem:[%s8714_s6 + $0x2e8] sm:$0xff] }
 0x41c   : > { %5782 = vmatpush3.bf16.msra.mxu0 %v5781_v49  ;;  %v4906_v49 = vld [vmem:[%s8714_s6 + $0x238] sm:$0xff] }
 0x41d   : > { %5816 = vmatprep.subr.bf16.mxu0 %v5815_v56  ;;  %v4937_v56 = vld [vmem:[%s8714_s6 + $0x330] sm:$0xff] }
 0x4ce   : > { %v3450_v22 = vpop.f32.mrb[24].mxu0 }
 0x4cf   : > { %v3561_v9 = vadd.f32 %v3524_v20, %v3450_v22  ;;  %v3452_v18 = vpop.f32.mrb[25].mxu0  ;;  %v4923_v22 = vld [vmem:[%s8714_s6 + $0x2c0] sm:$0xff] }
 0x4d0   : > { %v3562_v4 = vadd.f32 %v3524_v20, %v3452_v18  ;;  %v4938_v20 = vld [vmem:[%s8714_s6 + $0x338] sm:$0xff]  ;;  %v4956_v18 = vld [vmem:[%s8714_s6 + $0x3c8] sm:$0xff] }
 0x4d1   : > { %v8403_v31 = vmax.f32 %v3561_v9, 0.0  ;;  %v4955_v9 = vld [vmem:[%s8714_s6 + $0x3c0] sm:$0xff]  ;;  %v5829_v13 = vpack.c.bf16 %v4938_v20, %v4937_v56  ;;  %v4944_v56 = vld [vmem:[%s8714_s6 + $0x368] sm:$0xff]  ;;  %v4929_v20 = vld [vmem:[%s8714_s6 + $0x2f0] sm:$0xff] }
 0x4d2   : > { %v8395_v27 = vmax.f32 %v3562_v4, 0.0  ;;  %v3456_v33 = vpop.f32.mrb[26].mxu0  ;;  %v5797_v4 = vpack.c.bf16 %v4906_v49, %v4905_v47  ;;  %v5831_v59 = vpack.c.bf16 %v4956_v18, %v4955_v9  ;;  %v4962_v9 = vld [vmem:[%s8714_s6 + $0x3f8] sm:$0xff]  ;;  %v3559_v18 = vpop.permute.xlu1 %3558 }
 0x4d3   : > { %v3563_v32 = vadd.f32 %v3529_v36, %v3456_v33  ;;  %v3458_v57 = vpop.f32.mrb[27].mxu0 }
 0x4d4   : > { %v3564_v63 = vadd.f32 %v3529_v36, %v3458_v57  ;;  %3689 = vmatprep.mubr.f32.mxu1 %v8395_v27  ;;  %3827 = vmatprep.mubr.f32.mxu0 %v8395_v27  ;;  %v4925_v57 = vld [vmem:[%s8714_s6 + $0x2d0] sm:$0xff] }
 0x4d5   : > { %3690 = vmatmul.mubr.f32.vlgmr.msra.gmra.mrb[72].mxu1 %v8403_v31  ;;  %3828 = vmatmul.mubr.f32.vlgmr.msra.gmra.mrb[48].mxu0 %v8403_v31  ;;  %v8435_v15 = vmax.f32 %v3563_v32, 0.0  ;;  %v4940_v32 = vld [vmem:[%s8714_s6 + $0x348] sm:$0xff] }
 0x4d6   : > { %v8427_v6 = vmax.f32 %v3564_v63, 0.0  ;;  %v3462_v7 = vpop.f32.mrb[28].mxu0  ;;  %5786 = vmatpush3.bf16.msra.mxu1 %v5785_v35  ;;  %5818 = vmatpush3.bf16.msra.mxu0 %v5817_v58  ;;  %v5799_v58 = vpack.c.bf16 %v4924_v26, %v4923_v22  ;;  %v5833_v3 = vpack.c.bf16 %v4940_v32, %v4939_v23  ;;  %v4961_v26 = vld [vmem:[%s8714_s6 + $0x3f0] sm:$0xff]  ;;  %v4914_v23 = vld [vmem:[%s8714_s6 + $0x278] sm:$0xff] }
 0x4d7   : > { %v3565_v16 = vadd.f32 %v3534_v5, %v3462_v7  ;;  %v3464_v19 = vpop.f32.mrb[29].mxu0  ;;  %5788 = vmatprep.subr.bf16.mxu1 %v5787_v12  ;;  %5820 = vmatprep.subr.bf16.mxu0 %v5819_v25  ;;  %v4926_v25 = vld [vmem:[%s8714_s6 + $0x2d8] sm:$0xff] }
 0x4d8   : > { %v3566_v38 = vadd.f32 %v3534_v5, %v3464_v19  ;;  %3694 = vmatprep.mubr.f32.mxu1 %v8427_v6  ;;  %3832 = vmatprep.mubr.f32.mxu0 %v8427_v6  ;;  %v4909_v5 = vld [vmem:[%s8714_s6 + $0x250] sm:$0xff]  ;;  %v4910_v7 = vld [vmem:[%s8714_s6 + $0x258] sm:$0xff]  ;;  %v5803_v14 = vpack.c.bf16 %v4926_v25, %v4925_v57 }
 0x4d9   : > { %3695 = vmatmul.mubr.f32.gmra.mrb[74].mxu1 %v8435_v15  ;;  %3833 = vmatmul.mubr.f32.gmra.mrb[50].mxu0 %v8435_v15  ;;  %v8467_v50 = vmax.f32 %v3565_v16, 0.0  ;;  %v5835_v16 = vpack.c.bf16 %v4958_v61, %v4957_v60  ;;  %v4941_v19 = vld [vmem:[%s8714_s6 + $0x350] sm:$0xff] }
 0x4da   : > { %v8459_v45 = vmax.f32 %v3566_v38, 0.0  ;;  %v3468_v48 = vpop.f32.mrb[30].mxu0  ;;  %5790 = vmatpush3.bf16.msra.mxu1 %v5789_v10  ;;  %5822 = vmatpush3.bf16.msra.mxu0 %v5821_v53  ;;  %v4960_v38 = vld [vmem:[%s8714_s6 + $0x3e8] sm:$0xff]  ;;  %v4945_v57 = vld [vmem:[%s8714_s6 + $0x370] sm:$0xff] }
 0x4db   : > { %v3567_v51 = vadd.f32 %v3539_v43, %v3468_v48  ;;  %v3470_v52 = vpop.f32.mrb[31].mxu0  ;;  %5792 = vmatprep.subr.bf16.mxu1 %v5791_v37  ;;  %5824 = vmatprep.subr.bf16.mxu0 %v5823_v39  ;;  %v4942_v37 = vld [vmem:[%s8714_s6 + $0x358] sm:$0xff]  ;;  %v4927_v39 = vld [vmem:[%s8714_s6 + $0x2e0] sm:$0xff] }
 0x4dc   : > { %v3568_v24 = vadd.f32 %v3539_v43, %v3470_v52  ;;  %3699 = vmatprep.mubr.f32.mxu1 %v8459_v45  ;;  %3837 = vmatprep.mubr.f32.mxu0 %v8459_v45  ;;  %v5805_v43 = vpack.c.bf16 %v4910_v7, %v4909_v5  ;;  %v5837_v48 = vpack.c.bf16 %v4942_v37, %v4941_v19 }
 0x4dd   : > { %3700 = vmatmul.mubr.f32.gmra.mrb[76].mxu1 %v8467_v50  ;;  %3838 = vmatmul.mubr.f32.gmra.mrb[52].mxu0 %v8467_v50  ;;  %v8499_v36 = vmax.f32 %v3567_v51, 0.0  ;;  %v5807_v52 = vpack.c.bf16 %v4928_v8, %v4927_v39 }
 0x4de   : > { %v8491_v29 = vmax.f32 %v3568_v24, 0.0  ;;  %v3474_v28 = vpop.f32.mrb[32].mxu0  ;;  %5794 = vmatpush3.bf16.msra.mxu1 %v5793_v44  ;;  %5826 = vmatpush3.bf16.msra.mxu0 %v5825_v46  ;;  %v4911_v44 = vld [vmem:[%s8714_s6 + $0x260] sm:$0xff]  ;;  %v4912_v46 = vld [vmem:[%s8714_s6 + $0x268] sm:$0xff]  ;;  %v4930_v24 = vld [vmem:[%s8714_s6 + $0x2f8] sm:$0xff] }
 0x4df   : > { %v3569_v33 = vadd.f32 %v3544_v21, %v3474_v28  ;;  %v3476_v35 = vpop.f32.mrb[33].mxu0  ;;  %5796 = vmatprep.subr.bf16.mxu1 %v5795_v54  ;;  %5828 = vmatprep.subr.bf16.mxu0 %v5827_v55  ;;  %v5839_v54 = vpack.c.bf16 %v4960_v38, %v4959_v30  ;;  %v4943_v55 = vld [vmem:[%s8714_s6 + $0x360] sm:$0xff] }
 0x4e0   : > { %v3570_v12 = vadd.f32 %v3544_v21, %v3476_v35  ;;  %3704 = vmatprep.mubr.f32.mxu1 %v8491_v29  ;;  %3842 = vmatprep.mubr.f32.mxu0 %v8491_v29  ;;  %v5811_v35 = vpack.c.bf16 %v4930_v24, %v4929_v20 }
 0x4e1   : > { %3705 = vmatmul.mubr.f32.gmra.mrb[78].mxu1 %v8499_v36  ;;  %3843 = vmatmul.mubr.f32.gmra.mrb[54].mxu0 %v8499_v36  ;;  %v8531_v10 = vmax.f32 %v3569_v33, 0.0 }
 0x4e2   : > { %v8523_v63 = vmax.f32 %v3570_v12, 0.0  ;;  %v3480_v1 = vpop.f32.mrb[34].mxu0  ;;  %5798 = vmatpush3.bf16.msra.mxu1 %v5797_v4  ;;  %5830 = vmatpush3.bf16.msra.mxu0 %v5829_v13  ;;  %v5809_v4 = vpack.c.bf16 %v4912_v46, %v4911_v44  ;;  %v5841_v13 = vpack.c.bf16 %v4944_v56, %v4943_v55  ;;  %v4946_v12 = vld [vmem:[%s8714_s6 + $0x378] sm:$0xff] }
 0x4e3   : > { %v3571_v53 = vadd.f32 %v3549_v62, %v3480_v1  ;;  %v3482_v11 = vpop.f32.mrb[35].mxu0  ;;  %5800 = vmatprep.subr.bf16.mxu1 %v5799_v58  ;;  %5832 = vmatprep.subr.bf16.mxu0 %v5831_v59  ;;  %v5843_v58 = vpack.c.bf16 %v4962_v9, %v4961_v26  ;;  %v4913_v59 = vld [vmem:[%s8714_s6 + $0x270] sm:$0xff] }
 0x4e4   : > { %v3572_v0 = vadd.f32 %v3549_v62, %v3482_v11  ;;  %3709 = vmatprep.mubr.f32.mxu1 %v8523_v63  ;;  %3847 = vmatprep.mubr.f32.mxu0 %v8523_v63  ;;  %v5813_v60 = vpack.c.bf16 %v4914_v23, %v4913_v59  ;;  %v5845_v62 = vpack.c.bf16 %v4946_v12, %v4945_v57 }
 0x4e5   : > { %3710 = vmatmul.mubr.f32.gmra.mrb[80].mxu1 %v8531_v10  ;;  %3848 = vmatmul.mubr.f32.gmra.mrb[56].mxu0 %v8531_v10  ;;  %v8563_v47 = vmax.f32 %v3571_v53, 0.0 }
 0x4e6   : > { %v8555_v41 = vmax.f32 %v3572_v0, 0.0  ;;  %v3486_v42 = vpop.f32.mrb[36].mxu0  ;;  %5802 = vmatpush3.bf16.msra.mxu1 %v5801_v2  ;;  %5834 = vmatpush3.bf16.msra.mxu0 %v5833_v3 }
 0x4e7   : > { %v3573_v49 = vadd.f32 %v3554_v40, %v3486_v42  ;;  %v3488_v51 = vpop.f32.mrb[37].mxu0  ;;  %5804 = vmatprep.subr.bf16.mxu1 %v5803_v14  ;;  %5836 = vmatprep.subr.bf16.mxu0 %v5835_v16 }
 0x4e8   : > { %v3574_v22 = vadd.f32 %v3554_v40, %v3488_v51  ;;  %3714 = vmatprep.mubr.f32.mxu1 %v8555_v41  ;;  %3852 = vmatprep.mubr.f32.mxu0 %v8555_v41 }
 0x4e9   : > { %3715 = vmatmul.mubr.f32.gmra.mrb[82].mxu1 %v8563_v47  ;;  %3853 = vmatmul.mubr.f32.gmra.mrb[58].mxu0 %v8563_v47  ;;  %v3589_v17 = vmax.f32 %v3573_v49, 0.0 }
 0x4ea   : > { %v3590_v21 = vmax.f32 %v3574_v22, 0.0  ;;  %v3492_v28 = vpop.f32.mrb[38].mxu0  ;;  %5806 = vmatpush3.bf16.msra.mxu1 %v5805_v43  ;;  %5838 = vmatpush3.bf16.msra.mxu0 %v5837_v48 }
 0x4eb   : > { %v3575_v34 = vadd.f32 %v3559_v18, %v3492_v28  ;;  %v3494_v33 = vpop.f32.mrb[39].mxu0  ;;  %5808 = vmatprep.subr.bf16.mxu1 %v5807_v52  ;;  %5840 = vmatprep.subr.bf16.mxu0 %v5839_v54 }
 0x4ec   : > { %v3576_v32 = vadd.f32 %v3559_v18, %v3494_v33  ;;  %3719 = vmatprep.mubr.f32.mxu1 %v3590_v21  ;;  %3857 = vmatprep.mubr.f32.mxu0 %v3590_v21 }
 0x4ed   : > { %3720 = vmatmul.mubr.f32.gmra.mrb[84].mxu1 %v3589_v17  ;;  %3858 = vmatmul.mubr.f32.gmra.mrb[60].mxu0 %v3589_v17  ;;  %v3591_v61 = vmax.f32 %v3575_v34, 0.0 }
 0x4ee   : > { %v3592_v25 = vmax.f32 %v3576_v32, 0.0  ;;  %5810 = vmatpush3.bf16.msra.mxu1 %v5809_v4  ;;  %5842 = vmatpush3.bf16.msra.mxu0 %v5841_v13 }
 0x4ef   : > { %5812 = vmatprep.subr.bf16.mxu1 %v5811_v35  ;;  %5844 = vmatprep.subr.bf16.mxu0 %v5843_v58 }
 0x4f0   : > { %3724 = vmatprep.mubr.f32.mxu1 %v3592_v25  ;;  %3862 = vmatprep.mubr.f32.mxu0 %v3592_v25 }
 0x4f1   : > { %3725 = vmatmul.mubr.f32.gmra.mrb[86].mxu1 %v3591_v61  ;;  %3863 = vmatmul.mubr.f32.gmra.mrb[62].mxu0 %v3591_v61 }
 0x4f2   : > { %5814 = vmatpush3.bf16.msra.mxu1 %v5813_v60  ;;  %3973 = vmatprep.mubr.f32.mxu1 %v8395_v27 }
 0x4f3   : > { %5846 = vmatpush3.bf16.msra.mxu0 %v5845_v62  ;;  %4119 = vmatprep.mubr.f32.mxu0 %v8395_v27 }
 0x4f5   : > { %3974 = vmatmul.mubr.f32.vlgmr.msra.gmra.mrb[88].mxu1 %v8403_v31 }
 0x4f6   : > { %4120 = vmatmul.mubr.f32.vlgmr.msra.gmra.mrb[64].mxu0 %v8403_v31  ;;  %3978 = vmatprep.mubr.f32.mxu1 %v8427_v6 }
 0x4f7   : > { %4124 = vmatprep.mubr.f32.mxu0 %v8427_v6 }
 0x4f9   : > { %3979 = vmatmul.mubr.f32.gmra.mrb[90].mxu1 %v8435_v15 }
 0x4fa   : > { %4125 = vmatmul.mubr.f32.gmra.mrb[66].mxu0 %v8435_v15  ;;  %3983 = vmatprep.mubr.f32.mxu1 %v8459_v45 }
 0x4fb   : > { %4129 = vmatprep.mubr.f32.mxu0 %v8459_v45 }
 0x4fd   : > { %3984 = vmatmul.mubr.f32.gmra.mrb[92].mxu1 %v8467_v50 }
 0x4fe   : > { %4130 = vmatmul.mubr.f32.gmra.mrb[68].mxu0 %v8467_v50  ;;  %3988 = vmatprep.mubr.f32.mxu1 %v8491_v29 }
 0x4ff   : > { %4134 = vmatprep.mubr.f32.mxu0 %v8491_v29 }
 0x501   : > { %3989 = vmatmul.mubr.f32.gmra.mrb[94].mxu1 %v8499_v36 }
 0x502   : > { %4135 = vmatmul.mubr.f32.gmra.mrb[70].mxu0 %v8499_v36  ;;  %3993 = vmatprep.mubr.f32.mxu1 %v8523_v63 }
 0x503   : > { %4139 = vmatprep.mubr.f32.mxu0 %v8523_v63 }
 0x505   : > { %3994 = vmatmul.mubr.f32.gmra.mrb[96].mxu1 %v8531_v10 }
 0x506   : > { %4140 = vmatmul.mubr.f32.gmra.mrb[72].mxu0 %v8531_v10  ;;  %3998 = vmatprep.mubr.f32.mxu1 %v8555_v41 }
 0x507   : > { %4144 = vmatprep.mubr.f32.mxu0 %v8555_v41 }
 0x509   : > { %3999 = vmatmul.mubr.f32.gmra.mrb[98].mxu1 %v8563_v47 }
 0x50a   : > { %4145 = vmatmul.mubr.f32.gmra.mrb[74].mxu0 %v8563_v47  ;;  %4003 = vmatprep.mubr.f32.mxu1 %v3590_v21 }
 0x50b   : > { %4149 = vmatprep.mubr.f32.mxu0 %v3590_v21 }
 0x50d   : > { %4004 = vmatmul.mubr.f32.gmra.mrb[100].mxu1 %v3589_v17 }
 0x50e   : > { %4150 = vmatmul.mubr.f32.gmra.mrb[76].mxu0 %v3589_v17  ;;  %4008 = vmatprep.mubr.f32.mxu1 %v3592_v25 }
 0x50f   : > { %4154 = vmatprep.mubr.f32.mxu0 %v3592_v25 }
 0x511   : > { %4009 = vmatmul.mubr.f32.gmra.mrb[102].mxu1 %v3591_v61 }
 0x512   : > { %4155 = vmatmul.mubr.f32.gmra.mrb[78].mxu0 %v3591_v61 }
 0x5a8   : > { %v4999_v27 = vpop.f32.mrb[72].mxu1  ;;  %v5055_v31 = vpop.f32.mrb[48].mxu0 }
 0x5a9   : > { %v5000_v6 = vpop.f32.mrb[73].mxu1  ;;  %v5056_v15 = vpop.f32.mrb[49].mxu0 }
 0x5aa   : > { %v5001_v45 = vadd.f32 %v5000_v6, %v4999_v27  ;;  %v5057_v50 = vadd.f32 %v5056_v15, %v5055_v31 }
 0x5ac   : > { %v3868_v29 = vmax.f32 %v5001_v45, %v5057_v50  ;;  %v5002_v36 = vpop.f32.mrb[74].mxu1  ;;  %v5058_v63 = vpop.f32.mrb[50].mxu0 }
 0x5ad   : > { %v5003_v1 = vpop.f32.mrb[75].mxu1  ;;  %v5059_v2 = vpop.f32.mrb[51].mxu0 }
 0x5ae   : > { %v8623_v3 = vadd.f32 %v5003_v1, %v5002_v36  ;;  %v8625_v5 = vadd.f32 %v5059_v2, %v5058_v63 }
 0x5b0   : > { %v3869_v7 = vmax.f32 %v8623_v3, %v8625_v5  ;;  %v5005_v10 = vpop.f32.mrb[76].mxu1  ;;  %v5061_v53 = vpop.f32.mrb[52].mxu0 }
 0x5b1   : > { %v5006_v11 = vpop.f32.mrb[77].mxu1  ;;  %v5062_v14 = vpop.f32.mrb[53].mxu0 }
 0x5b2   : > { %v8629_v16 = vadd.f32 %v5006_v11, %v5005_v10  ;;  %v8631_v19 = vadd.f32 %v5062_v14, %v5061_v53 }
 0x5b4   : > { %v3870_v37 = vmax.f32 %v8629_v16, %v8631_v19  ;;  %v5008_v39 = vpop.f32.mrb[78].mxu1  ;;  %v5064_v0 = vpop.f32.mrb[54].mxu0 }
 0x5b5   : > { %v5009_v8 = vpop.f32.mrb[79].mxu1  ;;  %v5065_v30 = vpop.f32.mrb[55].mxu0 }
 0x5b6   : > { %v8635_v38 = vadd.f32 %v5009_v8, %v5008_v39  ;;  %v8637_v40 = vadd.f32 %v5065_v30, %v5064_v0 }
 0x5b8   : > { %v3871_v41 = vmax.f32 %v8635_v38, %v8637_v40  ;;  %v5011_v42 = vpop.f32.mrb[80].mxu1  ;;  %v5067_v43 = vpop.f32.mrb[56].mxu0 }
 0x5b9   : > { %v5012_v48 = vpop.f32.mrb[81].mxu1  ;;  %v5068_v44 = vpop.f32.mrb[57].mxu0 }
 0x5ba   : > { %v8641_v46 = vadd.f32 %v5012_v48, %v5011_v42  ;;  %v8643_v47 = vadd.f32 %v5068_v44, %v5067_v43 }
 0x5bc   : > { %v3872_v49 = vmax.f32 %v8641_v46, %v8643_v47  ;;  %v5014_v51 = vpop.f32.mrb[82].mxu1  ;;  %v5070_v52 = vpop.f32.mrb[58].mxu0 }
 0x5bd   : > { %v5015_v54 = vpop.f32.mrb[83].mxu1  ;;  %v5071_v55 = vpop.f32.mrb[59].mxu0 }
 0x5be   : > { %v8647_v56 = vadd.f32 %v5015_v54, %v5014_v51  ;;  %v8649_v20 = vadd.f32 %v5071_v55, %v5070_v52 }
 0x5c0   : > { %v3873_v22 = vmax.f32 %v8647_v56, %v8649_v20  ;;  %v5017_v24 = vpop.f32.mrb[84].mxu1  ;;  %v5073_v26 = vpop.f32.mrb[60].mxu0 }
 0x5c1   : > { %v5018_v9 = vpop.f32.mrb[85].mxu1  ;;  %v5074_v18 = vpop.f32.mrb[61].mxu0 }
 0x5c2   : > { %v8653_v21 = vadd.f32 %v5018_v9, %v5017_v24  ;;  %v8655_v28 = vadd.f32 %v5074_v18, %v5073_v26 }
 0x5c4   : > { %v3874_v4 = vmax.f32 %v8653_v21, %v8655_v28  ;;  %v5020_v13 = vpop.f32.mrb[86].mxu1  ;;  %v5076_v17 = vpop.f32.mrb[62].mxu0 }
 0x5c5   : > { %v5021_v34 = vpop.f32.mrb[87].mxu1  ;;  %v5077_v33 = vpop.f32.mrb[63].mxu0 }
 0x5c6   : > { %v8659_v35 = vadd.f32 %v5021_v34, %v5020_v13  ;;  %v8661_v58 = vadd.f32 %v5077_v33, %v5076_v17 }
 0x5c8   : > { %v3875_v59 = vmax.f32 %v8659_v35, %v8661_v58  ;;  %v5111_v23 = vpop.f32.mrb[88].mxu1 }
 0x5c9   : > { %v5167_v32 = vpop.f32.mrb[64].mxu0  ;;  %v5112_v57 = vpop.f32.mrb[89].mxu1 }
 0x5ca   : > { %v5113_v12 = vadd.f32 %v5112_v57, %v5111_v23  ;;  %v5168_v25 = vpop.f32.mrb[65].mxu0 }
 0x5cb   : > { %v5169_v60 = vadd.f32 %v5168_v25, %v5167_v32 }
 0x5cc   : > { %v4014_v61 = vmax.f32 %v3868_v29, %v5113_v12  ;;  %v5114_v62 = vpop.f32.mrb[90].mxu1 }
 0x5cd   : > { %v5170_v27 = vpop.f32.mrb[66].mxu0  ;;  %v5115_v31 = vpop.f32.mrb[91].mxu1 }
 0x5ce   : > { %v4160_v6 = vmax.f32 %v4014_v61, %v5169_v60  ;;  %v5116_v15 = vadd.f32 %v5115_v31, %v5114_v62  ;;  %v5171_v45 = vpop.f32.mrb[67].mxu0 }
 0x5cf   : > { %v5172_v50 = vadd.f32 %v5171_v45, %v5170_v27 }
 0x5d0   : > { %4169 = vst.msk [vmem:[%s8669_s19] sm:$0xff] %vm4168_vm7, %v4160_v6  ;;  %v4015_v36 = vmax.f32 %v3869_v7, %v5116_v15  ;;  %v5117_v63 = vpop.f32.mrb[92].mxu1 }
 0x5d1   : > { %v5173_v29 = vpop.f32.mrb[68].mxu0  ;;  %v5118_v1 = vpop.f32.mrb[93].mxu1 }
 0x5d2   : > { %v4161_v2 = vmax.f32 %v4015_v36, %v5172_v50  ;;  %v5119_v3 = vadd.f32 %v5118_v1, %v5117_v63  ;;  %v5174_v5 = vpop.f32.mrb[69].mxu0 }
 0x5d3   : > { %v5175_v10 = vadd.f32 %v5174_v5, %v5173_v29 }
 0x5d4   : > { %4170 = vst.msk [vmem:[%s8669_s19 + $0x8] sm:$0xff] %vm4168_vm7, %v4161_v2  ;;  %v4016_v53 = vmax.f32 %v3870_v37, %v5119_v3  ;;  %v5120_v11 = vpop.f32.mrb[94].mxu1 }
 0x5d5   : > { %v5176_v14 = vpop.f32.mrb[70].mxu0  ;;  %v5121_v39 = vpop.f32.mrb[95].mxu1 }
 0x5d6   : > { %v4162_v0 = vmax.f32 %v4016_v53, %v5175_v10  ;;  %v5122_v7 = vadd.f32 %v5121_v39, %v5120_v11  ;;  %v5177_v8 = vpop.f32.mrb[71].mxu0 }
 0x5d7   : > { %v5178_v30 = vadd.f32 %v5177_v8, %v5176_v14 }
 0x5d8   : > { %4171 = vst.msk [vmem:[%s8669_s19 + $0x10] sm:$0xff] %vm4168_vm7, %v4162_v0  ;;  %v4017_v42 = vmax.f32 %v3871_v41, %v5122_v7  ;;  %v5123_v43 = vpop.f32.mrb[96].mxu1 }
 0x5d9   : > { %v5179_v48 = vpop.f32.mrb[72].mxu0  ;;  %v5124_v44 = vpop.f32.mrb[97].mxu1 }
 0x5da   : > { %v4163_v16 = vmax.f32 %v4017_v42, %v5178_v30  ;;  %v5125_v19 = vadd.f32 %v5124_v44, %v5123_v43  ;;  %v5180_v37 = vpop.f32.mrb[73].mxu0 }
 0x5db   : > { %v5181_v51 = vadd.f32 %v5180_v37, %v5179_v48 }
 0x5dc   : > { %4172 = vst.msk [vmem:[%s8669_s19 + $0x18] sm:$0xff] %vm4168_vm7, %v4163_v16  ;;  %v4018_v52 = vmax.f32 %v3872_v49, %v5125_v19  ;;  %v5126_v54 = vpop.f32.mrb[98].mxu1 }
 0x5dd   : > { %v5182_v55 = vpop.f32.mrb[74].mxu0  ;;  %v5127_v24 = vpop.f32.mrb[99].mxu1 }
 0x5de   : > { %v4164_v38 = vmax.f32 %v4018_v52, %v5181_v51  ;;  %v5128_v40 = vadd.f32 %v5127_v24, %v5126_v54  ;;  %v5183_v41 = vpop.f32.mrb[75].mxu0 }
 0x5df   : > { %v5184_v26 = vadd.f32 %v5183_v41, %v5182_v55 }
 0x5e0   : > { %4173 = vst.msk [vmem:[%s8669_s19 + $0x20] sm:$0xff] %vm4168_vm7, %v4164_v38  ;;  %v4019_v9 = vmax.f32 %v3873_v22, %v5128_v40  ;;  %v5129_v18 = vpop.f32.mrb[100].mxu1 }
 0x5e1   : > { %v5185_v13 = vpop.f32.mrb[76].mxu0  ;;  %v5130_v17 = vpop.f32.mrb[101].mxu1 }
 0x5e2   : > { %v4165_v46 = vmax.f32 %v4019_v9, %v5184_v26  ;;  %v5131_v47 = vadd.f32 %v5130_v17, %v5129_v18  ;;  %v5186_v49 = vpop.f32.mrb[77].mxu0 }
 0x5e3   : > { %v5187_v34 = vadd.f32 %v5186_v49, %v5185_v13 }
 0x5e4   : > { %4174 = vst.msk [vmem:[%s8669_s19 + $0x28] sm:$0xff] %vm4168_vm7, %v4165_v46  ;;  %v4020_v33 = vmax.f32 %v3874_v4, %v5131_v47  ;;  %v5132_v23 = vpop.f32.mrb[102].mxu1 }
 0x5e5   : > { %v5188_v32 = vpop.f32.mrb[78].mxu0  ;;  %v5133_v57 = vpop.f32.mrb[103].mxu1 }
 0x5e6   : > { %v4166_v56 = vmax.f32 %v4020_v33, %v5187_v34  ;;  %v5134_v20 = vadd.f32 %v5133_v57, %v5132_v23  ;;  %v5189_v22 = vpop.f32.mrb[79].mxu0 }
 0x5e7   : > { %v5190_v12 = vadd.f32 %v5189_v22, %v5188_v32 }
 0x5e8   : > { %4175 = vst.msk [vmem:[%s8669_s19 + $0x30] sm:$0xff] %vm4168_vm7, %v4166_v56  ;;  %v4021_v25 = vmax.f32 %v3875_v59, %v5134_v20 }
 0x5ea   : > { %v4167_v60 = vmax.f32 %v4021_v25, %v5190_v12 }
 0x5ec   : > { %4176 = vst.msk [vmem:[%s8669_s19 + $0x38] sm:$0xff] %vm4168_vm7, %v4167_v60 }
 0x5ed PF: > { %s17_s24 = sadd.s32 1, %s5994_s24  }
 0x5ee   : > { %p14_p4 = scmp.ge.s32.totalorder %s17_s24, 4  }
 0x5f0   :  { %16 = sbr.rel (!%p14_p4) target bundleno = 1 (0x1), region = 100 }

</bundles_post_ra>
